<compile_context>
chip_gen: v7x
topology: tpu7x:2x2x1
jax: 0.10.0
libtpu: 0.0.40
codegen_flags: <defaults>
</compile_context>

<pallas_src>
import numpy as np

import jax
import jax.numpy as jnp
from jax.experimental import pallas as pl
from jax.experimental.pallas import tpu as pltpu


_NEG_SLOPE = 0.2


# ---------------------------------------------------------------------------
# Fused kernel: whole 5-layer discriminator for one image per grid step.
# ---------------------------------------------------------------------------
def _fused_disc_kernel(x_ref, s1_ref, b1_ref, s2_ref, b2_ref, s3_ref, b3_ref,
                       s4_ref, b4_ref, w5_ref, o_ref):
    x = x_ref[...]                                   # (Hp1, Wp1*Cin) bf16, padded
    for s_ref, b_ref in ((s1_ref, b1_ref), (s2_ref, b2_ref),
                         (s3_ref, b3_ref), (s4_ref, b4_ref)):
        acc = None
        for i in range(4):                           # kernel rows, statically unrolled
            # Row selection: picks padded input rows 2*oy+i and places them at
            # padded output row oy+1 (all-zero rows become next layer's padding).
            rows = jnp.dot(s_ref[i], x, preferred_element_type=jnp.float32)
            rows = rows.astype(jnp.bfloat16)         # exact: entries are copies of x
            # Banded weight matmul: folds the width stride, the channel
            # contraction and the zero column padding of the next layer.
            part = jnp.dot(rows, b_ref[i], preferred_element_type=jnp.float32)
            acc = part if acc is None else acc + part
        acc = jnp.where(acc >= 0.0, acc, _NEG_SLOPE * acc)   # fused LeakyReLU(0.2)
        x = acc.astype(jnp.bfloat16)                 # padded input of the next layer

    # Head conv (4x4, stride 1, pad 0, Cout=1): elementwise mult + full reduce
    # against the head weights embedded in the same padded layout.
    prod = x.astype(jnp.float32) * w5_ref[...]       # (Hp5, Wp5*C5) f32
    s = jnp.sum(prod, axis=1, keepdims=True)         # lane reduce    -> (Hp5, 1)
    s = jnp.sum(s, axis=0, keepdims=True)            # sublane reduce -> (1, 1)
    o_ref[0] = s                                     # one scalar per image


# ---------------------------------------------------------------------------
# Host-side (one-time) weight preprocessing: build the S_i / B_i matrices.
# ---------------------------------------------------------------------------
def _build_layer_mats(w_oihw, hp, wp, stride, out_pad):
    """Selection (S_i) and banded weight (B_i) matrices for one conv layer.

    Input activation layout : zero-padded, flattened to (hp, wp*cin).
    Output activation layout: zero-padded for the next layer,
                              (oh + 2*out_pad, (ow + 2*out_pad)*cout).
    """
    w = np.asarray(w_oihw, dtype=np.float32)         # (cout, cin, kh, kw) PyTorch layout
    cout, cin, kh, kw = w.shape
    oh = (hp - kh) // stride + 1
    ow = (wp - kw) // stride + 1
    hop = oh + 2 * out_pad
    wop = ow + 2 * out_pad
    S = np.zeros((kh, hop, hp), np.float32)
    B = np.zeros((kh, wp * cin, wop * cout), np.float32)
    for i in range(kh):
        for oy in range(oh):
            S[i, oy + out_pad, stride * oy + i] = 1.0
        # blk[j*cin + c, co] = w[co, c, i, j]
        blk = np.transpose(w[:, :, i, :], (2, 1, 0)).reshape(kw * cin, cout)
        for ox in range(ow):
            r0 = stride * ox * cin
            c0 = (ox + out_pad) * cout
            B[i, r0:r0 + kw * cin, c0:c0 + cout] = blk
    return jnp.asarray(S, jnp.bfloat16), jnp.asarray(B, jnp.bfloat16), oh, ow


def _build_head(w_oihw, hp, wp):
    """Embed the (1, cin, 4, 4) head weights into the padded (hp, wp*cin) layout."""
    w = np.asarray(w_oihw, np.float32)
    cout, cin, kh, kw = w.shape
    assert cout == 1
    w5p = np.zeros((hp, wp * cin), np.float32)
    for y in range(kh):
        for x in range(kw):
            w5p[y + 1, (x + 1) * cin:(x + 2) * cin] = w[0, :, y, x]
    return jnp.asarray(w5p, jnp.float32)


def prepare_params(params, *, in_size=64):
    """One-time preprocessing of the PyTorch-layout conv weights."""
    w1, w2, w3, w4, w5 = params
    prepared = []
    hp = wp = in_size + 2                            # conv1 padding = 1
    for w in (w1, w2, w3, w4):
        S, B, oh, ow = _build_layer_mats(w, hp, wp, stride=2, out_pad=1)
        prepared += [S, B]
        hp, wp = oh + 2, ow + 2
    prepared.append(_build_head(w5, hp, wp))
    return tuple(prepared)


# ---------------------------------------------------------------------------
# Forward pass.
# ---------------------------------------------------------------------------
def wgangp_discriminator_forward(x_nchw, prepared):
    s1, b1, s2, b2, s3, b3, s4, b4, w5p = prepared
    n, c, h, w = x_nchw.shape
    assert h + 2 == s1.shape[2] and (w + 2) * c == b1.shape[1], "shape mismatch"

    x = jnp.transpose(x_nchw, (0, 2, 3, 1))                  # NCHW -> NHWC
    x = jnp.pad(x, ((0, 0), (1, 1), (1, 1), (0, 0)))         # conv1 padding
    x = x.reshape(n, h + 2, (w + 2) * c).astype(jnp.bfloat16)

    weight_specs = [pl.BlockSpec(m.shape, lambda i: (0, 0, 0))
                    for m in (s1, b1, s2, b2, s3, b3, s4, b4)]

    out = pl.pallas_call(
        _fused_disc_kernel,
        out_shape=jax.ShapeDtypeStruct((n, 1, 1), jnp.float32),
        grid_spec=pltpu.PrefetchScalarGridSpec(
            num_scalar_prefetch=0,
            grid=(n,),                                       # one image per step
            in_specs=[pl.BlockSpec((None, h + 2, (w + 2) * c),
                                   lambda i: (i, 0, 0))]
                     + weight_specs
                     + [pl.BlockSpec(w5p.shape, lambda i: (0, 0))],
            out_specs=pl.BlockSpec((1, 1, 1), lambda i: (i, 0, 0)),
        ),
        compiler_params=pltpu.CompilerParams(
            dimension_semantics=("parallel",)),              # 2 TCs on v7x
    )(x, s1, b1, s2, b2, s3, b3, s4, b4, w5p)

    # PyTorch: output.view(-1, 1).squeeze(1) -> shape (N,)
    return out.reshape(-1)


# ---------------------------------------------------------------------------
# Pure-JAX reference (for a loose sanity check only).
# ---------------------------------------------------------------------------
def _reference_forward(x_nchw, params):
    x = x_nchw
    for idx, w in enumerate(params):
        stride, pad = (2, 1) if idx < 4 else (1, 0)
        x = jax.lax.conv_general_dilated(
            x, w, window_strides=(stride, stride),
            padding=((pad, pad), (pad, pad)),
            dimension_numbers=("NCHW", "OIHW", "NCHW"))
        if idx < 4:
            x = jnp.where(x >= 0, x, _NEG_SLOPE * x)
    return x.reshape(-1)


def init_params(key, channels, ndf):
    shapes = [
        (ndf, channels, 4, 4),
        (ndf * 2, ndf, 4, 4),
        (ndf * 4, ndf * 2, 4, 4),
        (ndf * 8, ndf * 4, 4, 4),
        (1, ndf * 8, 4, 4),
    ]
    keys = jax.random.split(key, len(shapes))
    return [0.05 * jax.random.normal(k, s, dtype=jnp.float32)
            for k, s in zip(keys, shapes)]


if __name__ == "__main__":
    # The 5-conv DCGAN stack requires 64x64 spatial input to reach a 1x1 output.
    channels, num_disc_filters, batch, size = 3, 8, 2, 64
    key = jax.random.PRNGKey(0)
    kx, kp = jax.random.split(key)
    x = jax.random.normal(kx, (batch, channels, size, size), dtype=jnp.float32)
    params = init_params(kp, channels, num_disc_filters)
    prepared = prepare_params(params, in_size=size)

    out = jax.jit(wgangp_discriminator_forward)(x, prepared)
    out = jax.block_until_ready(out)
    assert out.shape == (batch,), out.shape

    # Loose sanity check vs. f32 XLA reference (kernel uses bf16 MXU inputs).
    ref = jax.block_until_ready(_reference_forward(x, params))
    assert np.allclose(np.asarray(out), np.asarray(ref), atol=5e-2), (out, ref)

    print("KERNEL_OK")
</pallas_src>

<mosaic_0001>
module attributes {stable_mosaic.version = 11 : i64} {
  func.func @_fused_disc_kernel(%arg0: i32, %arg1: memref<1x66x198xbf16, #tpu.memory_space<vmem>>, %arg2: memref<4x34x66xbf16, #tpu.memory_space<vmem>>, %arg3: memref<4x198x272xbf16, #tpu.memory_space<vmem>>, %arg4: memref<4x18x34xbf16, #tpu.memory_space<vmem>>, %arg5: memref<4x272x288xbf16, #tpu.memory_space<vmem>>, %arg6: memref<4x10x18xbf16, #tpu.memory_space<vmem>>, %arg7: memref<4x288x320xbf16, #tpu.memory_space<vmem>>, %arg8: memref<4x6x10xbf16, #tpu.memory_space<vmem>>, %arg9: memref<4x320x384xbf16, #tpu.memory_space<vmem>>, %arg10: memref<6x384xf32, #tpu.memory_space<vmem>>, %arg11: memref<1x1x1xf32, #tpu.memory_space<vmem>>) attributes {dimension_semantics = [#tpu.dimension_semantics<parallel>], iteration_bounds = array<i64: 2>, scalar_prefetch = 0 : i64, scratch_operands = 0 : i64, tpu.core_type = #tpu.core_type<tc>, window_params = [{transform_indices = @transform_0, window_bounds = array<i64: 1, 66, 198>}, {pipeline_mode = #tpu.pipeline_mode<synchronous>, transform_indices = @transform_1, window_bounds = array<i64: 4, 34, 66>}, {pipeline_mode = #tpu.pipeline_mode<synchronous>, transform_indices = @transform_2, window_bounds = array<i64: 4, 198, 272>}, {pipeline_mode = #tpu.pipeline_mode<synchronous>, transform_indices = @transform_3, window_bounds = array<i64: 4, 18, 34>}, {pipeline_mode = #tpu.pipeline_mode<synchronous>, transform_indices = @transform_4, window_bounds = array<i64: 4, 272, 288>}, {pipeline_mode = #tpu.pipeline_mode<synchronous>, transform_indices = @transform_5, window_bounds = array<i64: 4, 10, 18>}, {pipeline_mode = #tpu.pipeline_mode<synchronous>, transform_indices = @transform_6, window_bounds = array<i64: 4, 288, 320>}, {pipeline_mode = #tpu.pipeline_mode<synchronous>, transform_indices = @transform_7, window_bounds = array<i64: 4, 6, 10>}, {pipeline_mode = #tpu.pipeline_mode<synchronous>, transform_indices = @transform_8, window_bounds = array<i64: 4, 320, 384>}, {pipeline_mode = #tpu.pipeline_mode<synchronous>, transform_indices = @transform_9, window_bounds = array<i64: 6, 384>}, {transform_indices = @transform_10, window_bounds = array<i64: 1, 1, 1>}]} {
    %c0 = arith.constant 0 : index
    %c0_0 = arith.constant 0 : index
    %c0_1 = arith.constant 0 : index
    %0 = vector.load %arg1[%c0, %c0_0, %c0_1] : memref<1x66x198xbf16, #tpu.memory_space<vmem>>, vector<1x66x198xbf16>
    %1 = vector.shape_cast %0 : vector<1x66x198xbf16> to vector<66x198xbf16>
    %c0_2 = arith.constant 0 : index
    %c0_3 = arith.constant 0 : index
    %c0_4 = arith.constant 0 : index
    %2 = vector.load %arg2[%c0_2, %c0_3, %c0_4] : memref<4x34x66xbf16, #tpu.memory_space<vmem>>, vector<1x34x66xbf16>
    %3 = vector.shape_cast %2 : vector<1x34x66xbf16> to vector<34x66xbf16>
    %cst = arith.constant dense<0.000000e+00> : vector<34x198xf32>
    %4 = tpu.matmul %3, %1, %cst {dimension_numbers = #tpu.dot_dimension_numbers<[1], [0], [0], [1], [0, 0, 1, 1], [], []>} : vector<34x66xbf16>, vector<66x198xbf16>, vector<34x198xf32> -> vector<34x198xf32>
    %5 = arith.truncf %4 : vector<34x198xf32> to vector<34x198xbf16>
    %c0_5 = arith.constant 0 : index
    %c0_6 = arith.constant 0 : index
    %c0_7 = arith.constant 0 : index
    %6 = vector.load %arg3[%c0_5, %c0_6, %c0_7] : memref<4x198x272xbf16, #tpu.memory_space<vmem>>, vector<1x198x272xbf16>
    %7 = vector.shape_cast %6 : vector<1x198x272xbf16> to vector<198x272xbf16>
    %cst_8 = arith.constant dense<0.000000e+00> : vector<34x272xf32>
    %8 = tpu.matmul %5, %7, %cst_8 {dimension_numbers = #tpu.dot_dimension_numbers<[1], [0], [0], [1], [0, 0, 1, 1], [], []>} : vector<34x198xbf16>, vector<198x272xbf16>, vector<34x272xf32> -> vector<34x272xf32>
    %c1 = arith.constant 1 : index
    %c0_9 = arith.constant 0 : index
    %c0_10 = arith.constant 0 : index
    %9 = vector.load %arg2[%c1, %c0_9, %c0_10] : memref<4x34x66xbf16, #tpu.memory_space<vmem>>, vector<1x34x66xbf16>
    %10 = vector.shape_cast %9 : vector<1x34x66xbf16> to vector<34x66xbf16>
    %cst_11 = arith.constant dense<0.000000e+00> : vector<34x198xf32>
    %11 = tpu.matmul %10, %1, %cst_11 {dimension_numbers = #tpu.dot_dimension_numbers<[1], [0], [0], [1], [0, 0, 1, 1], [], []>} : vector<34x66xbf16>, vector<66x198xbf16>, vector<34x198xf32> -> vector<34x198xf32>
    %12 = arith.truncf %11 : vector<34x198xf32> to vector<34x198xbf16>
    %c1_12 = arith.constant 1 : index
    %c0_13 = arith.constant 0 : index
    %c0_14 = arith.constant 0 : index
    %13 = vector.load %arg3[%c1_12, %c0_13, %c0_14] : memref<4x198x272xbf16, #tpu.memory_space<vmem>>, vector<1x198x272xbf16>
    %14 = vector.shape_cast %13 : vector<1x198x272xbf16> to vector<198x272xbf16>
    %cst_15 = arith.constant dense<0.000000e+00> : vector<34x272xf32>
    %15 = tpu.matmul %12, %14, %cst_15 {dimension_numbers = #tpu.dot_dimension_numbers<[1], [0], [0], [1], [0, 0, 1, 1], [], []>} : vector<34x198xbf16>, vector<198x272xbf16>, vector<34x272xf32> -> vector<34x272xf32>
    %16 = arith.addf %8, %15 : vector<34x272xf32>
    %c2 = arith.constant 2 : index
    %c0_16 = arith.constant 0 : index
    %c0_17 = arith.constant 0 : index
    %17 = vector.load %arg2[%c2, %c0_16, %c0_17] : memref<4x34x66xbf16, #tpu.memory_space<vmem>>, vector<1x34x66xbf16>
    %18 = vector.shape_cast %17 : vector<1x34x66xbf16> to vector<34x66xbf16>
    %cst_18 = arith.constant dense<0.000000e+00> : vector<34x198xf32>
    %19 = tpu.matmul %18, %1, %cst_18 {dimension_numbers = #tpu.dot_dimension_numbers<[1], [0], [0], [1], [0, 0, 1, 1], [], []>} : vector<34x66xbf16>, vector<66x198xbf16>, vector<34x198xf32> -> vector<34x198xf32>
    %20 = arith.truncf %19 : vector<34x198xf32> to vector<34x198xbf16>
    %c2_19 = arith.constant 2 : index
    %c0_20 = arith.constant 0 : index
    %c0_21 = arith.constant 0 : index
    %21 = vector.load %arg3[%c2_19, %c0_20, %c0_21] : memref<4x198x272xbf16, #tpu.memory_space<vmem>>, vector<1x198x272xbf16>
    %22 = vector.shape_cast %21 : vector<1x198x272xbf16> to vector<198x272xbf16>
    %cst_22 = arith.constant dense<0.000000e+00> : vector<34x272xf32>
    %23 = tpu.matmul %20, %22, %cst_22 {dimension_numbers = #tpu.dot_dimension_numbers<[1], [0], [0], [1], [0, 0, 1, 1], [], []>} : vector<34x198xbf16>, vector<198x272xbf16>, vector<34x272xf32> -> vector<34x272xf32>
    %24 = arith.addf %16, %23 : vector<34x272xf32>
    %c3 = arith.constant 3 : index
    %c0_23 = arith.constant 0 : index
    %c0_24 = arith.constant 0 : index
    %25 = vector.load %arg2[%c3, %c0_23, %c0_24] : memref<4x34x66xbf16, #tpu.memory_space<vmem>>, vector<1x34x66xbf16>
    %26 = vector.shape_cast %25 : vector<1x34x66xbf16> to vector<34x66xbf16>
    %cst_25 = arith.constant dense<0.000000e+00> : vector<34x198xf32>
    %27 = tpu.matmul %26, %1, %cst_25 {dimension_numbers = #tpu.dot_dimension_numbers<[1], [0], [0], [1], [0, 0, 1, 1], [], []>} : vector<34x66xbf16>, vector<66x198xbf16>, vector<34x198xf32> -> vector<34x198xf32>
    %28 = arith.truncf %27 : vector<34x198xf32> to vector<34x198xbf16>
    %c3_26 = arith.constant 3 : index
    %c0_27 = arith.constant 0 : index
    %c0_28 = arith.constant 0 : index
    %29 = vector.load %arg3[%c3_26, %c0_27, %c0_28] : memref<4x198x272xbf16, #tpu.memory_space<vmem>>, vector<1x198x272xbf16>
    %30 = vector.shape_cast %29 : vector<1x198x272xbf16> to vector<198x272xbf16>
    %cst_29 = arith.constant dense<0.000000e+00> : vector<34x272xf32>
    %31 = tpu.matmul %28, %30, %cst_29 {dimension_numbers = #tpu.dot_dimension_numbers<[1], [0], [0], [1], [0, 0, 1, 1], [], []>} : vector<34x198xbf16>, vector<198x272xbf16>, vector<34x272xf32> -> vector<34x272xf32>
    %32 = arith.addf %24, %31 : vector<34x272xf32>
    %cst_30 = arith.constant 0.000000e+00 : f32
    %33 = vector.broadcast %cst_30 : f32 to vector<34x272xf32>
    %34 = arith.cmpf oge, %32, %33 : vector<34x272xf32>
    %cst_31 = arith.constant 2.000000e-01 : f32
    %35 = vector.broadcast %cst_31 : f32 to vector<34x272xf32>
    %36 = arith.mulf %35, %32 : vector<34x272xf32>
    %37 = arith.select %34, %32, %36 : vector<34x272xi1>, vector<34x272xf32>
    %38 = arith.truncf %37 : vector<34x272xf32> to vector<34x272xbf16>
    %c0_32 = arith.constant 0 : index
    %c0_33 = arith.constant 0 : index
    %c0_34 = arith.constant 0 : index
    %39 = vector.load %arg4[%c0_32, %c0_33, %c0_34] : memref<4x18x34xbf16, #tpu.memory_space<vmem>>, vector<1x18x34xbf16>
    %40 = vector.shape_cast %39 : vector<1x18x34xbf16> to vector<18x34xbf16>
    %cst_35 = arith.constant dense<0.000000e+00> : vector<18x272xf32>
    %41 = tpu.matmul %40, %38, %cst_35 {dimension_numbers = #tpu.dot_dimension_numbers<[1], [0], [0], [1], [0, 0, 1, 1], [], []>} : vector<18x34xbf16>, vector<34x272xbf16>, vector<18x272xf32> -> vector<18x272xf32>
    %42 = arith.truncf %41 : vector<18x272xf32> to vector<18x272xbf16>
    %c0_36 = arith.constant 0 : index
    %c0_37 = arith.constant 0 : index
    %c0_38 = arith.constant 0 : index
    %43 = vector.load %arg5[%c0_36, %c0_37, %c0_38] : memref<4x272x288xbf16, #tpu.memory_space<vmem>>, vector<1x272x288xbf16>
    %44 = vector.shape_cast %43 : vector<1x272x288xbf16> to vector<272x288xbf16>
    %cst_39 = arith.constant dense<0.000000e+00> : vector<18x288xf32>
    %45 = tpu.matmul %42, %44, %cst_39 {dimension_numbers = #tpu.dot_dimension_numbers<[1], [0], [0], [1], [0, 0, 1, 1], [], []>} : vector<18x272xbf16>, vector<272x288xbf16>, vector<18x288xf32> -> vector<18x288xf32>
    %c1_40 = arith.constant 1 : index
    %c0_41 = arith.constant 0 : index
    %c0_42 = arith.constant 0 : index
    %46 = vector.load %arg4[%c1_40, %c0_41, %c0_42] : memref<4x18x34xbf16, #tpu.memory_space<vmem>>, vector<1x18x34xbf16>
    %47 = vector.shape_cast %46 : vector<1x18x34xbf16> to vector<18x34xbf16>
    %cst_43 = arith.constant dense<0.000000e+00> : vector<18x272xf32>
    %48 = tpu.matmul %47, %38, %cst_43 {dimension_numbers = #tpu.dot_dimension_numbers<[1], [0], [0], [1], [0, 0, 1, 1], [], []>} : vector<18x34xbf16>, vector<34x272xbf16>, vector<18x272xf32> -> vector<18x272xf32>
    %49 = arith.truncf %48 : vector<18x272xf32> to vector<18x272xbf16>
    %c1_44 = arith.constant 1 : index
    %c0_45 = arith.constant 0 : index
    %c0_46 = arith.constant 0 : index
    %50 = vector.load %arg5[%c1_44, %c0_45, %c0_46] : memref<4x272x288xbf16, #tpu.memory_space<vmem>>, vector<1x272x288xbf16>
    %51 = vector.shape_cast %50 : vector<1x272x288xbf16> to vector<272x288xbf16>
    %cst_47 = arith.constant dense<0.000000e+00> : vector<18x288xf32>
    %52 = tpu.matmul %49, %51, %cst_47 {dimension_numbers = #tpu.dot_dimension_numbers<[1], [0], [0], [1], [0, 0, 1, 1], [], []>} : vector<18x272xbf16>, vector<272x288xbf16>, vector<18x288xf32> -> vector<18x288xf32>
    %53 = arith.addf %45, %52 : vector<18x288xf32>
    %c2_48 = arith.constant 2 : index
    %c0_49 = arith.constant 0 : index
    %c0_50 = arith.constant 0 : index
    %54 = vector.load %arg4[%c2_48, %c0_49, %c0_50] : memref<4x18x34xbf16, #tpu.memory_space<vmem>>, vector<1x18x34xbf16>
    %55 = vector.shape_cast %54 : vector<1x18x34xbf16> to vector<18x34xbf16>
    %cst_51 = arith.constant dense<0.000000e+00> : vector<18x272xf32>
    %56 = tpu.matmul %55, %38, %cst_51 {dimension_numbers = #tpu.dot_dimension_numbers<[1], [0], [0], [1], [0, 0, 1, 1], [], []>} : vector<18x34xbf16>, vector<34x272xbf16>, vector<18x272xf32> -> vector<18x272xf32>
    %57 = arith.truncf %56 : vector<18x272xf32> to vector<18x272xbf16>
    %c2_52 = arith.constant 2 : index
    %c0_53 = arith.constant 0 : index
    %c0_54 = arith.constant 0 : index
    %58 = vector.load %arg5[%c2_52, %c0_53, %c0_54] : memref<4x272x288xbf16, #tpu.memory_space<vmem>>, vector<1x272x288xbf16>
    %59 = vector.shape_cast %58 : vector<1x272x288xbf16> to vector<272x288xbf16>
    %cst_55 = arith.constant dense<0.000000e+00> : vector<18x288xf32>
    %60 = tpu.matmul %57, %59, %cst_55 {dimension_numbers = #tpu.dot_dimension_numbers<[1], [0], [0], [1], [0, 0, 1, 1], [], []>} : vector<18x272xbf16>, vector<272x288xbf16>, vector<18x288xf32> -> vector<18x288xf32>
    %61 = arith.addf %53, %60 : vector<18x288xf32>
    %c3_56 = arith.constant 3 : index
    %c0_57 = arith.constant 0 : index
    %c0_58 = arith.constant 0 : index
    %62 = vector.load %arg4[%c3_56, %c0_57, %c0_58] : memref<4x18x34xbf16, #tpu.memory_space<vmem>>, vector<1x18x34xbf16>
    %63 = vector.shape_cast %62 : vector<1x18x34xbf16> to vector<18x34xbf16>
    %cst_59 = arith.constant dense<0.000000e+00> : vector<18x272xf32>
    %64 = tpu.matmul %63, %38, %cst_59 {dimension_numbers = #tpu.dot_dimension_numbers<[1], [0], [0], [1], [0, 0, 1, 1], [], []>} : vector<18x34xbf16>, vector<34x272xbf16>, vector<18x272xf32> -> vector<18x272xf32>
    %65 = arith.truncf %64 : vector<18x272xf32> to vector<18x272xbf16>
    %c3_60 = arith.constant 3 : index
    %c0_61 = arith.constant 0 : index
    %c0_62 = arith.constant 0 : index
    %66 = vector.load %arg5[%c3_60, %c0_61, %c0_62] : memref<4x272x288xbf16, #tpu.memory_space<vmem>>, vector<1x272x288xbf16>
    %67 = vector.shape_cast %66 : vector<1x272x288xbf16> to vector<272x288xbf16>
    %cst_63 = arith.constant dense<0.000000e+00> : vector<18x288xf32>
    %68 = tpu.matmul %65, %67, %cst_63 {dimension_numbers = #tpu.dot_dimension_numbers<[1], [0], [0], [1], [0, 0, 1, 1], [], []>} : vector<18x272xbf16>, vector<272x288xbf16>, vector<18x288xf32> -> vector<18x288xf32>
    %69 = arith.addf %61, %68 : vector<18x288xf32>
    %cst_64 = arith.constant 0.000000e+00 : f32
    %70 = vector.broadcast %cst_64 : f32 to vector<18x288xf32>
    %71 = arith.cmpf oge, %69, %70 : vector<18x288xf32>
    %cst_65 = arith.constant 2.000000e-01 : f32
    %72 = vector.broadcast %cst_65 : f32 to vector<18x288xf32>
    %73 = arith.mulf %72, %69 : vector<18x288xf32>
    %74 = arith.select %71, %69, %73 : vector<18x288xi1>, vector<18x288xf32>
    %75 = arith.truncf %74 : vector<18x288xf32> to vector<18x288xbf16>
    %c0_66 = arith.constant 0 : index
    %c0_67 = arith.constant 0 : index
    %c0_68 = arith.constant 0 : index
    %76 = vector.load %arg6[%c0_66, %c0_67, %c0_68] : memref<4x10x18xbf16, #tpu.memory_space<vmem>>, vector<1x10x18xbf16>
    %77 = vector.shape_cast %76 : vector<1x10x18xbf16> to vector<10x18xbf16>
    %cst_69 = arith.constant dense<0.000000e+00> : vector<10x288xf32>
    %78 = tpu.matmul %77, %75, %cst_69 {dimension_numbers = #tpu.dot_dimension_numbers<[1], [0], [0], [1], [0, 0, 1, 1], [], []>} : vector<10x18xbf16>, vector<18x288xbf16>, vector<10x288xf32> -> vector<10x288xf32>
    %79 = arith.truncf %78 : vector<10x288xf32> to vector<10x288xbf16>
    %c0_70 = arith.constant 0 : index
    %c0_71 = arith.constant 0 : index
    %c0_72 = arith.constant 0 : index
    %80 = vector.load %arg7[%c0_70, %c0_71, %c0_72] : memref<4x288x320xbf16, #tpu.memory_space<vmem>>, vector<1x288x320xbf16>
    %81 = vector.shape_cast %80 : vector<1x288x320xbf16> to vector<288x320xbf16>
    %cst_73 = arith.constant dense<0.000000e+00> : vector<10x320xf32>
    %82 = tpu.matmul %79, %81, %cst_73 {dimension_numbers = #tpu.dot_dimension_numbers<[1], [0], [0], [1], [0, 0, 1, 1], [], []>} : vector<10x288xbf16>, vector<288x320xbf16>, vector<10x320xf32> -> vector<10x320xf32>
    %c1_74 = arith.constant 1 : index
    %c0_75 = arith.constant 0 : index
    %c0_76 = arith.constant 0 : index
    %83 = vector.load %arg6[%c1_74, %c0_75, %c0_76] : memref<4x10x18xbf16, #tpu.memory_space<vmem>>, vector<1x10x18xbf16>
    %84 = vector.shape_cast %83 : vector<1x10x18xbf16> to vector<10x18xbf16>
    %cst_77 = arith.constant dense<0.000000e+00> : vector<10x288xf32>
    %85 = tpu.matmul %84, %75, %cst_77 {dimension_numbers = #tpu.dot_dimension_numbers<[1], [0], [0], [1], [0, 0, 1, 1], [], []>} : vector<10x18xbf16>, vector<18x288xbf16>, vector<10x288xf32> -> vector<10x288xf32>
    %86 = arith.truncf %85 : vector<10x288xf32> to vector<10x288xbf16>
    %c1_78 = arith.constant 1 : index
    %c0_79 = arith.constant 0 : index
    %c0_80 = arith.constant 0 : index
    %87 = vector.load %arg7[%c1_78, %c0_79, %c0_80] : memref<4x288x320xbf16, #tpu.memory_space<vmem>>, vector<1x288x320xbf16>
    %88 = vector.shape_cast %87 : vector<1x288x320xbf16> to vector<288x320xbf16>
    %cst_81 = arith.constant dense<0.000000e+00> : vector<10x320xf32>
    %89 = tpu.matmul %86, %88, %cst_81 {dimension_numbers = #tpu.dot_dimension_numbers<[1], [0], [0], [1], [0, 0, 1, 1], [], []>} : vector<10x288xbf16>, vector<288x320xbf16>, vector<10x320xf32> -> vector<10x320xf32>
    %90 = arith.addf %82, %89 : vector<10x320xf32>
    %c2_82 = arith.constant 2 : index
    %c0_83 = arith.constant 0 : index
    %c0_84 = arith.constant 0 : index
    %91 = vector.load %arg6[%c2_82, %c0_83, %c0_84] : memref<4x10x18xbf16, #tpu.memory_space<vmem>>, vector<1x10x18xbf16>
    %92 = vector.shape_cast %91 : vector<1x10x18xbf16> to vector<10x18xbf16>
    %cst_85 = arith.constant dense<0.000000e+00> : vector<10x288xf32>
    %93 = tpu.matmul %92, %75, %cst_85 {dimension_numbers = #tpu.dot_dimension_numbers<[1], [0], [0], [1], [0, 0, 1, 1], [], []>} : vector<10x18xbf16>, vector<18x288xbf16>, vector<10x288xf32> -> vector<10x288xf32>
    %94 = arith.truncf %93 : vector<10x288xf32> to vector<10x288xbf16>
    %c2_86 = arith.constant 2 : index
    %c0_87 = arith.constant 0 : index
    %c0_88 = arith.constant 0 : index
    %95 = vector.load %arg7[%c2_86, %c0_87, %c0_88] : memref<4x288x320xbf16, #tpu.memory_space<vmem>>, vector<1x288x320xbf16>
    %96 = vector.shape_cast %95 : vector<1x288x320xbf16> to vector<288x320xbf16>
    %cst_89 = arith.constant dense<0.000000e+00> : vector<10x320xf32>
    %97 = tpu.matmul %94, %96, %cst_89 {dimension_numbers = #tpu.dot_dimension_numbers<[1], [0], [0], [1], [0, 0, 1, 1], [], []>} : vector<10x288xbf16>, vector<288x320xbf16>, vector<10x320xf32> -> vector<10x320xf32>
    %98 = arith.addf %90, %97 : vector<10x320xf32>
    %c3_90 = arith.constant 3 : index
    %c0_91 = arith.constant 0 : index
    %c0_92 = arith.constant 0 : index
    %99 = vector.load %arg6[%c3_90, %c0_91, %c0_92] : memref<4x10x18xbf16, #tpu.memory_space<vmem>>, vector<1x10x18xbf16>
    %100 = vector.shape_cast %99 : vector<1x10x18xbf16> to vector<10x18xbf16>
    %cst_93 = arith.constant dense<0.000000e+00> : vector<10x288xf32>
    %101 = tpu.matmul %100, %75, %cst_93 {dimension_numbers = #tpu.dot_dimension_numbers<[1], [0], [0], [1], [0, 0, 1, 1], [], []>} : vector<10x18xbf16>, vector<18x288xbf16>, vector<10x288xf32> -> vector<10x288xf32>
    %102 = arith.truncf %101 : vector<10x288xf32> to vector<10x288xbf16>
    %c3_94 = arith.constant 3 : index
    %c0_95 = arith.constant 0 : index
    %c0_96 = arith.constant 0 : index
    %103 = vector.load %arg7[%c3_94, %c0_95, %c0_96] : memref<4x288x320xbf16, #tpu.memory_space<vmem>>, vector<1x288x320xbf16>
    %104 = vector.shape_cast %103 : vector<1x288x320xbf16> to vector<288x320xbf16>
    %cst_97 = arith.constant dense<0.000000e+00> : vector<10x320xf32>
    %105 = tpu.matmul %102, %104, %cst_97 {dimension_numbers = #tpu.dot_dimension_numbers<[1], [0], [0], [1], [0, 0, 1, 1], [], []>} : vector<10x288xbf16>, vector<288x320xbf16>, vector<10x320xf32> -> vector<10x320xf32>
    %106 = arith.addf %98, %105 : vector<10x320xf32>
    %cst_98 = arith.constant 0.000000e+00 : f32
    %107 = vector.broadcast %cst_98 : f32 to vector<10x320xf32>
    %108 = arith.cmpf oge, %106, %107 : vector<10x320xf32>
    %cst_99 = arith.constant 2.000000e-01 : f32
    %109 = vector.broadcast %cst_99 : f32 to vector<10x320xf32>
    %110 = arith.mulf %109, %106 : vector<10x320xf32>
    %111 = arith.select %108, %106, %110 : vector<10x320xi1>, vector<10x320xf32>
    %112 = arith.truncf %111 : vector<10x320xf32> to vector<10x320xbf16>
    %c0_100 = arith.constant 0 : index
    %c0_101 = arith.constant 0 : index
    %c0_102 = arith.constant 0 : index
    %113 = vector.load %arg8[%c0_100, %c0_101, %c0_102] : memref<4x6x10xbf16, #tpu.memory_space<vmem>>, vector<1x6x10xbf16>
    %114 = vector.shape_cast %113 : vector<1x6x10xbf16> to vector<6x10xbf16>
    %cst_103 = arith.constant dense<0.000000e+00> : vector<6x320xf32>
    %115 = tpu.matmul %114, %112, %cst_103 {dimension_numbers = #tpu.dot_dimension_numbers<[1], [0], [0], [1], [0, 0, 1, 1], [], []>} : vector<6x10xbf16>, vector<10x320xbf16>, vector<6x320xf32> -> vector<6x320xf32>
    %116 = arith.truncf %115 : vector<6x320xf32> to vector<6x320xbf16>
    %c0_104 = arith.constant 0 : index
    %c0_105 = arith.constant 0 : index
    %c0_106 = arith.constant 0 : index
    %117 = vector.load %arg9[%c0_104, %c0_105, %c0_106] : memref<4x320x384xbf16, #tpu.memory_space<vmem>>, vector<1x320x384xbf16>
    %118 = vector.shape_cast %117 : vector<1x320x384xbf16> to vector<320x384xbf16>
    %cst_107 = arith.constant dense<0.000000e+00> : vector<6x384xf32>
    %119 = tpu.matmul %116, %118, %cst_107 {dimension_numbers = #tpu.dot_dimension_numbers<[1], [0], [0], [1], [0, 0, 1, 1], [], []>} : vector<6x320xbf16>, vector<320x384xbf16>, vector<6x384xf32> -> vector<6x384xf32>
    %c1_108 = arith.constant 1 : index
    %c0_109 = arith.constant 0 : index
    %c0_110 = arith.constant 0 : index
    %120 = vector.load %arg8[%c1_108, %c0_109, %c0_110] : memref<4x6x10xbf16, #tpu.memory_space<vmem>>, vector<1x6x10xbf16>
    %121 = vector.shape_cast %120 : vector<1x6x10xbf16> to vector<6x10xbf16>
    %cst_111 = arith.constant dense<0.000000e+00> : vector<6x320xf32>
    %122 = tpu.matmul %121, %112, %cst_111 {dimension_numbers = #tpu.dot_dimension_numbers<[1], [0], [0], [1], [0, 0, 1, 1], [], []>} : vector<6x10xbf16>, vector<10x320xbf16>, vector<6x320xf32> -> vector<6x320xf32>
    %123 = arith.truncf %122 : vector<6x320xf32> to vector<6x320xbf16>
    %c1_112 = arith.constant 1 : index
    %c0_113 = arith.constant 0 : index
    %c0_114 = arith.constant 0 : index
    %124 = vector.load %arg9[%c1_112, %c0_113, %c0_114] : memref<4x320x384xbf16, #tpu.memory_space<vmem>>, vector<1x320x384xbf16>
    %125 = vector.shape_cast %124 : vector<1x320x384xbf16> to vector<320x384xbf16>
    %cst_115 = arith.constant dense<0.000000e+00> : vector<6x384xf32>
    %126 = tpu.matmul %123, %125, %cst_115 {dimension_numbers = #tpu.dot_dimension_numbers<[1], [0], [0], [1], [0, 0, 1, 1], [], []>} : vector<6x320xbf16>, vector<320x384xbf16>, vector<6x384xf32> -> vector<6x384xf32>
    %127 = arith.addf %119, %126 : vector<6x384xf32>
    %c2_116 = arith.constant 2 : index
    %c0_117 = arith.constant 0 : index
    %c0_118 = arith.constant 0 : index
    %128 = vector.load %arg8[%c2_116, %c0_117, %c0_118] : memref<4x6x10xbf16, #tpu.memory_space<vmem>>, vector<1x6x10xbf16>
    %129 = vector.shape_cast %128 : vector<1x6x10xbf16> to vector<6x10xbf16>
    %cst_119 = arith.constant dense<0.000000e+00> : vector<6x320xf32>
    %130 = tpu.matmul %129, %112, %cst_119 {dimension_numbers = #tpu.dot_dimension_numbers<[1], [0], [0], [1], [0, 0, 1, 1], [], []>} : vector<6x10xbf16>, vector<10x320xbf16>, vector<6x320xf32> -> vector<6x320xf32>
    %131 = arith.truncf %130 : vector<6x320xf32> to vector<6x320xbf16>
    %c2_120 = arith.constant 2 : index
    %c0_121 = arith.constant 0 : index
    %c0_122 = arith.constant 0 : index
    %132 = vector.load %arg9[%c2_120, %c0_121, %c0_122] : memref<4x320x384xbf16, #tpu.memory_space<vmem>>, vector<1x320x384xbf16>
    %133 = vector.shape_cast %132 : vector<1x320x384xbf16> to vector<320x384xbf16>
    %cst_123 = arith.constant dense<0.000000e+00> : vector<6x384xf32>
    %134 = tpu.matmul %131, %133, %cst_123 {dimension_numbers = #tpu.dot_dimension_numbers<[1], [0], [0], [1], [0, 0, 1, 1], [], []>} : vector<6x320xbf16>, vector<320x384xbf16>, vector<6x384xf32> -> vector<6x384xf32>
    %135 = arith.addf %127, %134 : vector<6x384xf32>
    %c3_124 = arith.constant 3 : index
    %c0_125 = arith.constant 0 : index
    %c0_126 = arith.constant 0 : index
    %136 = vector.load %arg8[%c3_124, %c0_125, %c0_126] : memref<4x6x10xbf16, #tpu.memory_space<vmem>>, vector<1x6x10xbf16>
    %137 = vector.shape_cast %136 : vector<1x6x10xbf16> to vector<6x10xbf16>
    %cst_127 = arith.constant dense<0.000000e+00> : vector<6x320xf32>
    %138 = tpu.matmul %137, %112, %cst_127 {dimension_numbers = #tpu.dot_dimension_numbers<[1], [0], [0], [1], [0, 0, 1, 1], [], []>} : vector<6x10xbf16>, vector<10x320xbf16>, vector<6x320xf32> -> vector<6x320xf32>
    %139 = arith.truncf %138 : vector<6x320xf32> to vector<6x320xbf16>
    %c3_128 = arith.constant 3 : index
    %c0_129 = arith.constant 0 : index
    %c0_130 = arith.constant 0 : index
    %140 = vector.load %arg9[%c3_128, %c0_129, %c0_130] : memref<4x320x384xbf16, #tpu.memory_space<vmem>>, vector<1x320x384xbf16>
    %141 = vector.shape_cast %140 : vector<1x320x384xbf16> to vector<320x384xbf16>
    %cst_131 = arith.constant dense<0.000000e+00> : vector<6x384xf32>
    %142 = tpu.matmul %139, %141, %cst_131 {dimension_numbers = #tpu.dot_dimension_numbers<[1], [0], [0], [1], [0, 0, 1, 1], [], []>} : vector<6x320xbf16>, vector<320x384xbf16>, vector<6x384xf32> -> vector<6x384xf32>
    %143 = arith.addf %135, %142 : vector<6x384xf32>
    %cst_132 = arith.constant 0.000000e+00 : f32
    %144 = vector.broadcast %cst_132 : f32 to vector<6x384xf32>
    %145 = arith.cmpf oge, %143, %144 : vector<6x384xf32>
    %cst_133 = arith.constant 2.000000e-01 : f32
    %146 = vector.broadcast %cst_133 : f32 to vector<6x384xf32>
    %147 = arith.mulf %146, %143 : vector<6x384xf32>
    %148 = arith.select %145, %143, %147 : vector<6x384xi1>, vector<6x384xf32>
    %149 = arith.truncf %148 : vector<6x384xf32> to vector<6x384xbf16>
    %150 = arith.extf %149 : vector<6x384xbf16> to vector<6x384xf32>
    %c0_134 = arith.constant 0 : index
    %c0_135 = arith.constant 0 : index
    %151 = vector.load %arg10[%c0_134, %c0_135] : memref<6x384xf32, #tpu.memory_space<vmem>>, vector<6x384xf32>
    %152 = arith.mulf %150, %151 : vector<6x384xf32>
    %cst_136 = arith.constant dense<0.000000e+00> : vector<6xf32>
    %153 = vector.multi_reduction <add>, %152, %cst_136 [1] : vector<6x384xf32> to vector<6xf32>
    %154 = vector.shape_cast %153 : vector<6xf32> to vector<6x1xf32>
    %cst_137 = arith.constant dense<0.000000e+00> : vector<1xf32>
    %155 = vector.multi_reduction <add>, %154, %cst_137 [0] : vector<6x1xf32> to vector<1xf32>
    %156 = vector.shape_cast %155 : vector<1xf32> to vector<1x1xf32>
    %c0_138 = arith.constant 0 : index
    %c0_139 = arith.constant 0 : index
    %c0_140 = arith.constant 0 : index
    %157 = vector.load %arg11[%c0_138, %c0_139, %c0_140] : memref<1x1x1xf32, #tpu.memory_space<vmem>>, vector<1x1x1xf32>
    %158 = vector.shape_cast %157 : vector<1x1x1xf32> to vector<1x1xf32>
    %159 = vector.shape_cast %156 : vector<1x1xf32> to vector<1x1x1xf32>
    tpu.vector_store %arg11[%c0_138, %c0_139, %c0_140], %159 {strides = array<i32>} : memref<1x1x1xf32, #tpu.memory_space<vmem>>, vector<1x1x1xf32>,
    return
  }
  func.func @transform_0(%arg0: i32) -> (i32, i32, i32) {
    %c0_i32 = arith.constant 0 : i32
    %c0_i32_0 = arith.constant 0 : i32
    %c0_i32_1 = arith.constant 0 : i32
    return %arg0, %c0_i32, %c0_i32_0 : i32, i32, i32
  }
  func.func @transform_1(%arg0: i32) -> (i32, i32, i32) {
    %c0_i32 = arith.constant 0 : i32
    %c0_i32_0 = arith.constant 0 : i32
    %c0_i32_1 = arith.constant 0 : i32
    %c0_i32_2 = arith.constant 0 : i32
    return %c0_i32, %c0_i32_0, %c0_i32_1 : i32, i32, i32
  }
  func.func @transform_2(%arg0: i32) -> (i32, i32, i32) {
    %c0_i32 = arith.constant 0 : i32
    %c0_i32_0 = arith.constant 0 : i32
    %c0_i32_1 = arith.constant 0 : i32
    %c0_i32_2 = arith.constant 0 : i32
    return %c0_i32, %c0_i32_0, %c0_i32_1 : i32, i32, i32
  }
  func.func @transform_3(%arg0: i32) -> (i32, i32, i32) {
    %c0_i32 = arith.constant 0 : i32
    %c0_i32_0 = arith.constant 0 : i32
    %c0_i32_1 = arith.constant 0 : i32
    %c0_i32_2 = arith.constant 0 : i32
    return %c0_i32, %c0_i32_0, %c0_i32_1 : i32, i32, i32
  }
  func.func @transform_4(%arg0: i32) -> (i32, i32, i32) {
    %c0_i32 = arith.constant 0 : i32
    %c0_i32_0 = arith.constant 0 : i32
    %c0_i32_1 = arith.constant 0 : i32
    %c0_i32_2 = arith.constant 0 : i32
    return %c0_i32, %c0_i32_0, %c0_i32_1 : i32, i32, i32
  }
  func.func @transform_5(%arg0: i32) -> (i32, i32, i32) {
    %c0_i32 = arith.constant 0 : i32
    %c0_i32_0 = arith.constant 0 : i32
    %c0_i32_1 = arith.constant 0 : i32
    %c0_i32_2 = arith.constant 0 : i32
    return %c0_i32, %c0_i32_0, %c0_i32_1 : i32, i32, i32
  }
  func.func @transform_6(%arg0: i32) -> (i32, i32, i32) {
    %c0_i32 = arith.constant 0 : i32
    %c0_i32_0 = arith.constant 0 : i32
    %c0_i32_1 = arith.constant 0 : i32
    %c0_i32_2 = arith.constant 0 : i32
    return %c0_i32, %c0_i32_0, %c0_i32_1 : i32, i32, i32
  }
  func.func @transform_7(%arg0: i32) -> (i32, i32, i32) {
    %c0_i32 = arith.constant 0 : i32
    %c0_i32_0 = arith.constant 0 : i32
    %c0_i32_1 = arith.constant 0 : i32
    %c0_i32_2 = arith.constant 0 : i32
    return %c0_i32, %c0_i32_0, %c0_i32_1 : i32, i32, i32
  }
  func.func @transform_8(%arg0: i32) -> (i32, i32, i32) {
    %c0_i32 = arith.constant 0 : i32
    %c0_i32_0 = arith.constant 0 : i32
    %c0_i32_1 = arith.constant 0 : i32
    %c0_i32_2 = arith.constant 0 : i32
    return %c0_i32, %c0_i32_0, %c0_i32_1 : i32, i32, i32
  }
  func.func @transform_9(%arg0: i32) -> (i32, i32) {
    %c0_i32 = arith.constant 0 : i32
    %c0_i32_0 = arith.constant 0 : i32
    %c0_i32_1 = arith.constant 0 : i32
    return %c0_i32, %c0_i32_0 : i32, i32
  }
  func.func @transform_10(%arg0: i32) -> (i32, i32, i32) {
    %c0_i32 = arith.constant 0 : i32
    %c0_i32_0 = arith.constant 0 : i32
    %c0_i32_1 = arith.constant 0 : i32
    return %arg0, %c0_i32, %c0_i32_0 : i32, i32, i32
  }
}

</mosaic_0001>

<bundles_post_ra>
// kernel: wgangp_discriminator_forward.1
= control target key start
LH: loop header
LB: loop body
LE: loop exit
PB: predicated region body
PF: predicated region fallthrough
CT: control target
= control target key end

     0   :  { %15 = vsyncpa [#allocation3], 0  ;;  %s14164_s13 = smov 0   ;;  %s16724_s0 = inlined_call_operand.vmem [shape: bf16[2,66,198], index: 0, kind: input, shape index: {}]   ;;  %s16725_s1 = inlined_call_operand.vmem [shape: bf16[4,34,66], index: 1, kind: input, shape index: {}]   ;;  %s16726_s2 = inlined_call_operand.vmem [shape: bf16[4,198,272], index: 2, kind: input, shape index: {}]   ;;  %s16727_s3 = inlined_call_operand.vmem [shape: bf16[4,18,34], index: 3, kind: input, shape index: {}]   ;;  %s16728_s4 = inlined_call_operand.hbm [shape: bf16[4,272,288], index: 4, kind: input, shape index: {}]   ;;  %s16729_s5 = inlined_call_operand.vmem [shape: bf16[4,10,18], index: 5, kind: input, shape index: {}]   ;;  %s16730_s6 = inlined_call_operand.vmem [shape: bf16[4,288,320], index: 6, kind: input, shape index: {}]   ;;  %s16731_s7 = inlined_call_operand.vmem [shape: bf16[4,6,10], index: 7, kind: input, shape index: {}]   ;;  %s16732_s8 = inlined_call_operand.vmem [shape: bf16[4,320,384], index: 8, kind: input, shape index: {}]   ;;  %s16733_s9 = inlined_call_operand.vmem [shape: f32[6,384], index: 9, kind: input, shape index: {}]   ;;  %s16734_s10 = inlined_call_operand.vmem [shape: f32[2,1,1], index: 10, kind: output, shape index: {}]  }
   0x1 LB: > { %s14170_s14 = sadd.s32 4294967295, %s14101_s13   ;;  %p10471_p0 = scmp.ge.s32.totalorder %s14101_s13, 1  ;;  %s14101_s13 = sphi %s14164_s13, %s21_s13  }
   0x2   : > { %p267_p1 = scmp.lt.s32.totalorder %s14101_s13, 3  ;;  %s14103_s15 = smov [#allocation2]  }
   0x3   : > { %s288_s16 = sshll.u32 %s14103_s15, 4  ;;  %p16735_p3 = scmp.eq.s32.totalorder %s14170_s14, 0  ;;  %s289_s16 = int_to_ptr.vmem [resolvable:$true] %s288_s16 }
   0x4   : > { %p14174_p2 = pnand %p10471_p0, %p267_p1  ;;  %s14063_s21 = scalar_lea.hbm %s16728_s4, 26112 }
   0x5   : > { %p14064_p6 = scmp.ne.s32.totalorder %s16728_s4, %s14063_s21  ;;  %p14070_p10 = scmp.lt.u32.totalorder %s14063_s21, %s16728_s4 }
   0x6   : > { %s16737_s17 = scalar_select %p14174_p2, 1, 0 }
   0x7   : > { %p12913_p4 = pneg %p14174_p2 }
   0x9   : > { %p14183_p5 = pnand %p16735_p3, %p12913_p4 }
   0xb   : > { %p14065_p7 = pneg %p14183_p5 }
   0xd   : > { %p14066_p8 = pnand %p14065_p7, %p14064_p6 }
   0xf   : > { %p14067_p9 = pneg %p14066_p8 }
  0x11   : > { %p14072_p11 = pnand %p14070_p10, %p14067_p9 }
  0x13   : > { %14075 = shalt.err (!%p14072_p11)
}
  0x14   : > { %s14076_s26 = scalar_lea.vmem %s289_s16, 26112  ;;  %p14084_p1 = scmp.lt.s32.totalorder %s289_s16, %s289_s16 }
  0x15   : > { %p14077_p12 = scmp.ne.s32.totalorder %s289_s16, %s14076_s26  ;;  %p14085_p4 = scmp.lt.s32.totalorder %s14076_s26, %s14076_s26 }
  0x17   : > { %p14079_p13 = pnand %p14077_p12, %p14065_p7  ;;  %p14086_p3 = por %p14085_p4, %p14084_p1 }
  0x19   : > { %p14080_p0 = pneg %p14079_p13 }
  0x1b   : > { %p14087_p2 = pnand %p14086_p3, %p14080_p0 }
  0x1d   : > { %14090 = shalt.err (!%p14087_p2)
}
  0x1e   : > { %s14104_s27 = smov 192   ;;  %s14105_s28 = smov 12  }
  0x1f   : > { %12916 = dma.hbm_to_vmem [thread:$0]  (!%p14183_p5), %s16728_s4, 26112, %s289_s16, [#allocation3], %s14104_s27, %s14104_s27, %s14105_s28  }
  0x20   : > { %p16739_p6 = scmp.ne.s32.totalorder %s16737_s17, 0 }
  0x21   : > { %p16740_p8 = scmp.eq.s32.totalorder (!%p16739_p6), %s14170_s14, 0 }
  0x22   : > { %327 = sbr.rel (%p16739_p6) target bundleno = 4186 (0x105a), region = 60 }
  0x29   : > { %14096 = dma.done.wait (%p16740_p8), [#allocation3], 26112   ;;  %p16741_p7 = pmov %p16740_p8 }
  0x2a   : > { %p363_p2 = scmp.lt.s32.totalorder %s14170_s14, 1  ;;  %v14106_v0 = vmov 0   ;;  %vm454_vm0 = vcmask 1040384   ;;  %v12955_v13 = vld [vmem:[%s16726_s2 + $0x130] ss:$12 sps:$4 sm:$0xff]   ;;  %v12947_v14 = vld [vmem:[%s16725_s1 + $0x14] sm:$0xff]  }
  0x2b   : > { %14098 = vsyncadd (%p16741_p7), [#allocation3], 4294941184  ;;  %638 = vmatprep.mubr.bf16.mxu1 %v14106_v0  ;;  %493 = vmatprep.mubr.bf16.mxu0 %v14106_v0  ;;  %v12950_v15 = vld [vmem:[%s16725_s1] sm:$0xff]   ;;  %vm444_vm1 = vcmask 539648   ;;  %v12953_v16 = vld [vmem:[%s16726_s2 + $0x12c] ss:$12 sps:$4 sm:$0xff]  }
  0x2c   : > { %s16743_s14 = smov (!%p363_p2, %s14170_s14), 1  ;;  %v12956_v17 = vld [vmem:[%s16726_s2 + $0x134] ss:$12 sps:$4 sm:$0xff]   ;;  %v12957_v19 = vld [vmem:[%s16726_s2 + $0x144] ss:$12 sps:$4 sm:$0xff]   ;;  %v12951_v23 = vld [vmem:[%s16725_s1 + $0x8] sm:$0xff]  }
  0x2d   : > { %s12908_s11 = smul.u32 72, %s16743_s14  ;;  %v12959_v18 = vld [vmem:[%s16726_s2 + $0x148] ss:$12 sps:$4 sm:$0xff]   ;;  %v12960_v20 = vld [vmem:[%s16726_s2 + $0x14c] ss:$12 sps:$4 sm:$0xff]   ;;  %v12948_v22 = vld [vmem:[%s16725_s1 + $0x1c] sm:$0xff]   ;;  %s370_s28 = scalar_lea.vmem %s16734_s10, %s16743_s14 }
  0x2e   : > { %v12963_v21 = vld [vmem:[%s16726_s2 + $0x160] ss:$12 sps:$4 sm:$0xff]   ;;  %v12961_v24 = vld [vmem:[%s16726_s2 + $0x15c] ss:$12 sps:$4 sm:$0xff]   ;;  %v12964_v25 = vld [vmem:[%s16726_s2 + $0x164] ss:$12 sps:$4 sm:$0xff]  }
  0x2f   : > { %s14219_s16 = scalar_lea.vmem %s16724_s0, %s12908_s11  ;;  %v12967_v26 = vld [vmem:[%s16726_s2 + $0x178] ss:$12 sps:$4 sm:$0xff]   ;;  %v12965_v27 = vld [vmem:[%s16726_s2 + $0x174] ss:$12 sps:$4 sm:$0xff]   ;;  %v12968_v29 = vld [vmem:[%s16726_s2 + $0x17c] ss:$12 sps:$4 sm:$0xff]  }
  0x30   : > { %v12933_v1 = vld [vmem:[%s14219_s16 + $0x4] ss:$8 sps:$4 sm:$0xff]   ;;  %v12935_v2 = vld [vmem:[%s14219_s16] ss:$8 sps:$4 sm:$0xff]   ;;  %v12936_v3 = vld [vmem:[%s14219_s16 + $0x14] ss:$8 sps:$4 sm:$0xff]  }
  0x31   : > { %606 = vmatprep.subr.bf16.mxu1 %v12933_v1  ;;  %461 = vmatprep.subr.bf16.mxu0 %v12933_v1  ;;  %v12938_v4 = vld [vmem:[%s14219_s16 + $0x10] ss:$8 sps:$4 sm:$0xff]   ;;  %v12939_v5 = vld [vmem:[%s14219_s16 + $0x24] ss:$8 sps:$4 sm:$0xff]   ;;  %v12941_v6 = vld [vmem:[%s14219_s16 + $0x20] ss:$8 sps:$4 sm:$0xff]  }
  0x32   : > { %607 = vmatpush1.bf16.msra.mxu1 %v12935_v2  ;;  %462 = vmatpush1.bf16.msra.mxu0 %v12935_v2  ;;  %v12942_v7 = vld [vmem:[%s14219_s16 + $0x34] ss:$8 sps:$4 sm:$0xff]   ;;  %v380_v8 = vld [vmem:[%s14219_s16 + $0x40] sm:$0x11]  ;;  %v12944_v9 = vld [vmem:[%s14219_s16 + $0x30] ss:$8 sps:$4 sm:$0xff]  }
  0x33   : > { %608 = vmatprep.subr.bf16.mxu1 %v12936_v3  ;;  %463 = vmatprep.subr.bf16.mxu0 %v12936_v3  ;;  %v14230_v10 = vcombine.high %v380_v8, %v380_v8  ;;  %v10488_v11 = vcombine.low %v380_v8, %v380_v8  ;;  %v12949_v28 = vld [vmem:[%s16725_s1 + $0x24] ss:$0 sps:$4 sm:$0x11]   ;;  %v12971_v30 = vld [vmem:[%s16726_s2 + $0x190] ss:$12 sps:$4 sm:$0xff]   ;;  %vm934_vm2 = vcmask 1042432  }
  0x34   : > { %v12952_v31 = vld [vmem:[%s16725_s1 + $0x10] ss:$0 sps:$4 sm:$0x11]   ;;  %v12969_v32 = vld [vmem:[%s16726_s2 + $0x18c] ss:$12 sps:$4 sm:$0xff]   ;;  %vm924_vm3 = vcmask 572416  }
  0x35   : > { %v14235_v12 = vsel %vm454_vm0, %v10488_v11, 0  ;;  %v12972_v33 = vld [vmem:[%s16726_s2 + $0x194] ss:$12 sps:$4 sm:$0xff]   ;;  %v12973_v35 = vld [vmem:[%s16726_s2 + $0x1a4] ss:$12 sps:$4 sm:$0xff]   ;;  %vm2453_vm4 = vcmask 277504  }
  0x36   : > { %609 = vmatpush1.bf16.msra.mxu1 %v12938_v4  ;;  %464 = vmatpush1.bf16.msra.mxu0 %v12938_v4  ;;  %v12975_v34 = vld [vmem:[%s16726_s2 + $0x1a8] ss:$12 sps:$4 sm:$0xff]   ;;  %v12976_v36 = vld [vmem:[%s16726_s2 + $0x1ac] ss:$12 sps:$4 sm:$0xff]   ;;  %v12980_v39 = vld [vmem:[%s16726_s2 + $0x1c4] ss:$12 sps:$4 sm:$0xff]  }
  0x37   : > { %610 = vmatprep.subr.bf16.mxu1 %v12939_v5  ;;  %465 = vmatprep.subr.bf16.mxu0 %v12939_v5  ;;  %v12979_v37 = vld [vmem:[%s16726_s2 + $0x1c0] ss:$12 sps:$4 sm:$0xff]   ;;  %v12977_v38 = vld [vmem:[%s16726_s2 + $0x1bc] ss:$12 sps:$4 sm:$0xff]   ;;  %v12983_v40 = vld [vmem:[%s16726_s2 + $0x1d8] ss:$12 sps:$4 sm:$0xff]  }
  0x38   : > { %v12981_v41 = vld [vmem:[%s16726_s2 + $0x1d4] ss:$12 sps:$4 sm:$0xff]   ;;  %v12984_v42 = vld [vmem:[%s16726_s2 + $0x1dc] ss:$12 sps:$4 sm:$0xff]   ;;  %v12985_v44 = vld [vmem:[%s16726_s2 + $0x1ec] ss:$12 sps:$4 sm:$0xff]  }
  0x39   : > { %v12987_v43 = vld [vmem:[%s16726_s2 + $0x1f0] ss:$12 sps:$4 sm:$0xff]   ;;  %v12988_v45 = vld [vmem:[%s16726_s2 + $0x1f4] ss:$12 sps:$4 sm:$0xff]   ;;  %v12992_v48 = vld [vmem:[%s16726_s2 + $0x20c] ss:$12 sps:$4 sm:$0xff]  }
  0x3a   : > { %611 = vmatpush1.bf16.msra.mxu1 %v12941_v6  ;;  %466 = vmatpush1.bf16.msra.mxu0 %v12941_v6  ;;  %v12991_v46 = vld [vmem:[%s16726_s2 + $0x208] ss:$12 sps:$4 sm:$0xff]   ;;  %v12989_v47 = vld [vmem:[%s16726_s2 + $0x204] ss:$12 sps:$4 sm:$0xff]   ;;  %v12995_v49 = vld [vmem:[%s16726_s2 + $0x220] ss:$12 sps:$4 sm:$0xff]  }
  0x3b   : > { %612 = vmatprep.subr.bf16.mxu1 %v12942_v7  ;;  %467 = vmatprep.subr.bf16.mxu0 %v12942_v7  ;;  %v12993_v50 = vld [vmem:[%s16726_s2 + $0x21c] ss:$12 sps:$4 sm:$0xff]   ;;  %v12996_v51 = vld [vmem:[%s16726_s2 + $0x224] ss:$12 sps:$4 sm:$0xff]   ;;  %v12997_v53 = vld [vmem:[%s16726_s2 + $0x234] ss:$12 sps:$4 sm:$0xff]  }
  0x3c   : > { %v12999_v52 = vld [vmem:[%s16726_s2 + $0x238] ss:$12 sps:$4 sm:$0xff]   ;;  %v13000_v54 = vld [vmem:[%s16726_s2 + $0x23c] ss:$12 sps:$4 sm:$0xff]   ;;  %v10554_v55 = vld [vmem:[%s16726_s2 + $0x24c] sm:$0x77] }
  0x3d   : > { %v10593_v56 = vcombine.high %v10554_v55, %v10554_v55  ;;  %v10592_v57 = vcombine.low %v10554_v55, %v10554_v55  ;;  %v13003_v58 = vld [vmem:[%s16726_s2 + $0x254] ss:$0 sps:$4 sm:$0x77]   ;;  %v13006_v61 = vld [vmem:[%s16726_s2 + $0x4] ss:$12 sps:$4 sm:$0xff]  }
  0x3e   : > { %613 = vmatpush1.bf16.msra.mxu1 %v12944_v9  ;;  %468 = vmatpush1.bf16.msra.mxu0 %v12944_v9  ;;  %v942_v60 = vsel %vm934_vm2, %v13003_v58, 0  ;;  %v13004_v4 = vld [vmem:[%s16726_s2] ss:$12 sps:$4 sm:$0xff]   ;;  %v13007_v5 = vld [vmem:[%s16726_s2 + $0x8] ss:$12 sps:$4 sm:$0xff]  }
  0x3f   : > { %10502 = vmatprep.subr.msk.bf16.mxu1 %vm454_vm0, %v14230_v10  ;;  %10490 = vmatprep.subr.msk.bf16.mxu0 %vm454_vm0, %v14230_v10  ;;  %v936_v59 = vsel %vm934_vm2, %v10592_v57, 0  ;;  %v13010_v9 = vld [vmem:[%s16726_s2 + $0x1c] ss:$12 sps:$4 sm:$0xff]   ;;  %v13034_v55 = vld [vmem:[%s16726_s2 + $0xac] ss:$12 sps:$4 sm:$0xff]  }
  0x40   : > { %v13035_v57 = vld [vmem:[%s16726_s2 + $0xb0] ss:$12 sps:$4 sm:$0xff]  }
  0x41   : > { %v13038_v58 = vld [vmem:[%s16726_s2 + $0xc4] ss:$12 sps:$4 sm:$0xff]  }
  0x42   : > { %615 = vmatpush1.bf16.msra.mxu1 %v14235_v12  ;;  %470 = vmatpush1.bf16.msra.mxu0 %v14235_v12 }
  0x43   : > { %944 = vmatprep.subr.bf16.mxu0 %v12955_v13  ;;  %1005 = vmatprep.subr.bf16.mxu1 %v14106_v0 }
  0x45   : > { %10503 = vmatmul.mubr.msk.bf16.vlgmr.msra.gmra.mrb[0].mxu1 %vm444_vm1, %v12947_v14  ;;  %10491 = vmatmul.mubr.msk.bf16.vlgmr.msra.gmra.mrb[0].mxu0 %vm444_vm1, %v12950_v15 }
  0x46   : > { %648 = vmatprep.mubr.bf16.mxu1 %v14106_v0  ;;  %503 = vmatprep.mubr.bf16.mxu0 %v14106_v0 }
  0x47   : > { %945 = vmatpush1.bf16.msra.mxu0 %v12953_v16  ;;  %1006 = vmatpush1.bf16.msra.mxu1 %v12956_v17  ;;  %v13008_v16 = vld [vmem:[%s16726_s2 + $0x18] ss:$12 sps:$4 sm:$0xff]   ;;  %v13011_v17 = vld [vmem:[%s16726_s2 + $0x20] ss:$12 sps:$4 sm:$0xff]  }
  0x48   : > { %946 = vmatprep.subr.bf16.mxu0 %v12959_v18  ;;  %1007 = vmatprep.subr.bf16.mxu1 %v14106_v0  ;;  %v13014_v18 = vld [vmem:[%s16726_s2 + $0x34] ss:$12 sps:$4 sm:$0xff]  }
  0x4b   : > { %947 = vmatpush1.bf16.msra.mxu0 %v12957_v19  ;;  %1008 = vmatpush1.bf16.msra.mxu1 %v12960_v20 }
  0x4c   : > { %948 = vmatprep.subr.bf16.mxu0 %v12963_v21  ;;  %1009 = vmatprep.subr.bf16.mxu1 %v14106_v0 }
  0x4d   : > { %10504 = vmatmul.mubr.msk.bf16.gmra.mrb[4].mxu1 %vm444_vm1, %v12948_v22  ;;  %10492 = vmatmul.mubr.msk.bf16.gmra.mrb[4].mxu0 %vm444_vm1, %v12951_v23  ;;  %v13012_v23 = vld [vmem:[%s16726_s2 + $0x30] ss:$12 sps:$4 sm:$0xff]  }
  0x4e   : > { %658 = vmatprep.mubr.bf16.mxu1 %v14106_v0  ;;  %513 = vmatprep.mubr.bf16.mxu0 %v14106_v0 }
  0x4f   : > { %949 = vmatpush1.bf16.msra.mxu0 %v12961_v24  ;;  %1010 = vmatpush1.bf16.msra.mxu1 %v12964_v25  ;;  %v13015_v24 = vld [vmem:[%s16726_s2 + $0x38] ss:$12 sps:$4 sm:$0xff]  }
  0x50   : > { %950 = vmatprep.subr.bf16.mxu0 %v12967_v26  ;;  %1011 = vmatprep.subr.bf16.mxu1 %v14106_v0 }
  0x53   : > { %951 = vmatpush1.bf16.msra.mxu0 %v12965_v27  ;;  %1012 = vmatpush1.bf16.msra.mxu1 %v12968_v29  ;;  %v13018_v27 = vld [vmem:[%s16726_s2 + $0x4c] ss:$12 sps:$4 sm:$0xff]  }
  0x54   : > { %952 = vmatprep.subr.bf16.mxu0 %v12971_v30  ;;  %1013 = vmatprep.subr.bf16.mxu1 %v14106_v0 }
  0x55   : > { %10505 = vmatmul.mubr.msk.bf16.gmra.mrb[8].mxu1 %vm444_vm1, %v12949_v28  ;;  %10493 = vmatmul.mubr.msk.bf16.gmra.mrb[8].mxu0 %vm444_vm1, %v12952_v31 }
  0x57   : > { %953 = vmatpush1.bf16.msra.mxu0 %v12969_v32  ;;  %1014 = vmatpush1.bf16.msra.mxu1 %v12972_v33 }
  0x58   : > { %954 = vmatprep.subr.bf16.mxu0 %v12975_v34  ;;  %1015 = vmatprep.subr.bf16.mxu1 %v14106_v0  ;;  %v13016_v34 = vld [vmem:[%s16726_s2 + $0x48] ss:$12 sps:$4 sm:$0xff]  }
  0x5b   : > { %955 = vmatpush1.bf16.msra.mxu0 %v12973_v35  ;;  %1016 = vmatpush1.bf16.msra.mxu1 %v12976_v36  ;;  %v13019_v35 = vld [vmem:[%s16726_s2 + $0x50] ss:$12 sps:$4 sm:$0xff]  }
  0x5c   : > { %956 = vmatprep.subr.bf16.mxu0 %v12979_v37  ;;  %1017 = vmatprep.subr.bf16.mxu1 %v14106_v0  ;;  %v13022_v36 = vld [vmem:[%s16726_s2 + $0x64] ss:$12 sps:$4 sm:$0xff]  }
  0x5f   : > { %957 = vmatpush1.bf16.msra.mxu0 %v12977_v38  ;;  %1018 = vmatpush1.bf16.msra.mxu1 %v12980_v39 }
  0x60   : > { %958 = vmatprep.subr.bf16.mxu0 %v12983_v40  ;;  %1019 = vmatprep.subr.bf16.mxu1 %v14106_v0 }
  0x63   : > { %959 = vmatpush1.bf16.msra.mxu0 %v12981_v41  ;;  %1020 = vmatpush1.bf16.msra.mxu1 %v12984_v42  ;;  %v13020_v41 = vld [vmem:[%s16726_s2 + $0x60] ss:$12 sps:$4 sm:$0xff]   ;;  %v13023_v42 = vld [vmem:[%s16726_s2 + $0x68] ss:$12 sps:$4 sm:$0xff]  }
  0x64   : > { %960 = vmatprep.subr.bf16.mxu0 %v12987_v43  ;;  %1021 = vmatprep.subr.bf16.mxu1 %v14106_v0 }
  0x67   : > { %961 = vmatpush1.bf16.msra.mxu0 %v12985_v44  ;;  %1022 = vmatpush1.bf16.msra.mxu1 %v12988_v45 }
  0x68   : > { %962 = vmatprep.subr.bf16.mxu0 %v12991_v46  ;;  %1023 = vmatprep.subr.bf16.mxu1 %v14106_v0  ;;  %v13026_v46 = vld [vmem:[%s16726_s2 + $0x7c] ss:$12 sps:$4 sm:$0xff]  }
  0x6b   : > { %963 = vmatpush1.bf16.msra.mxu0 %v12989_v47  ;;  %1024 = vmatpush1.bf16.msra.mxu1 %v12992_v48 }
  0x6c   : > { %964 = vmatprep.subr.bf16.mxu0 %v12995_v49  ;;  %1025 = vmatprep.subr.bf16.mxu1 %v14106_v0 }
  0x6f   : > { %965 = vmatpush1.bf16.msra.mxu0 %v12993_v50  ;;  %1026 = vmatpush1.bf16.msra.mxu1 %v12996_v51  ;;  %v13024_v50 = vld [vmem:[%s16726_s2 + $0x78] ss:$12 sps:$4 sm:$0xff]   ;;  %v13027_v51 = vld [vmem:[%s16726_s2 + $0x80] ss:$12 sps:$4 sm:$0xff]  }
  0x70   : > { %966 = vmatprep.subr.bf16.mxu0 %v12999_v52  ;;  %1027 = vmatprep.subr.bf16.mxu1 %v14106_v0  ;;  %v13030_v52 = vld [vmem:[%s16726_s2 + $0x94] ss:$12 sps:$4 sm:$0xff]  }
  0x73   : > { %967 = vmatpush1.bf16.msra.mxu0 %v12997_v53  ;;  %1028 = vmatpush1.bf16.msra.mxu1 %v13000_v54  ;;  %v13028_v53 = vld [vmem:[%s16726_s2 + $0x90] ss:$12 sps:$4 sm:$0xff]   ;;  %v13031_v54 = vld [vmem:[%s16726_s2 + $0x98] ss:$12 sps:$4 sm:$0xff]  }
  0x74   : > { %1029 = vmatprep.subr.bf16.mxu1 %v14106_v0  ;;  %10595 = vmatprep.subr.msk.bf16.mxu0 %vm934_vm2, %v10593_v56  ;;  %v13032_v56 = vld [vmem:[%s16726_s2 + $0xa8] ss:$12 sps:$4 sm:$0xff]  }
  0x77   : > { %969 = vmatpush1.bf16.msra.mxu0 %v936_v59  ;;  %1030 = vmatpush1.bf16.msra.mxu1 %v942_v60  ;;  %v13036_v59 = vld [vmem:[%s16726_s2 + $0xc0] ss:$12 sps:$4 sm:$0xff]   ;;  %v13039_v60 = vld [vmem:[%s16726_s2 + $0xc8] ss:$12 sps:$4 sm:$0xff]  }
  0x78   : > { %1340 = vmatprep.subr.bf16.mxu1 %v14106_v0  ;;  %1279 = vmatprep.subr.bf16.mxu0 %v13006_v61  ;;  %v13042_v61 = vld [vmem:[%s16726_s2 + $0xdc] ss:$12 sps:$4 sm:$0xff]  }
 0x118   : > { %v640_v62 = vpop.f32.mrb[0].mxu1  ;;  %v495_v63 = vpop.f32.mrb[0].mxu0 }
 0x119   : > { %v642_v1 = vpop.f32.mrb[1].mxu1  ;;  %v497_v2 = vpop.f32.mrb[1].mxu0 }
 0x11a   : > { %v644_v3 = vpop.f32.mrb[2].mxu1  ;;  %v499_v6 = vpop.f32.mrb[2].mxu0 }
 0x11b   : > { %v667_v7 = vpack.c.bf16 %v644_v3, %v640_v62  ;;  %v646_v8 = vpop.f32.mrb[3].mxu1  ;;  %v14412_v11 = vpack.c.bf16 %v499_v6, %v495_v63  ;;  %v501_v13 = vpop.f32.mrb[3].mxu0  ;;  %v13040_v62 = vld [vmem:[%s16726_s2 + $0xd8] ss:$12 sps:$4 sm:$0xff]   ;;  %v13043_v63 = vld [vmem:[%s16726_s2 + $0xe0] ss:$12 sps:$4 sm:$0xff]  }
 0x11c   : > { %v668_v14 = vpack.c.bf16 %v646_v8, %v642_v1  ;;  %v14414_v15 = vpack.c.bf16 %v501_v13, %v497_v2  ;;  %v13046_v1 = vld [vmem:[%s16726_s2 + $0xf4] ss:$12 sps:$4 sm:$0xff]   ;;  %v13044_v2 = vld [vmem:[%s16726_s2 + $0xf0] ss:$12 sps:$4 sm:$0xff]   ;;  %v13047_v3 = vld [vmem:[%s16726_s2 + $0xf8] ss:$12 sps:$4 sm:$0xff]  }
 0x11d   : > { %v13048_v6 = vld [vmem:[%s16726_s2 + $0x108] ss:$12 sps:$4 sm:$0xff]  }
 0x11e   : > { %10596 = vmatprep.mubr.msk.bf16.mxu0 %vm924_vm3, %v668_v14  ;;  %10599 = vmatprep.mubr.msk.bf16.mxu1 %vm924_vm3, %v668_v14  ;;  %v13054_v8 = vld [vmem:[%s16726_s2 + $0x128] ss:$0 sps:$4 sm:$0x77]  }
 0x11f   : > { %977 = vmatmul.mubr.bf16.vlgmr.msra.gmra.mrb[12].mxu0 %v667_v7  ;;  %1038 = vmatmul.mubr.bf16.vlgmr.msra.gmra.mrb[12].mxu1 %v667_v7  ;;  %v13051_v7 = vld [vmem:[%s16726_s2 + $0x110] ss:$12 sps:$4 sm:$0xff]  }
 0x120   : > { %1280 = vmatpush1.bf16.msra.mxu0 %v13004_v4  ;;  %1341 = vmatpush1.bf16.msra.mxu1 %v13007_v5  ;;  %v650_v19 = vpop.f32.mrb[4].mxu1  ;;  %v505_v20 = vpop.f32.mrb[4].mxu0  ;;  %v13050_v4 = vld [vmem:[%s16726_s2 + $0x10c] ss:$12 sps:$4 sm:$0xff]   ;;  %v576_v5 = vld [vmem:[%s16726_s2 + $0x120] sm:$0x77] }
 0x121   : > { %1281 = vmatprep.subr.bf16.mxu0 %v13010_v9  ;;  %1342 = vmatprep.subr.bf16.mxu1 %v14106_v0  ;;  %v652_v21 = vpop.f32.mrb[5].mxu1  ;;  %v507_v22 = vpop.f32.mrb[5].mxu0  ;;  %v10639_v9 = vcombine.high %v576_v5, %v576_v5  ;;  %v10638_v13 = vcombine.low %v576_v5, %v576_v5 }
 0x122   : > { %v654_v25 = vpop.f32.mrb[6].mxu1  ;;  %v509_v26 = vpop.f32.mrb[6].mxu0 }
 0x123   : > { %v669_v28 = vpack.c.bf16 %v654_v25, %v650_v19  ;;  %v656_v29 = vpop.f32.mrb[7].mxu1  ;;  %v14437_v30 = vpack.c.bf16 %v509_v26, %v505_v20  ;;  %v511_v31 = vpop.f32.mrb[7].mxu0  ;;  %v1271_v14 = vsel %vm934_vm2, %v10638_v13, 0  ;;  %v14569_v19 = vld [vmem:[%s14219_s16] ss:$8 sps:$4 sm:$0xff]  }
 0x124   : > { %1282 = vmatpush1.bf16.msra.mxu0 %v13008_v16  ;;  %1343 = vmatpush1.bf16.msra.mxu1 %v13011_v17  ;;  %v670_v32 = vpack.c.bf16 %v656_v29, %v652_v21  ;;  %v14439_v33 = vpack.c.bf16 %v511_v31, %v507_v22  ;;  %v13061_v16 = vld [vmem:[%s16726_s2 + $0x260] ss:$12 sps:$4 sm:$0xff]   ;;  %v14573_v20 = vld [vmem:[%s14219_s16 + $0x14] ss:$8 sps:$4 sm:$0xff]   ;;  %v14583_v22 = vld [vmem:[%s14219_s16 + $0x10] ss:$8 sps:$4 sm:$0xff]  }
 0x125   : > { %1283 = vmatprep.subr.bf16.mxu0 %v13014_v18  ;;  %1344 = vmatprep.subr.bf16.mxu1 %v14106_v0  ;;  %v14555_v17 = vld [vmem:[%s14219_s16 + $0x4] ss:$8 sps:$4 sm:$0xff]   ;;  %v14599_v25 = vld [vmem:[%s14219_s16 + $0x20] ss:$8 sps:$4 sm:$0xff]   ;;  %v14603_v26 = vld [vmem:[%s14219_s16 + $0x34] ss:$8 sps:$4 sm:$0xff]  }
 0x126   : > { %10597 = vmatprep.mubr.msk.bf16.mxu0 %vm924_vm3, %v670_v32  ;;  %10600 = vmatprep.mubr.msk.bf16.mxu1 %vm924_vm3, %v670_v32  ;;  %v13065_v18 = vld [vmem:[%s16726_s2 + $0x278] ss:$12 sps:$4 sm:$0xff]   ;;  %v13055_v32 = vld [vmem:[%s16725_s1 + $0x28] sm:$0xff]  }
 0x127   : > { %987 = vmatmul.mubr.bf16.gmra.mrb[16].mxu0 %v669_v28  ;;  %1046 = vmatmul.mubr.bf16.gmra.mrb[16].mxu1 %v669_v28  ;;  %v13060_v28 = vld [vmem:[%s16726_s2 + $0x25c] ss:$12 sps:$4 sm:$0xff]   ;;  %v13081_v31 = vld [vmem:[%s16726_s2 + $0x2d8] ss:$12 sps:$4 sm:$0xff]  }
 0x128   : > { %1284 = vmatpush1.bf16.msra.mxu0 %v13012_v23  ;;  %1345 = vmatpush1.bf16.msra.mxu1 %v13015_v24  ;;  %v660_v37 = vpop.f32.mrb[8].mxu1  ;;  %v14453_v38 = vpop.f32.mrb[8].mxu0  ;;  %v14587_v23 = vld [vmem:[%s14219_s16 + $0x24] ss:$8 sps:$4 sm:$0xff]   ;;  %v13073_v24 = vld [vmem:[%s16726_s2 + $0x2a8] ss:$12 sps:$4 sm:$0xff]  }
 0x129   : > { %1285 = vmatprep.subr.bf16.mxu0 %v13018_v27  ;;  %1346 = vmatprep.subr.bf16.mxu1 %v14106_v0  ;;  %v662_v39 = vpop.f32.mrb[9].mxu1  ;;  %v14456_v40 = vpop.f32.mrb[9].mxu0  ;;  %v671_v47 = vpack.c.bf16 %v660_v37, %v660_v37  ;;  %v13077_v27 = vld [vmem:[%s16726_s2 + $0x2c0] ss:$12 sps:$4 sm:$0xff]   ;;  %v526_v29 = vpack.c.bf16 %v14453_v38, %v14453_v38  ;;  %v13089_v38 = vld [vmem:[%s16726_s2 + $0x308] ss:$12 sps:$4 sm:$0xff]  }
 0x12a   : > { %v672_v43 = vpack.c.bf16 %v662_v39, %v662_v39  ;;  %v664_v44 = vpop.f32.mrb[10].mxu1  ;;  %v519_v45 = vpop.f32.mrb[10].mxu0  ;;  %v527_v21 = vpack.c.bf16 %v14456_v40, %v14456_v40  ;;  %v13068_v37 = vld [vmem:[%s16726_s2 + $0x28c] ss:$12 sps:$4 sm:$0xff]   ;;  %v13056_v39 = vld [vmem:[%s16725_s1 + $0x30] sm:$0xff]  }
 0x12b   : > { %v665_v48 = vpop.f32.mrb[11].mxu1  ;;  %v520_v49 = vpop.f32.mrb[11].mxu0  ;;  %v13066_v40 = vld [vmem:[%s16726_s2 + $0x288] ss:$12 sps:$4 sm:$0xff]   ;;  %v13097_v45 = vld [vmem:[%s16726_s2 + $0x338] ss:$12 sps:$4 sm:$0xff]  }
 0x12c   : > { %1286 = vmatpush1.bf16.msra.mxu0 %v13016_v34  ;;  %1347 = vmatpush1.bf16.msra.mxu1 %v13019_v35  ;;  %v13064_v34 = vld [vmem:[%s16726_s2 + $0x274] ss:$12 sps:$4 sm:$0xff]   ;;  %v13085_v35 = vld [vmem:[%s16726_s2 + $0x2f0] ss:$12 sps:$4 sm:$0xff]  }
 0x12d   : > { %1287 = vmatprep.subr.bf16.mxu0 %v13022_v36  ;;  %1348 = vmatprep.subr.bf16.mxu1 %v14106_v0  ;;  %v13062_v36 = vld [vmem:[%s16726_s2 + $0x270] ss:$12 sps:$4 sm:$0xff]   ;;  %v13080_v48 = vld [vmem:[%s16726_s2 + $0x2d4] ss:$12 sps:$4 sm:$0xff]  }
 0x12e   : > { %10598 = vmatprep.mubr.msk.bf16.mxu0 %vm924_vm3, %v672_v43  ;;  %10601 = vmatprep.mubr.msk.bf16.mxu1 %vm924_vm3, %v672_v43  ;;  %v13070_v43 = vld [vmem:[%s16726_s2 + $0x2a0] ss:$12 sps:$4 sm:$0xff]   ;;  %v13076_v44 = vld [vmem:[%s16726_s2 + $0x2bc] ss:$12 sps:$4 sm:$0xff]  }
 0x12f   : > { %997 = vmatmul.mubr.bf16.gmra.mrb[20].mxu0 %v671_v47  ;;  %1054 = vmatmul.mubr.bf16.gmra.mrb[20].mxu1 %v671_v47  ;;  %v13074_v47 = vld [vmem:[%s16726_s2 + $0x2b8] ss:$12 sps:$4 sm:$0xff]   ;;  %v13101_v49 = vld [vmem:[%s16726_s2 + $0x350] ss:$12 sps:$4 sm:$0xff]  }
 0x130   : > { %1288 = vmatpush1.bf16.msra.mxu0 %v13020_v41  ;;  %1349 = vmatpush1.bf16.msra.mxu1 %v13023_v42  ;;  %v13072_v41 = vld [vmem:[%s16726_s2 + $0x2a4] ss:$12 sps:$4 sm:$0xff]   ;;  %v13093_v42 = vld [vmem:[%s16726_s2 + $0x320] ss:$12 sps:$4 sm:$0xff]  }
 0x131   : > { %1289 = vmatprep.subr.bf16.mxu0 %v13026_v46  ;;  %1350 = vmatprep.subr.bf16.mxu1 %v14106_v0  ;;  %v13057_v46 = vld [vmem:[%s16725_s1 + $0x38] ss:$0 sps:$4 sm:$0x11]  }
 0x132   : > { %10642 = vmatprep.mubr.msk.bf16.mxu0 %vm924_vm3, %v14414_v15  ;;  %10645 = vmatprep.mubr.msk.bf16.mxu1 %vm924_vm3, %v14414_v15  ;;  %v1277_v15 = vsel %vm934_vm2, %v13054_v8, 0 }
 0x134   : > { %1290 = vmatpush1.bf16.msra.mxu0 %v13024_v50  ;;  %1351 = vmatpush1.bf16.msra.mxu1 %v13027_v51  ;;  %v13078_v50 = vld [vmem:[%s16726_s2 + $0x2d0] ss:$12 sps:$4 sm:$0xff]   ;;  %v13084_v51 = vld [vmem:[%s16726_s2 + $0x2ec] ss:$12 sps:$4 sm:$0xff]  }
 0x135   : > { %1291 = vmatprep.subr.bf16.mxu0 %v13030_v52  ;;  %1352 = vmatprep.subr.bf16.mxu1 %v14106_v0  ;;  %v13082_v52 = vld [vmem:[%s16726_s2 + $0x2e8] ss:$12 sps:$4 sm:$0xff]  }
 0x138   : > { %1292 = vmatpush1.bf16.msra.mxu0 %v13028_v53  ;;  %1353 = vmatpush1.bf16.msra.mxu1 %v13031_v54  ;;  %v13088_v53 = vld [vmem:[%s16726_s2 + $0x304] ss:$12 sps:$4 sm:$0xff]   ;;  %v13086_v54 = vld [vmem:[%s16726_s2 + $0x300] ss:$12 sps:$4 sm:$0xff]  }
 0x139   : > { %1293 = vmatprep.subr.bf16.mxu0 %v13034_v55  ;;  %1354 = vmatprep.subr.bf16.mxu1 %v14106_v0  ;;  %v13092_v55 = vld [vmem:[%s16726_s2 + $0x31c] ss:$12 sps:$4 sm:$0xff]  }
 0x13c   : > { %1294 = vmatpush1.bf16.msra.mxu0 %v13032_v56  ;;  %1355 = vmatpush1.bf16.msra.mxu1 %v13035_v57  ;;  %v13090_v56 = vld [vmem:[%s16726_s2 + $0x318] ss:$12 sps:$4 sm:$0xff]   ;;  %v13096_v57 = vld [vmem:[%s16726_s2 + $0x334] ss:$12 sps:$4 sm:$0xff]  }
 0x13d   : > { %1295 = vmatprep.subr.bf16.mxu0 %v13038_v58  ;;  %1356 = vmatprep.subr.bf16.mxu1 %v14106_v0  ;;  %v13094_v58 = vld [vmem:[%s16726_s2 + $0x330] ss:$12 sps:$4 sm:$0xff]  }
 0x140   : > { %1296 = vmatpush1.bf16.msra.mxu0 %v13036_v59  ;;  %1357 = vmatpush1.bf16.msra.mxu1 %v13039_v60  ;;  %v13100_v59 = vld [vmem:[%s16726_s2 + $0x34c] ss:$12 sps:$4 sm:$0xff]   ;;  %v13098_v60 = vld [vmem:[%s16726_s2 + $0x348] ss:$12 sps:$4 sm:$0xff]  }
 0x141   : > { %1297 = vmatprep.subr.bf16.mxu0 %v13042_v61  ;;  %1358 = vmatprep.subr.bf16.mxu1 %v14106_v0  ;;  %v13104_v61 = vld [vmem:[%s16726_s2 + $0x364] ss:$12 sps:$4 sm:$0xff]  }
 0x144   : > { %1298 = vmatpush1.bf16.msra.mxu0 %v13040_v62  ;;  %1359 = vmatpush1.bf16.msra.mxu1 %v13043_v63  ;;  %v13102_v62 = vld [vmem:[%s16726_s2 + $0x360] ss:$12 sps:$4 sm:$0xff]   ;;  %v13105_v63 = vld [vmem:[%s16726_s2 + $0x368] ss:$12 sps:$4 sm:$0xff]  }
 0x145   : > { %1299 = vmatprep.subr.bf16.mxu0 %v13046_v1  ;;  %1360 = vmatprep.subr.bf16.mxu1 %v14106_v0  ;;  %v10708_v1 = vld [vmem:[%s16726_s2 + $0x378] sm:$0x77] }
 0x148   : > { %1300 = vmatpush1.bf16.msra.mxu0 %v13044_v2  ;;  %1361 = vmatpush1.bf16.msra.mxu1 %v13047_v3  ;;  %v10747_v2 = vcombine.high %v10708_v1, %v10708_v1  ;;  %v10746_v3 = vcombine.low %v10708_v1, %v10708_v1  ;;  %v10816_v1 = vld [vmem:[%s16726_s2 + $0x4a4] sm:$0x77] }
 0x149   : > { %1301 = vmatprep.subr.bf16.mxu0 %v13050_v4  ;;  %1362 = vmatprep.subr.bf16.mxu1 %v14106_v0  ;;  %v13108_v4 = vld [vmem:[%s16726_s2 + $0x380] ss:$0 sps:$4 sm:$0x77]  }
 0x14a   : > { %v1752_v5 = vsel %vm934_vm2, %v10746_v3, 0  ;;  %v10854_v3 = vcombine.low %v10816_v1, %v10816_v1 }
 0x14c   : > { %1302 = vmatpush1.bf16.msra.mxu0 %v13048_v6  ;;  %1363 = vmatpush1.bf16.msra.mxu1 %v13051_v7  ;;  %v1758_v6 = vsel %vm934_vm2, %v13108_v4, 0  ;;  %v13114_v7 = vld [vmem:[%s16726_s2 + $0x388] ss:$12 sps:$4 sm:$0xff]   ;;  %v13162_v4 = vld [vmem:[%s16726_s2 + $0x4ac] ss:$0 sps:$4 sm:$0x77]  }
 0x14d   : > { %10641 = vmatprep.subr.msk.bf16.mxu0 %vm934_vm2, %v10639_v9  ;;  %1364 = vmatprep.subr.bf16.mxu1 %v14106_v0 }
 0x150   : > { %1304 = vmatpush1.bf16.msra.mxu0 %v1271_v14  ;;  %1365 = vmatpush1.bf16.msra.mxu1 %v1277_v15 }
 0x151   : > { %1424 = vmatprep.subr.bf16.mxu0 %v14555_v17  ;;  %1821 = vmatprep.subr.bf16.mxu1 %v14106_v0 }
 0x153   : > { %1312 = vmatmul.mubr.bf16.vlgmr.msra.gmra.mrb[12].mxu0 %v14412_v11  ;;  %1373 = vmatmul.mubr.bf16.vlgmr.msra.gmra.mrb[12].mxu1 %v14412_v11  ;;  %v13069_v11 = vld [vmem:[%s16726_s2 + $0x290] ss:$12 sps:$4 sm:$0xff]  }
 0x154   : > { %10643 = vmatprep.mubr.msk.bf16.mxu0 %vm924_vm3, %v14439_v33  ;;  %10646 = vmatprep.mubr.msk.bf16.mxu1 %vm924_vm3, %v14439_v33  ;;  %v13058_v33 = vld [vmem:[%s16726_s2 + $0x258] ss:$12 sps:$4 sm:$0xff]  }
 0x155   : > { %1425 = vmatpush1.bf16.msra.mxu0 %v14569_v19  ;;  %1822 = vmatpush1.bf16.msra.mxu1 %v13061_v16 }
 0x156   : > { %1426 = vmatprep.subr.bf16.mxu0 %v14573_v20  ;;  %1823 = vmatprep.subr.bf16.mxu1 %v14106_v0 }
 0x159   : > { %1427 = vmatpush1.bf16.msra.mxu0 %v14583_v22  ;;  %1824 = vmatpush1.bf16.msra.mxu1 %v13065_v18  ;;  %v13112_v18 = vld [vmem:[%s16726_s2 + $0x384] ss:$12 sps:$4 sm:$0xff]  }
 0x15a   : > { %1428 = vmatprep.subr.bf16.mxu0 %v14587_v23  ;;  %1825 = vmatprep.subr.bf16.mxu1 %v14106_v0 }
 0x15b   : > { %1322 = vmatmul.mubr.bf16.gmra.mrb[16].mxu0 %v14437_v30  ;;  %1381 = vmatmul.mubr.bf16.gmra.mrb[16].mxu1 %v14437_v30  ;;  %v14616_v30 = vld [vmem:[%s14219_s16 + $0x30] ss:$8 sps:$4 sm:$0xff]  }
 0x15c   : > { %10644 = vmatprep.mubr.msk.bf16.mxu0 %vm924_vm3, %v527_v21  ;;  %10647 = vmatprep.mubr.msk.bf16.mxu1 %vm924_vm3, %v527_v21  ;;  %v13116_v21 = vld [vmem:[%s16726_s2 + $0x39c] ss:$12 sps:$4 sm:$0xff]  }
 0x15d   : > { %1429 = vmatpush1.bf16.msra.mxu0 %v14599_v25  ;;  %1826 = vmatpush1.bf16.msra.mxu1 %v13069_v11  ;;  %v13118_v11 = vld [vmem:[%s16726_s2 + $0x3a0] ss:$12 sps:$4 sm:$0xff]  }
 0x15e   : > { %1430 = vmatprep.subr.bf16.mxu0 %v14603_v26  ;;  %1827 = vmatprep.subr.bf16.mxu1 %v14106_v0 }
 0x161   : > { %1431 = vmatpush1.bf16.msra.mxu0 %v14616_v30  ;;  %1828 = vmatpush1.bf16.msra.mxu1 %v13073_v24 }
 0x162   : > { %10656 = vmatprep.subr.msk.bf16.mxu0 %vm454_vm0, %v14230_v10  ;;  %1829 = vmatprep.subr.bf16.mxu1 %v14106_v0 }
 0x163   : > { %1332 = vmatmul.mubr.bf16.gmra.mrb[20].mxu0 %v526_v29  ;;  %1389 = vmatmul.mubr.bf16.gmra.mrb[20].mxu1 %v526_v29 }
 0x164   : > { %1456 = vmatprep.mubr.bf16.mxu0 %v14106_v0 }
 0x165   : > { %1433 = vmatpush1.bf16.msra.mxu0 %v14235_v12  ;;  %1830 = vmatpush1.bf16.msra.mxu1 %v13077_v27  ;;  %v13122_v27 = vld [vmem:[%s16726_s2 + $0x3b8] ss:$12 sps:$4 sm:$0xff]  }
 0x166   : > { %1760 = vmatprep.subr.bf16.mxu0 %v13060_v28  ;;  %1831 = vmatprep.subr.bf16.mxu1 %v14106_v0 }
 0x169   : > { %1832 = vmatpush1.bf16.msra.mxu1 %v13081_v31 }
 0x16a   : > { %1833 = vmatprep.subr.bf16.mxu1 %v14106_v0 }
 0x16b   : > { %10657 = vmatmul.mubr.msk.bf16.vlgmr.msra.gmra.mrb[24].mxu0 %vm444_vm1, %v13055_v32 }
 0x16c   : > { %1466 = vmatprep.mubr.bf16.mxu0 %v14106_v0  ;;  %1761 = vmatpush1.bf16.msra.mxu0 %v13058_v33 }
 0x16d   : > { %1762 = vmatprep.subr.bf16.mxu0 %v13064_v34  ;;  %1834 = vmatpush1.bf16.msra.mxu1 %v13085_v35 }
 0x16e   : > { %1835 = vmatprep.subr.bf16.mxu1 %v14106_v0 }
 0x170   : > { %1763 = vmatpush1.bf16.msra.mxu0 %v13062_v36  ;;  %v13130_v36 = vld [vmem:[%s16726_s2 + $0x3e8] ss:$12 sps:$4 sm:$0xff]  }
 0x171   : > { %1764 = vmatprep.subr.bf16.mxu0 %v13068_v37  ;;  %1836 = vmatpush1.bf16.msra.mxu1 %v13089_v38  ;;  %v13134_v38 = vld [vmem:[%s16726_s2 + $0x400] ss:$12 sps:$4 sm:$0xff]  }
 0x172   : > { %1837 = vmatprep.subr.bf16.mxu1 %v14106_v0 }
 0x173   : > { %10658 = vmatmul.mubr.msk.bf16.gmra.mrb[28].mxu0 %vm444_vm1, %v13056_v39  ;;  %v13109_v39 = vld [vmem:[%s16725_s1 + $0x3c] sm:$0xff]  }
 0x174   : > { %1476 = vmatprep.mubr.bf16.mxu0 %v14106_v0  ;;  %1765 = vmatpush1.bf16.msra.mxu0 %v13066_v40  ;;  %v13136_v40 = vld [vmem:[%s16726_s2 + $0x414] ss:$12 sps:$4 sm:$0xff]  }
 0x175   : > { %1766 = vmatprep.subr.bf16.mxu0 %v13072_v41  ;;  %1838 = vmatpush1.bf16.msra.mxu1 %v13093_v42  ;;  %v13142_v41 = vld [vmem:[%s16726_s2 + $0x430] ss:$12 sps:$4 sm:$0xff]  }
 0x176   : > { %1839 = vmatprep.subr.bf16.mxu1 %v14106_v0  ;;  %v13119_v42 = vld [vmem:[%s16726_s2 + $0x3a4] ss:$12 sps:$4 sm:$0xff]  }
 0x178   : > { %1767 = vmatpush1.bf16.msra.mxu0 %v13070_v43  ;;  %v13140_v43 = vld [vmem:[%s16726_s2 + $0x42c] ss:$12 sps:$4 sm:$0xff]  }
 0x179   : > { %1768 = vmatprep.subr.bf16.mxu0 %v13076_v44  ;;  %1840 = vmatpush1.bf16.msra.mxu1 %v13097_v45  ;;  %v13146_v44 = vld [vmem:[%s16726_s2 + $0x448] ss:$12 sps:$4 sm:$0xff]  }
 0x17a   : > { %1841 = vmatprep.subr.bf16.mxu1 %v14106_v0  ;;  %v13110_v45 = vld [vmem:[%s16725_s1 + $0x44] sm:$0xff]  }
 0x17b   : > { %10659 = vmatmul.mubr.msk.bf16.gmra.mrb[32].mxu0 %vm444_vm1, %v13057_v46  ;;  %v13123_v46 = vld [vmem:[%s16726_s2 + $0x3bc] ss:$12 sps:$4 sm:$0xff]  }
 0x17c   : > { %1769 = vmatpush1.bf16.msra.mxu0 %v13074_v47  ;;  %v13144_v47 = vld [vmem:[%s16726_s2 + $0x444] ss:$12 sps:$4 sm:$0xff]  }
 0x17d   : > { %1770 = vmatprep.subr.bf16.mxu0 %v13080_v48  ;;  %1842 = vmatpush1.bf16.msra.mxu1 %v13101_v49  ;;  %v13150_v48 = vld [vmem:[%s16726_s2 + $0x460] ss:$12 sps:$4 sm:$0xff]  }
 0x17e   : > { %1843 = vmatprep.subr.bf16.mxu1 %v14106_v0  ;;  %v13127_v49 = vld [vmem:[%s16726_s2 + $0x3d4] ss:$12 sps:$4 sm:$0xff]  }
 0x180   : > { %1771 = vmatpush1.bf16.msra.mxu0 %v13078_v50  ;;  %v13148_v50 = vld [vmem:[%s16726_s2 + $0x45c] ss:$12 sps:$4 sm:$0xff]  }
 0x181   : > { %1772 = vmatprep.subr.bf16.mxu0 %v13084_v51  ;;  %1844 = vmatpush1.bf16.msra.mxu1 %v13105_v63  ;;  %v13154_v51 = vld [vmem:[%s16726_s2 + $0x478] ss:$12 sps:$4 sm:$0xff]   ;;  %v13159_v63 = vld [vmem:[%s16726_s2 + $0x494] ss:$12 sps:$4 sm:$0xff]  }
 0x182   : > { %1845 = vmatprep.subr.bf16.mxu1 %v14106_v0 }
 0x184   : > { %1773 = vmatpush1.bf16.msra.mxu0 %v13082_v52  ;;  %v13111_v52 = vld [vmem:[%s16725_s1 + $0x4c] ss:$0 sps:$4 sm:$0x11]  }
 0x185   : > { %1774 = vmatprep.subr.bf16.mxu0 %v13088_v53  ;;  %1846 = vmatpush1.bf16.msra.mxu1 %v1758_v6  ;;  %v13131_v53 = vld [vmem:[%s16726_s2 + $0x3ec] ss:$12 sps:$4 sm:$0xff]   ;;  %v2254_v6 = vsel %vm934_vm2, %v13162_v4, 0 }
 0x186   : > { %1920 = vmatprep.subr.bf16.mxu1 %v14555_v17 }
 0x188   : > { %1775 = vmatpush1.bf16.msra.mxu0 %v13086_v54  ;;  %v13152_v54 = vld [vmem:[%s16726_s2 + $0x474] ss:$12 sps:$4 sm:$0xff]  }
 0x189   : > { %1776 = vmatprep.subr.bf16.mxu0 %v13092_v55  ;;  %v13158_v55 = vld [vmem:[%s16726_s2 + $0x490] ss:$12 sps:$4 sm:$0xff]  }
 0x18c   : > { %1777 = vmatpush1.bf16.msra.mxu0 %v13090_v56  ;;  %v13135_v56 = vld [vmem:[%s16726_s2 + $0x404] ss:$12 sps:$4 sm:$0xff]  }
 0x18d   : > { %1778 = vmatprep.subr.bf16.mxu0 %v13096_v57  ;;  %v13156_v57 = vld [vmem:[%s16726_s2 + $0x48c] ss:$12 sps:$4 sm:$0xff]  }
 0x190   : > { %1779 = vmatpush1.bf16.msra.mxu0 %v13094_v58  ;;  %v13139_v58 = vld [vmem:[%s16726_s2 + $0x41c] ss:$12 sps:$4 sm:$0xff]  }
 0x191   : > { %1780 = vmatprep.subr.bf16.mxu0 %v13100_v59  ;;  %v13143_v59 = vld [vmem:[%s16726_s2 + $0x434] ss:$12 sps:$4 sm:$0xff]  }
 0x194   : > { %1781 = vmatpush1.bf16.msra.mxu0 %v13098_v60  ;;  %v13147_v60 = vld [vmem:[%s16726_s2 + $0x44c] ss:$12 sps:$4 sm:$0xff]  }
 0x195   : > { %1782 = vmatprep.subr.bf16.mxu0 %v13104_v61  ;;  %v13151_v61 = vld [vmem:[%s16726_s2 + $0x464] ss:$12 sps:$4 sm:$0xff]  }
 0x198   : > { %1783 = vmatpush1.bf16.msra.mxu0 %v13102_v62  ;;  %v13155_v62 = vld [vmem:[%s16726_s2 + $0x47c] ss:$12 sps:$4 sm:$0xff]  }
 0x199   : > { %10749 = vmatprep.subr.msk.bf16.mxu0 %vm934_vm2, %v10747_v2  ;;  %v10855_v2 = vcombine.high %v10816_v1, %v10816_v1 }
 0x19c   : > { %1785 = vmatpush1.bf16.msra.mxu0 %v1752_v5  ;;  %v2248_v5 = vsel %vm934_vm2, %v10854_v3, 0 }
 0x19d   : > { %2256 = vmatprep.subr.bf16.mxu0 %v13114_v7 }
 0x23e   : > { %v1458_v8 = vpop.f32.mrb[24].mxu0 }
 0x23f   : > { %v1460_v9 = vpop.f32.mrb[25].mxu0 }
 0x240   : > { %v1462_v13 = vpop.f32.mrb[26].mxu0 }
 0x241   : > { %v1485_v14 = vpack.c.bf16 %v1462_v13, %v1458_v8  ;;  %v1464_v15 = vpop.f32.mrb[27].mxu0 }
 0x242   : > { %v1486_v16 = vpack.c.bf16 %v1464_v15, %v1460_v9 }
 0x244   : > { %10750 = vmatprep.mubr.msk.bf16.mxu0 %vm924_vm3, %v1486_v16  ;;  %10753 = vmatprep.mubr.msk.bf16.mxu1 %vm924_vm3, %v1486_v16 }
 0x245   : > { %1793 = vmatmul.mubr.bf16.vlgmr.msra.gmra.mrb[12].mxu0 %v1485_v14  ;;  %1854 = vmatmul.mubr.bf16.vlgmr.msra.gmra.mrb[12].mxu1 %v1485_v14 }
 0x246   : > { %v1468_v17 = vpop.f32.mrb[28].mxu0  ;;  %1921 = vmatpush1.bf16.msra.mxu1 %v14569_v19  ;;  %2257 = vmatpush1.bf16.msra.mxu0 %v13112_v18  ;;  %v13120_v19 = vld [vmem:[%s16726_s2 + $0x3b4] ss:$12 sps:$4 sm:$0xff]  }
 0x247   : > { %v1470_v24 = vpop.f32.mrb[29].mxu0  ;;  %1922 = vmatprep.subr.bf16.mxu1 %v14573_v20  ;;  %2258 = vmatprep.subr.bf16.mxu0 %v13118_v11  ;;  %v13126_v20 = vld [vmem:[%s16726_s2 + $0x3d0] ss:$12 sps:$4 sm:$0xff]  }
 0x248   : > { %v1472_v28 = vpop.f32.mrb[30].mxu0 }
 0x249   : > { %v1487_v29 = vpack.c.bf16 %v1472_v28, %v1468_v17  ;;  %v1474_v31 = vpop.f32.mrb[31].mxu0 }
 0x24a   : > { %v1488_v32 = vpack.c.bf16 %v1474_v31, %v1470_v24  ;;  %1923 = vmatpush1.bf16.msra.mxu1 %v14583_v22  ;;  %2259 = vmatpush1.bf16.msra.mxu0 %v13116_v21 }
 0x24b   : > { %1924 = vmatprep.subr.bf16.mxu1 %v14587_v23  ;;  %2260 = vmatprep.subr.bf16.mxu0 %v13122_v27  ;;  %v13124_v23 = vld [vmem:[%s16726_s2 + $0x3cc] ss:$12 sps:$4 sm:$0xff]  }
 0x24c   : > { %10751 = vmatprep.mubr.msk.bf16.mxu0 %vm924_vm3, %v1488_v32  ;;  %10754 = vmatprep.mubr.msk.bf16.mxu1 %vm924_vm3, %v1488_v32 }
 0x24d   : > { %1803 = vmatmul.mubr.bf16.gmra.mrb[16].mxu0 %v1487_v29  ;;  %1862 = vmatmul.mubr.bf16.gmra.mrb[16].mxu1 %v1487_v29 }
 0x24e   : > { %v1478_v33 = vpop.f32.mrb[32].mxu0  ;;  %1925 = vmatpush1.bf16.msra.mxu1 %v14599_v25  ;;  %2261 = vmatpush1.bf16.msra.mxu0 %v13120_v19 }
 0x24f   : > { %v1480_v22 = vpop.f32.mrb[33].mxu0  ;;  %1926 = vmatprep.subr.bf16.mxu1 %v14603_v26  ;;  %2262 = vmatprep.subr.bf16.mxu0 %v13126_v20  ;;  %v1489_v25 = vpack.c.bf16 %v1478_v33, %v1478_v33  ;;  %v13128_v26 = vld [vmem:[%s16726_s2 + $0x3e4] ss:$12 sps:$4 sm:$0xff]  }
 0x250   : > { %v1490_v34 = vpack.c.bf16 %v1480_v22, %v1480_v22  ;;  %v1482_v35 = vpop.f32.mrb[34].mxu0  ;;  %v14917_v20 = vld [vmem:[%s16727_s3] sm:$0xff]  }
 0x251   : > { %v1483_v37 = vpop.f32.mrb[35].mxu0 }
 0x252   : > { %10752 = vmatprep.mubr.msk.bf16.mxu0 %vm924_vm3, %v1490_v34  ;;  %10755 = vmatprep.mubr.msk.bf16.mxu1 %vm924_vm3, %v1490_v34 }
 0x253   : > { %1927 = vmatpush1.bf16.msra.mxu1 %v14616_v30  ;;  %2263 = vmatpush1.bf16.msra.mxu0 %v13124_v23  ;;  %v13132_v30 = vld [vmem:[%s16726_s2 + $0x3fc] ss:$12 sps:$4 sm:$0xff]  }
 0x254   : > { %10764 = vmatprep.subr.msk.bf16.mxu1 %vm454_vm0, %v14230_v10  ;;  %2264 = vmatprep.subr.bf16.mxu0 %v13130_v36  ;;  %v13138_v10 = vld [vmem:[%s16726_s2 + $0x418] ss:$12 sps:$4 sm:$0xff]  }
 0x255   : > { %1813 = vmatmul.mubr.bf16.gmra.mrb[20].mxu0 %v1489_v25  ;;  %1870 = vmatmul.mubr.bf16.gmra.mrb[20].mxu1 %v1489_v25 }
 0x256   : > { %1952 = vmatprep.mubr.bf16.mxu1 %v14106_v0 }
 0x257   : > { %1929 = vmatpush1.bf16.msra.mxu1 %v14235_v12  ;;  %2265 = vmatpush1.bf16.msra.mxu0 %v13128_v26  ;;  %v13115_v12 = vld [vmem:[%s16726_s2 + $0x38c] ss:$12 sps:$4 sm:$0xff]  }
 0x258   : > { %2317 = vmatprep.subr.bf16.mxu1 %v14106_v0  ;;  %2266 = vmatprep.subr.bf16.mxu0 %v13134_v38 }
 0x25b   : > { %2267 = vmatpush1.bf16.msra.mxu0 %v13132_v30 }
 0x25c   : > { %2268 = vmatprep.subr.bf16.mxu0 %v13138_v10 }
 0x25d   : > { %10765 = vmatmul.mubr.msk.bf16.vlgmr.msra.gmra.mrb[24].mxu1 %vm444_vm1, %v13109_v39 }
 0x25e   : > { %1962 = vmatprep.mubr.bf16.mxu1 %v14106_v0  ;;  %2318 = vmatpush1.bf16.msra.mxu1 %v13115_v12 }
 0x25f   : > { %2319 = vmatprep.subr.bf16.mxu1 %v14106_v0  ;;  %2269 = vmatpush1.bf16.msra.mxu0 %v13136_v40 }
 0x260   : > { %2270 = vmatprep.subr.bf16.mxu0 %v13142_v41 }
 0x262   : > { %2320 = vmatpush1.bf16.msra.mxu1 %v13119_v42 }
 0x263   : > { %2321 = vmatprep.subr.bf16.mxu1 %v14106_v0  ;;  %2271 = vmatpush1.bf16.msra.mxu0 %v13140_v43 }
 0x264   : > { %2272 = vmatprep.subr.bf16.mxu0 %v13146_v44 }
 0x265   : > { %10766 = vmatmul.mubr.msk.bf16.gmra.mrb[28].mxu1 %vm444_vm1, %v13110_v45 }
 0x266   : > { %1972 = vmatprep.mubr.bf16.mxu1 %v14106_v0  ;;  %2322 = vmatpush1.bf16.msra.mxu1 %v13123_v46 }
 0x267   : > { %2323 = vmatprep.subr.bf16.mxu1 %v14106_v0  ;;  %2273 = vmatpush1.bf16.msra.mxu0 %v13144_v47 }
 0x268   : > { %2274 = vmatprep.subr.bf16.mxu0 %v13150_v48 }
 0x26a   : > { %2324 = vmatpush1.bf16.msra.mxu1 %v13127_v49 }
 0x26b   : > { %2325 = vmatprep.subr.bf16.mxu1 %v14106_v0  ;;  %2275 = vmatpush1.bf16.msra.mxu0 %v13148_v50 }
 0x26c   : > { %2276 = vmatprep.subr.bf16.mxu0 %v13154_v51 }
 0x26d   : > { %10767 = vmatmul.mubr.msk.bf16.gmra.mrb[32].mxu1 %vm444_vm1, %v13111_v52 }
 0x26e   : > { %2326 = vmatpush1.bf16.msra.mxu1 %v13131_v53 }
 0x26f   : > { %2327 = vmatprep.subr.bf16.mxu1 %v14106_v0  ;;  %2277 = vmatpush1.bf16.msra.mxu0 %v13152_v54 }
 0x270   : > { %2278 = vmatprep.subr.bf16.mxu0 %v13158_v55 }
 0x272   : > { %2328 = vmatpush1.bf16.msra.mxu1 %v13135_v56 }
 0x273   : > { %2329 = vmatprep.subr.bf16.mxu1 %v14106_v0  ;;  %2279 = vmatpush1.bf16.msra.mxu0 %v13156_v57 }
 0x274   : > { %10857 = vmatprep.subr.msk.bf16.mxu0 %vm934_vm2, %v10855_v2 }
 0x276   : > { %2330 = vmatpush1.bf16.msra.mxu1 %v13139_v58 }
 0x277   : > { %2331 = vmatprep.subr.bf16.mxu1 %v14106_v0  ;;  %2281 = vmatpush1.bf16.msra.mxu0 %v2248_v5 }
 0x27a   : > { %2332 = vmatpush1.bf16.msra.mxu1 %v13143_v59 }
 0x27b   : > { %2333 = vmatprep.subr.bf16.mxu1 %v14106_v0 }
 0x27e   : > { %2334 = vmatpush1.bf16.msra.mxu1 %v13147_v60 }
 0x27f   : > { %2335 = vmatprep.subr.bf16.mxu1 %v14106_v0 }
 0x282   : > { %2336 = vmatpush1.bf16.msra.mxu1 %v13151_v61 }
 0x283   : > { %2337 = vmatprep.subr.bf16.mxu1 %v14106_v0 }
 0x286   : > { %2338 = vmatpush1.bf16.msra.mxu1 %v13155_v62 }
 0x287   : > { %2339 = vmatprep.subr.bf16.mxu1 %v14106_v0 }
 0x28a   : > { %2340 = vmatpush1.bf16.msra.mxu1 %v13159_v63 }
 0x28b   : > { %2341 = vmatprep.subr.bf16.mxu1 %v14106_v0 }
 0x28e   : > { %2342 = vmatpush1.bf16.msra.mxu1 %v2254_v6 }
 0x330   : > { %v1954_v7 = vpop.f32.mrb[24].mxu1 }
 0x331   : > { %v1956_v8 = vpop.f32.mrb[25].mxu1 }
 0x332   : > { %v1958_v9 = vpop.f32.mrb[26].mxu1 }
 0x333   : > { %v1981_v13 = vpack.c.bf16 %v1958_v9, %v1954_v7  ;;  %v1960_v14 = vpop.f32.mrb[27].mxu1 }
 0x334   : > { %v1982_v15 = vpack.c.bf16 %v1960_v14, %v1956_v8 }
 0x336   : > { %10858 = vmatprep.mubr.msk.bf16.mxu0 %vm924_vm3, %v1982_v15  ;;  %10861 = vmatprep.mubr.msk.bf16.mxu1 %vm924_vm3, %v1982_v15 }
 0x337   : > { %2289 = vmatmul.mubr.bf16.vlgmr.msra.gmra.mrb[12].mxu0 %v1981_v13  ;;  %2350 = vmatmul.mubr.bf16.vlgmr.msra.gmra.mrb[12].mxu1 %v1981_v13 }
 0x338   : > { %v1964_v16 = vpop.f32.mrb[28].mxu1 }
 0x339   : > { %v1966_v18 = vpop.f32.mrb[29].mxu1 }
 0x33a   : > { %v1968_v11 = vpop.f32.mrb[30].mxu1 }
 0x33b   : > { %v1983_v17 = vpack.c.bf16 %v1968_v11, %v1964_v16  ;;  %v1970_v21 = vpop.f32.mrb[31].mxu1 }
 0x33c   : > { %v1984_v24 = vpack.c.bf16 %v1970_v21, %v1966_v18 }
 0x33e   : > { %10859 = vmatprep.mubr.msk.bf16.mxu0 %vm924_vm3, %v1984_v24  ;;  %10862 = vmatprep.mubr.msk.bf16.mxu1 %vm924_vm3, %v1984_v24 }
 0x33f   : > { %2299 = vmatmul.mubr.bf16.gmra.mrb[16].mxu0 %v1983_v17  ;;  %2358 = vmatmul.mubr.bf16.gmra.mrb[16].mxu1 %v1983_v17 }
 0x340   : > { %v1974_v27 = vpop.f32.mrb[32].mxu1 }
 0x341   : > { %v1976_v28 = vpop.f32.mrb[33].mxu1  ;;  %v1985_v19 = vpack.c.bf16 %v1974_v27, %v1974_v27 }
 0x342   : > { %v1986_v29 = vpack.c.bf16 %v1976_v28, %v1976_v28  ;;  %v1978_v31 = vpop.f32.mrb[34].mxu1 }
 0x343   : > { %v1979_v32 = vpop.f32.mrb[35].mxu1 }
 0x344   : > { %10860 = vmatprep.mubr.msk.bf16.mxu0 %vm924_vm3, %v1986_v29  ;;  %10863 = vmatprep.mubr.msk.bf16.mxu1 %vm924_vm3, %v1986_v29 }
 0x347   : > { %2309 = vmatmul.mubr.bf16.gmra.mrb[20].mxu0 %v1985_v19  ;;  %2366 = vmatmul.mubr.bf16.gmra.mrb[20].mxu1 %v1985_v19 }
 0x348   : > { %2501 = vmatprep.mubr.bf16.mxu0 %v14106_v0  ;;  %12466 = vmatprep.mubr.msk.bf16.mxu1 %vm2453_vm4, %v14917_v20 }
 0x40a   : > { %v2290_v33 = vpop.f32.mrb[12].mxu0  ;;  %v2351_v22 = vpop.f32.mrb[12].mxu1 }
 0x40b   : > { %v2403_v23 = vmul.f32 0.2, %v2290_v33  ;;  %v2405_v34 = vmul.f32 0.2, %v2351_v22  ;;  %vm2388_vm5 = vcmp.ge.f32.partialorder %v2290_v33, 0.0  ;;  %vm2390_vm6 = vcmp.ge.f32.partialorder %v2351_v22, 0.0 }
 0x40c   : > { %v2292_v35 = vpop.f32.mrb[13].mxu0  ;;  %v2353_v36 = vpop.f32.mrb[13].mxu1 }
 0x40d   : > { %v2404_v37 = vmul.f32 0.2, %v2292_v35  ;;  %v2294_v25 = vpop.f32.mrb[14].mxu0  ;;  %v2354_v26 = vpop.f32.mrb[14].mxu1  ;;  %v2418_v10 = vsel %vm2388_vm5, %v2290_v33, %v2403_v23  ;;  %v2420_v39 = vsel %vm2390_vm6, %v2351_v22, %v2405_v34  ;;  %vm2389_vm9 = vcmp.ge.f32.partialorder %v2292_v35, 0.0 }
 0x40e   : > { %vm2391_vm7 = vcmp.ge.f32.partialorder %v2294_v25, 0.0  ;;  %v2406_v38 = vmul.f32 0.2, %v2294_v25  ;;  %vm2393_vm8 = vcmp.ge.f32.partialorder %v2354_v26, 0.0  ;;  %v2408_v30 = vmul.f32 0.2, %v2354_v26 }
 0x40f   : > { %v2296_v12 = vpop.f32.mrb[15].mxu0  ;;  %v2356_v40 = vpop.f32.mrb[15].mxu1  ;;  %v2419_v46 = vsel %vm2389_vm9, %v2292_v35, %v2404_v37  ;;  %v13164_v34 = vld [vmem:[%s16727_s3 + $0x8] ss:$0 sps:$4 sm:$0x11]   ;;  %vm3106_vm6 = vcmask 130048  }
 0x410   : > { %v2421_v41 = vsel %vm2391_vm7, %v2294_v25, %v2406_v38  ;;  %v2423_v42 = vsel %vm2393_vm8, %v2354_v26, %v2408_v30  ;;  %vm2392_vm10 = vcmp.ge.f32.partialorder %v2296_v12, 0.0  ;;  %v2407_v43 = vmul.f32 0.2, %v2296_v12  ;;  %v13169_v35 = vld [vmem:[#allocation2 + $0x19c] ss:$12 sps:$4 sm:$0xff]  }
 0x411   : > { %v14921_v44 = vpack.c.bf16 %v2421_v41, %v2418_v10  ;;  %v14923_v45 = vpack.c.bf16 %v2423_v42, %v2420_v39  ;;  %v13194_v36 = vld [vmem:[#allocation2 + $0x260] ss:$12 sps:$4 sm:$0xff]   ;;  %v13167_v37 = vld [vmem:[#allocation2 + $0x198] ss:$12 sps:$4 sm:$0xff]   ;;  %v13170_v26 = vld [vmem:[#allocation2 + $0x1b0] ss:$12 sps:$4 sm:$0xff]  }
 0x412   : > { %v2422_v47 = vsel %vm2392_vm10, %v2296_v12, %v2407_v43  ;;  %v2300_v48 = vpop.f32.mrb[16].mxu0  ;;  %v2359_v49 = vpop.f32.mrb[16].mxu1  ;;  %v13172_v25 = vld [vmem:[#allocation2 + $0x1b4] ss:$12 sps:$4 sm:$0xff]   ;;  %v13175_v38 = vld [vmem:[#allocation2 + $0x1cc] ss:$12 sps:$4 sm:$0xff]  }
 0x413   : > { %v14925_v50 = vpack.c.bf16 %v2422_v47, %v2419_v46  ;;  %v2409_v51 = vmul.f32 0.2, %v2300_v48  ;;  %12460 = vmatprep.subr.bf16.mxu1 %v14923_v45  ;;  %v2302_v52 = vpop.f32.mrb[17].mxu0  ;;  %v2361_v53 = vpop.f32.mrb[17].mxu1  ;;  %vm2394_vm11 = vcmp.ge.f32.partialorder %v2300_v48, 0.0  ;;  %vm2396_vm12 = vcmp.ge.f32.partialorder %v2359_v49, 0.0 }
 0x414   : > { %v2411_v54 = vmul.f32 0.2, %v2359_v49  ;;  %v2410_v55 = vmul.f32 0.2, %v2302_v52  ;;  %12461 = vmatpush3.bf16.msra.mxu1 %v14923_v45  ;;  %v2304_v56 = vpop.f32.mrb[18].mxu0  ;;  %v2362_v58 = vpop.f32.mrb[18].mxu1 }
 0x415   : > { %2469 = vmatprep.subr.bf16.mxu0 %v14925_v50  ;;  %vm2397_vm13 = vcmp.ge.f32.partialorder %v2304_v56, 0.0  ;;  %v2412_v57 = vmul.f32 0.2, %v2304_v56  ;;  %v2306_v59 = vpop.f32.mrb[19].mxu0  ;;  %vm2395_vm14 = vcmp.ge.f32.partialorder %v2302_v52, 0.0  ;;  %vm2399_vm15 = vcmp.ge.f32.partialorder %v2362_v58, 0.0 }
 0x416   : > { %v2414_v60 = vmul.f32 0.2, %v2362_v58  ;;  %2470 = vmatpush1.bf16.msra.mxu0 %v14921_v44  ;;  %v2364_v61 = vpop.f32.mrb[19].mxu1  ;;  %v2424_v62 = vsel %vm2394_vm11, %v2300_v48, %v2409_v51  ;;  %vm2398_vm1 = vcmp.ge.f32.partialorder %v2306_v59, 0.0  ;;  %v2413_v1 = vmul.f32 0.2, %v2306_v59 }
 0x417   : > { %v2427_v63 = vsel %vm2397_vm13, %v2304_v56, %v2412_v57  ;;  %v2426_v2 = vsel %vm2396_vm12, %v2359_v49, %v2411_v54  ;;  %v2425_v5 = vsel %vm2395_vm14, %v2302_v52, %v2410_v55  ;;  %v13195_v30 = vld [vmem:[#allocation2 + $0x1a0] ss:$12 sps:$4 sm:$0xff]   ;;  %v13166_v10 = vld [vmem:[%s16727_s3 + $0x14] ss:$0 sps:$4 sm:$0x11]  }
 0x418   : > { %v14932_v3 = vpack.c.bf16 %v2427_v63, %v2424_v62  ;;  %v2429_v4 = vsel %vm2399_vm15, %v2362_v58, %v2414_v60  ;;  %v2428_v7 = vsel %vm2398_vm1, %v2306_v59, %v2413_v1  ;;  %v13199_v39 = vld [vmem:[#allocation2 + $0x278] ss:$12 sps:$4 sm:$0xff]   ;;  %v13173_v12 = vld [vmem:[#allocation2 + $0x1c8] ss:$12 sps:$4 sm:$0xff]   ;;  %v13204_v42 = vld [vmem:[#allocation2 + $0x290] ss:$12 sps:$4 sm:$0xff]  }
 0x419   : > { %v14934_v6 = vpack.c.bf16 %v2429_v4, %v2426_v2  ;;  %v14936_v8 = vpack.c.bf16 %v2428_v7, %v2425_v5  ;;  %v13178_v40 = vld [vmem:[#allocation2 + $0x1e4] ss:$12 sps:$4 sm:$0xff]   ;;  %v13176_v43 = vld [vmem:[#allocation2 + $0x1e0] ss:$12 sps:$4 sm:$0xff]   ;;  %v13181_v46 = vld [vmem:[#allocation2 + $0x1fc] ss:$12 sps:$4 sm:$0xff]  }
 0x41a   : > { %v2310_v9 = vpop.f32.mrb[20].mxu0  ;;  %v2367_v13 = vpop.f32.mrb[20].mxu1  ;;  %v13200_v41 = vld [vmem:[#allocation2 + $0x1b8] ss:$12 sps:$4 sm:$0xff]   ;;  %v13205_v47 = vld [vmem:[#allocation2 + $0x1d0] ss:$12 sps:$4 sm:$0xff]  }
 0x41b   : > { %vm2400_vm2 = vcmp.ge.f32.partialorder %v2310_v9, 0.0  ;;  %v2415_v14 = vmul.f32 0.2, %v2310_v9  ;;  %vm2402_vm3 = vcmp.ge.f32.partialorder %v2367_v13, 0.0  ;;  %v2417_v15 = vmul.f32 0.2, %v2367_v13  ;;  %12462 = vmatprep.subr.bf16.mxu1 %v14934_v6  ;;  %2471 = vmatprep.subr.bf16.mxu0 %v14936_v8 }
 0x41c   : > { %v2312_v16 = vpop.f32.mrb[21].mxu0  ;;  %v2369_v18 = vpop.f32.mrb[21].mxu1  ;;  %12463 = vmatpush3.bf16.msra.mxu1 %v14934_v6  ;;  %2472 = vmatpush1.bf16.msra.mxu0 %v14932_v3  ;;  %v13209_v48 = vld [vmem:[#allocation2 + $0x2a8] ss:$12 sps:$4 sm:$0xff]   ;;  %v13179_v49 = vld [vmem:[#allocation2 + $0x1f8] ss:$12 sps:$4 sm:$0xff]  }
 0x41d   : > { %v2430_v11 = vsel %vm2400_vm2, %v2310_v9, %v2415_v14  ;;  %v2432_v17 = vsel %vm2402_vm3, %v2367_v13, %v2417_v15  ;;  %vm2401_vm5 = vcmp.ge.f32.partialorder %v2312_v16, 0.0  ;;  %v2416_v21 = vmul.f32 0.2, %v2312_v16  ;;  %v2314_v24 = vpop.f32.mrb[22].mxu0  ;;  %v2370_v27 = vpop.f32.mrb[22].mxu1 }
 0x41e   : > { %v2439_v28 = vpack.c.bf16 %v2430_v11, %v2430_v11  ;;  %v14942_v29 = vpack.c.bf16 %v2432_v17, %v2432_v17  ;;  %v2315_v31 = vpop.f32.mrb[23].mxu0  ;;  %v2371_v32 = vpop.f32.mrb[23].mxu1  ;;  %v13184_v51 = vld [vmem:[#allocation2 + $0x214] ss:$12 sps:$4 sm:$0xff]   ;;  %v13182_v52 = vld [vmem:[#allocation2 + $0x210] ss:$12 sps:$4 sm:$0xff]  }
 0x41f   : > { %v2431_v19 = vsel %vm2401_vm5, %v2312_v16, %v2416_v21  ;;  %v13187_v53 = vld [vmem:[#allocation2 + $0x22c] ss:$12 sps:$4 sm:$0xff]   ;;  %v13185_v54 = vld [vmem:[#allocation2 + $0x228] ss:$12 sps:$4 sm:$0xff]   ;;  %v13190_v55 = vld [vmem:[#allocation2 + $0x244] ss:$12 sps:$4 sm:$0xff]  }
 0x420   : > { %v14944_v33 = vpack.c.bf16 %v2431_v19, %v2431_v19  ;;  %12904 = vmatprep.subr.msk.bf16.mxu1 %vm454_vm0, %v14942_v29  ;;  %v14950_v22 = vsel %vm454_vm0, %v14942_v29, 0  ;;  %v14953_v23 = vsel %vm454_vm0, %v2439_v28, 0  ;;  %v13188_v56 = vld [vmem:[#allocation2 + $0x240] ss:$12 sps:$4 sm:$0xff]   ;;  %v13193_v57 = vld [vmem:[#allocation2 + $0x25c] ss:$12 sps:$4 sm:$0xff]  }
 0x421   : > { %12465 = vmatpush3.bf16.msra.mxu1 %v14950_v22  ;;  %v13191_v58 = vld [vmem:[#allocation2 + $0x258] ss:$12 sps:$4 sm:$0xff]   ;;  %v13198_v59 = vld [vmem:[#allocation2 + $0x274] ss:$12 sps:$4 sm:$0xff]   ;;  %v13196_v60 = vld [vmem:[#allocation2 + $0x270] ss:$12 sps:$4 sm:$0xff]  }
 0x422   : > { %10866 = vmatprep.subr.msk.bf16.mxu0 %vm454_vm0, %v14944_v33  ;;  %2660 = vmatprep.subr.bf16.mxu1 %v14925_v50  ;;  %v13203_v61 = vld [vmem:[#allocation2 + $0x28c] ss:$12 sps:$4 sm:$0xff]   ;;  %v13201_v62 = vld [vmem:[#allocation2 + $0x288] ss:$12 sps:$4 sm:$0xff]   ;;  %v13208_v63 = vld [vmem:[#allocation2 + $0x2a4] ss:$12 sps:$4 sm:$0xff]  }
 0x423   : > { %2474 = vmatpush1.bf16.msra.mxu0 %v14953_v23  ;;  %v13206_v1 = vld [vmem:[#allocation2 + $0x2a0] ss:$12 sps:$4 sm:$0xff]   ;;  %v13210_v2 = vld [vmem:[#allocation2 + $0x1e8] ss:$12 sps:$4 sm:$0xff]   ;;  %v13211_v7 = vld [vmem:[#allocation2 + $0x2b8] ss:$12 sps:$4 sm:$0xff]  }
 0x424   : > { %12470 = vmatprep.subr.bf16.mxu0 %v14923_v45  ;;  %12467 = vmatmul.mubr.msk.bf16.vlgmr.msra.gmra.mrb[36].mxu1 %vm2453_vm4, %v13164_v34  ;;  %v13213_v4 = vld [vmem:[#allocation2 + $0x2bc] ss:$12 sps:$4 sm:$0xff]   ;;  %v13214_v5 = vld [vmem:[#allocation2 + $0x2c0] ss:$12 sps:$4 sm:$0xff]   ;;  %v13219_v14 = vld [vmem:[#allocation2 + $0x2d8] ss:$12 sps:$4 sm:$0xff]  }
 0x425   : > { %2661 = vmatpush1.bf16.msra.mxu1 %v14921_v44  ;;  %2692 = vmatprep.mubr.bf16.mxu1 %v14106_v0  ;;  %v13215_v9 = vld [vmem:[#allocation2 + $0x200] ss:$12 sps:$4 sm:$0xff]   ;;  %v13216_v15 = vld [vmem:[#allocation2 + $0x2d0] ss:$12 sps:$4 sm:$0xff]   ;;  %v13220_v16 = vld [vmem:[#allocation2 + $0x218] ss:$12 sps:$4 sm:$0xff]  }
 0x426   : > { %10867 = vmatmul.mubr.msk.bf16.vlgmr.msra.gmra.mrb[36].mxu0 %vm2453_vm4, %v14917_v20  ;;  %2662 = vmatprep.subr.bf16.mxu1 %v14936_v8  ;;  %v13165_v20 = vld [vmem:[%s16727_s3 + $0xc] sm:$0xff]   ;;  %v13218_v13 = vld [vmem:[#allocation2 + $0x2d4] ss:$12 sps:$4 sm:$0xff]   ;;  %v13234_v19 = vld [vmem:[#allocation2 + $0x31c] ss:$12 sps:$4 sm:$0xff]   ;;  %vm5181_vm15 = vcmask 146432  }
 0x427   : > { %12471 = vmatpush3.bf16.msra.mxu0 %v14923_v45  ;;  %2511 = vmatprep.mubr.bf16.mxu0 %v14106_v0  ;;  %v13223_v18 = vld [vmem:[#allocation2 + $0x2ec] ss:$12 sps:$4 sm:$0xff]   ;;  %v13224_v11 = vld [vmem:[#allocation2 + $0x2f0] ss:$12 sps:$4 sm:$0xff]   ;;  %v13221_v17 = vld [vmem:[#allocation2 + $0x2e8] ss:$12 sps:$4 sm:$0xff]  }
 0x428   : > { %12472 = vmatprep.subr.bf16.mxu0 %v14934_v6  ;;  %v13225_v21 = vld [vmem:[#allocation2 + $0x230] ss:$12 sps:$4 sm:$0xff]   ;;  %v13229_v27 = vld [vmem:[#allocation2 + $0x308] ss:$12 sps:$4 sm:$0xff]   ;;  %v13226_v28 = vld [vmem:[#allocation2 + $0x300] ss:$12 sps:$4 sm:$0xff]  }
 0x429   : > { %2663 = vmatpush1.bf16.msra.mxu1 %v14932_v3  ;;  %v13228_v24 = vld [vmem:[#allocation2 + $0x304] ss:$12 sps:$4 sm:$0xff]   ;;  %v13230_v31 = vld [vmem:[#allocation2 + $0x248] ss:$12 sps:$4 sm:$0xff]   ;;  %v13231_v32 = vld [vmem:[#allocation2 + $0x320] ss:$12 sps:$4 sm:$0xff]  }
 0x42a   : > { %10876 = vmatprep.subr.msk.bf16.mxu1 %vm454_vm0, %v14944_v33  ;;  %vm14108_vm1 = vmmov 0   ;;  %vm5812_vm2 = vcmask 261120  }
 0x42b   : > { %12473 = vmatpush3.bf16.msra.mxu0 %v14934_v6 }
 0x42c   : > { %12905 = vmatprep.subr.msk.bf16.mxu0 %vm454_vm0, %v14942_v29 }
 0x42d   : > { %2665 = vmatpush1.bf16.msra.mxu1 %v14953_v23 }
 0x42e   : > { %10868 = vmatmul.mubr.msk.bf16.gmra.mrb[40].mxu0 %vm2453_vm4, %v13164_v34  ;;  %3113 = vmatprep.subr.bf16.mxu1 %v13169_v35 }
 0x42f   : > { %12475 = vmatpush3.bf16.msra.mxu0 %v14950_v22  ;;  %12476 = vmatprep.mubr.msk.bf16.mxu0 %vm2453_vm4, %v13165_v20 }
 0x430   : > { %10877 = vmatmul.mubr.msk.bf16.vlgmr.msra.gmra.mrb[40].mxu1 %vm2453_vm4, %v13165_v20  ;;  %12098 = vmatprep.subr.bf16.mxu0 %v13194_v36 }
 0x431   : > { %2702 = vmatprep.mubr.bf16.mxu1 %v14106_v0  ;;  %3114 = vmatpush1.bf16.msra.mxu1 %v13167_v37 }
 0x432   : > { %3115 = vmatprep.subr.bf16.mxu1 %v13172_v25 }
 0x435   : > { %3116 = vmatpush1.bf16.msra.mxu1 %v13170_v26 }
 0x436   : > { %12477 = vmatmul.mubr.msk.bf16.vlgmr.msra.gmra.mrb[44].mxu0 %vm2453_vm4, %v13166_v10  ;;  %3117 = vmatprep.subr.bf16.mxu1 %v13175_v38 }
 0x437   : > { %12099 = vmatpush3.bf16.msra.mxu0 %v13195_v30 }
 0x438   : > { %10878 = vmatmul.mubr.msk.bf16.gmra.mrb[44].mxu1 %vm2453_vm4, %v13166_v10  ;;  %12100 = vmatprep.subr.bf16.mxu0 %v13199_v39 }
 0x439   : > { %3118 = vmatpush1.bf16.msra.mxu1 %v13173_v12 }
 0x43a   : > { %3119 = vmatprep.subr.bf16.mxu1 %v13178_v40 }
 0x43b   : > { %12101 = vmatpush3.bf16.msra.mxu0 %v13200_v41 }
 0x43c   : > { %12102 = vmatprep.subr.bf16.mxu0 %v13204_v42 }
 0x43d   : > { %3120 = vmatpush1.bf16.msra.mxu1 %v13176_v43 }
 0x43e   : > { %3121 = vmatprep.subr.bf16.mxu1 %v13181_v46 }
 0x43f   : > { %12103 = vmatpush3.bf16.msra.mxu0 %v13205_v47 }
 0x440   : > { %12104 = vmatprep.subr.bf16.mxu0 %v13209_v48 }
 0x441   : > { %3122 = vmatpush1.bf16.msra.mxu1 %v13179_v49 }
 0x442   : > { %3123 = vmatprep.subr.bf16.mxu1 %v13184_v51 }
 0x443   : > { %12105 = vmatpush3.bf16.msra.mxu0 %v13210_v2 }
 0x444   : > { %12106 = vmatprep.subr.bf16.mxu0 %v13214_v5  ;;  %v13239_v5 = vld [vmem:[#allocation2 + $0x8] ss:$12 sps:$4 sm:$0xff]  }
 0x445   : > { %3124 = vmatpush1.bf16.msra.mxu1 %v13182_v52  ;;  %v13232_v52 = vld [vmem:[#allocation2 + $0x318] ss:$12 sps:$4 sm:$0xff]  }
 0x446   : > { %3125 = vmatprep.subr.bf16.mxu1 %v13187_v53  ;;  %v13237_v53 = vld [vmem:[#allocation2 + $0x4] ss:$12 sps:$4 sm:$0xff]  }
 0x447   : > { %12107 = vmatpush3.bf16.msra.mxu0 %v13215_v9  ;;  %v13242_v9 = vld [vmem:[#allocation2 + $0x1c] ss:$12 sps:$4 sm:$0xff]  }
 0x448   : > { %12108 = vmatprep.subr.bf16.mxu0 %v13219_v14  ;;  %v13240_v14 = vld [vmem:[#allocation2 + $0x18] ss:$12 sps:$4 sm:$0xff]  }
 0x449   : > { %3126 = vmatpush1.bf16.msra.mxu1 %v13185_v54  ;;  %v13238_v54 = vld [vmem:[#allocation2 + $0xc8] ss:$12 sps:$4 sm:$0xff]  }
 0x44a   : > { %3127 = vmatprep.subr.bf16.mxu1 %v13190_v55 }
 0x44b   : > { %12109 = vmatpush3.bf16.msra.mxu0 %v13220_v16  ;;  %v13247_v16 = vld [vmem:[#allocation2 + $0x34] ss:$12 sps:$4 sm:$0xff]  }
 0x44c   : > { %12110 = vmatprep.subr.bf16.mxu0 %v13224_v11  ;;  %v13245_v11 = vld [vmem:[#allocation2 + $0x30] ss:$12 sps:$4 sm:$0xff]  }
 0x44d   : > { %3128 = vmatpush1.bf16.msra.mxu1 %v13188_v56 }
 0x44e   : > { %3129 = vmatprep.subr.bf16.mxu1 %v13193_v57 }
 0x44f   : > { %12111 = vmatpush3.bf16.msra.mxu0 %v13225_v21  ;;  %v13252_v21 = vld [vmem:[#allocation2 + $0x4c] ss:$12 sps:$4 sm:$0xff]  }
 0x450   : > { %12112 = vmatprep.subr.bf16.mxu0 %v13229_v27  ;;  %v13250_v27 = vld [vmem:[#allocation2 + $0x48] ss:$12 sps:$4 sm:$0xff]  }
 0x451   : > { %3130 = vmatpush1.bf16.msra.mxu1 %v13191_v58 }
 0x452   : > { %3131 = vmatprep.subr.bf16.mxu1 %v13198_v59 }
 0x453   : > { %12113 = vmatpush3.bf16.msra.mxu0 %v13230_v31  ;;  %v13257_v31 = vld [vmem:[#allocation2 + $0x64] ss:$12 sps:$4 sm:$0xff]  }
 0x454   : > { %12480 = vmatprep.subr.bf16.mxu0 %v13231_v32 }
 0x455   : > { %3132 = vmatpush1.bf16.msra.mxu1 %v13196_v60 }
 0x456   : > { %3133 = vmatprep.subr.bf16.mxu1 %v13203_v61 }
 0x459   : > { %3134 = vmatpush1.bf16.msra.mxu1 %v13201_v62 }
 0x45a   : > { %3135 = vmatprep.subr.bf16.mxu1 %v13208_v63 }
 0x45d   : > { %3136 = vmatpush1.bf16.msra.mxu1 %v13206_v1 }
 0x45e   : > { %3137 = vmatprep.subr.bf16.mxu1 %v13213_v4  ;;  %v13235_v4 = vld [vmem:[#allocation2] ss:$12 sps:$4 sm:$0xff]  }
 0x461   : > { %3138 = vmatpush1.bf16.msra.mxu1 %v13211_v7 }
 0x462   : > { %3139 = vmatprep.subr.bf16.mxu1 %v13218_v13  ;;  %v13243_v13 = vld [vmem:[#allocation2 + $0xe0] ss:$12 sps:$4 sm:$0xff]  }
 0x465   : > { %3140 = vmatpush1.bf16.msra.mxu1 %v13216_v15  ;;  %v13244_v15 = vld [vmem:[#allocation2 + $0x20] ss:$12 sps:$4 sm:$0xff]  }
 0x466   : > { %3141 = vmatprep.subr.bf16.mxu1 %v13223_v18  ;;  %v13248_v18 = vld [vmem:[#allocation2 + $0xf8] ss:$12 sps:$4 sm:$0xff]  }
 0x469   : > { %3142 = vmatpush1.bf16.msra.mxu1 %v13221_v17  ;;  %v13249_v17 = vld [vmem:[#allocation2 + $0x38] ss:$12 sps:$4 sm:$0xff]  }
 0x46a   : > { %3143 = vmatprep.subr.bf16.mxu1 %v13228_v24  ;;  %v13253_v24 = vld [vmem:[#allocation2 + $0x110] ss:$12 sps:$4 sm:$0xff]  }
 0x46d   : > { %3144 = vmatpush1.bf16.msra.mxu1 %v13226_v28  ;;  %v13254_v28 = vld [vmem:[#allocation2 + $0x50] ss:$12 sps:$4 sm:$0xff]  }
 0x46e   : > { %3164 = vmatprep.subr.bf16.mxu1 %v13234_v19  ;;  %v13255_v19 = vld [vmem:[#allocation2 + $0x60] ss:$12 sps:$4 sm:$0xff]  }
 0x4f7   : > { %v14993_v34 = vpop.f32.mrb[36].mxu1 }
 0x4f8   : > { %v2554_v35 = vpop.f32.mrb[37].mxu1 }
 0x4f9   : > { %v12469_v20 = vpop.f32.mrb[38].mxu1  ;;  %v2503_v36 = vpop.f32.mrb[36].mxu0 }
 0x4fa   : > { %v2557_v37 = vpop.f32.mrb[39].mxu1  ;;  %v2505_v25 = vpop.f32.mrb[37].mxu0  ;;  %v13262_v20 = vld [vmem:[#allocation2 + $0x7c] ss:$12 sps:$4 sm:$0xff]  }
 0x4fb   : > { %v14995_v26 = vpack.c.bf16 %v2557_v37, %v2554_v35  ;;  %v2507_v38 = vpop.f32.mrb[38].mxu0  ;;  %v13259_v35 = vld [vmem:[#allocation2 + $0x68] ss:$12 sps:$4 sm:$0xff]   ;;  %v13260_v37 = vld [vmem:[#allocation2 + $0x78] ss:$12 sps:$4 sm:$0xff]  }
 0x4fc   : > { %v14997_v30 = vpack.c.bf16 %v2507_v38, %v2503_v36  ;;  %v2509_v10 = vpop.f32.mrb[39].mxu0  ;;  %v13263_v36 = vld [vmem:[#allocation2 + $0x140] ss:$12 sps:$4 sm:$0xff]  }
 0x4fd   : > { %v14999_v39 = vpack.c.bf16 %v2509_v10, %v2505_v25  ;;  %v13264_v25 = vld [vmem:[#allocation2 + $0x80] ss:$12 sps:$4 sm:$0xff]   ;;  %v13268_v10 = vld [vmem:[#allocation2 + $0x158] ss:$12 sps:$4 sm:$0xff]  }
 0x4fe   : > { %v13267_v38 = vld [vmem:[#allocation2 + $0x94] ss:$12 sps:$4 sm:$0xff]  }
 0x501   : > { %v15001_v12 = vpop.f32.mrb[40].mxu0 }
 0x502   : > { %v15003_v40 = vpop.f32.mrb[41].mxu0 }
 0x503   : > { %v2694_v41 = vpop.f32.mrb[40].mxu1  ;;  %v2517_v42 = vpop.f32.mrb[42].mxu0 }
 0x504   : > { %v2696_v43 = vpop.f32.mrb[41].mxu1  ;;  %v2518_v46 = vpop.f32.mrb[43].mxu0  ;;  %v13272_v42 = vld [vmem:[#allocation2 + $0xac] ss:$12 sps:$4 sm:$0xff]  }
 0x505   : > { %v2698_v47 = vpop.f32.mrb[42].mxu1  ;;  %v13270_v46 = vld [vmem:[#allocation2 + $0xa8] ss:$12 sps:$4 sm:$0xff]  }
 0x506   : > { %v2759_v48 = vpack.c.bf16 %v2698_v47, %v2694_v41  ;;  %v2700_v49 = vpop.f32.mrb[43].mxu1  ;;  %v13269_v41 = vld [vmem:[#allocation2 + $0x98] ss:$12 sps:$4 sm:$0xff]   ;;  %v13274_v47 = vld [vmem:[#allocation2 + $0xb0] ss:$12 sps:$4 sm:$0xff]  }
 0x507   : > { %v2760_v51 = vpack.c.bf16 %v2700_v49, %v2696_v43  ;;  %v13273_v43 = vld [vmem:[#allocation2 + $0x170] ss:$12 sps:$4 sm:$0xff]   ;;  %v13278_v49 = vld [vmem:[#allocation2 + $0x188] ss:$12 sps:$4 sm:$0xff]  }
 0x509   : > { %3145 = vmatprep.mubr.bf16.mxu1 %v2760_v51  ;;  %3247 = vmatprep.mubr.bf16.mxu0 %v2760_v51  ;;  %v12478_v55 = vpop.f32.mrb[44].mxu0  ;;  %v13275_v51 = vld [vmem:[#allocation2 + $0xc0] ss:$12 sps:$4 sm:$0xff]  }
 0x50a   : > { %3146 = vmatmul.mubr.bf16.vlgmr.msra.gmra.mrb[48].mxu1 %v2759_v48  ;;  %3248 = vmatmul.mubr.bf16.vlgmr.msra.gmra.mrb[48].mxu0 %v2759_v48  ;;  %v2745_v56 = vpop.f32.mrb[45].mxu0  ;;  %v2764_v7 = vpack.c.bf16 %v12478_v55, %v12478_v55  ;;  %v13277_v48 = vld [vmem:[#allocation2 + $0xc4] ss:$12 sps:$4 sm:$0xff]   ;;  %v13284_v55 = vld [vmem:[#allocation2 + $0xf4] ss:$12 sps:$4 sm:$0xff]  }
 0x50b   : > { %v2704_v57 = vpop.f32.mrb[44].mxu1  ;;  %12481 = vmatpush3.bf16.msra.mxu0 %v13231_v32  ;;  %v12479_v58 = vpop.f32.mrb[46].mxu0  ;;  %3165 = vmatpush1.bf16.msra.mxu1 %v13232_v52  ;;  %v13258_v32 = vld [vmem:[#allocation2 + $0x128] ss:$12 sps:$4 sm:$0xff]  }
 0x50c   : > { %v2706_v59 = vpop.f32.mrb[45].mxu1  ;;  %v2748_v60 = vpop.f32.mrb[47].mxu0  ;;  %3589 = vmatprep.subr.bf16.mxu1 %v13237_v53  ;;  %12129 = vmatprep.subr.bf16.mxu0 %v13238_v54  ;;  %v2762_v2 = vpack.c.bf16 %v2704_v57, %v2704_v57  ;;  %v13281_v52 = vld [vmem:[#allocation2 + $0xdc] ss:$12 sps:$4 sm:$0xff]   ;;  %v2572_v53 = vpack.c.bf16 %v15003_v40, %v15003_v40  ;;  %v13279_v54 = vld [vmem:[#allocation2 + $0xd8] ss:$12 sps:$4 sm:$0xff]   ;;  %v2571_v57 = vpack.c.bf16 %v15001_v12, %v15001_v12 }
 0x50d   : > { %v2763_v61 = vpack.c.bf16 %v2706_v59, %v2706_v59  ;;  %v2708_v62 = vpop.f32.mrb[46].mxu1  ;;  %v2761_v63 = vpack.c.bf16 %v2748_v60, %v2745_v56  ;;  %v13282_v56 = vld [vmem:[#allocation2 + $0xf0] ss:$12 sps:$4 sm:$0xff]   ;;  %v13287_v58 = vld [vmem:[#allocation2 + $0x10c] ss:$12 sps:$4 sm:$0xff]  }
 0x50e   : > { %v2709_v1 = vpop.f32.mrb[47].mxu1  ;;  %v13285_v40 = vld [vmem:[#allocation2 + $0x108] ss:$12 sps:$4 sm:$0xff]   ;;  %v13290_v59 = vld [vmem:[#allocation2 + $0x124] ss:$12 sps:$4 sm:$0xff]  }
 0x50f   : > { %3155 = vmatprep.mubr.bf16.mxu1 %v2763_v61  ;;  %3255 = vmatprep.mubr.bf16.mxu0 %v2763_v61  ;;  %v13288_v60 = vld [vmem:[#allocation2 + $0x120] ss:$12 sps:$4 sm:$0xff]   ;;  %v2573_v61 = vpack.c.bf16 %v14993_v34, %v14993_v34  ;;  %v13293_v62 = vld [vmem:[#allocation2 + $0x13c] ss:$12 sps:$4 sm:$0xff]   ;;  %v13291_v12 = vld [vmem:[#allocation2 + $0x138] ss:$12 sps:$4 sm:$0xff]  }
 0x510   : > { %v13294_v1 = vld [vmem:[#allocation2 + $0x150] ss:$12 sps:$4 sm:$0xff]   ;;  %v13300_v34 = vld [vmem:[#allocation2 + $0x16c] ss:$12 sps:$4 sm:$0xff]  }
 0x512   : > { %3156 = vmatmul.mubr.bf16.gmra.mrb[52].mxu1 %v2762_v2  ;;  %3256 = vmatmul.mubr.bf16.gmra.mrb[52].mxu0 %v2762_v2  ;;  %v13297_v2 = vld [vmem:[%s16727_s3 + $0x18] sm:$0xff]  }
 0x513   : > { %12482 = vmatprep.mubr.msk.bf16.mxu0 %vm3106_vm6, %v2761_v63  ;;  %3196 = vmatprep.mubr.bf16.mxu1 %v14106_v0 }
 0x51a   : > { %10932 = vmatmul.mubr.msk.bf16.vlgmr.msra.gmra.mrb[48].mxu1 %vm3106_vm6, %v2761_v63  ;;  %12483 = vmatmul.mubr.msk.bf16.vlgmr.msra.gmra.mrb[56].mxu0 %vm3106_vm6, %v2764_v7  ;;  %v13296_v63 = vld [vmem:[#allocation2 + $0x154] ss:$12 sps:$4 sm:$0xff]  }
 0x51b   : > { %3590 = vmatpush1.bf16.msra.mxu1 %v13235_v4  ;;  %12130 = vmatpush3.bf16.msra.mxu0 %v13239_v5  ;;  %v13298_v4 = vld [vmem:[#allocation2 + $0x168] ss:$12 sps:$4 sm:$0xff]   ;;  %v13304_v5 = vld [vmem:[#allocation2 + $0x184] ss:$12 sps:$4 sm:$0xff]  }
 0x51c   : > { %3723 = vmatprep.mubr.bf16.mxu0 %v14999_v39  ;;  %3591 = vmatprep.subr.bf16.mxu1 %v13242_v9  ;;  %v13301_v9 = vld [vmem:[%s16727_s3 + $0x20] ss:$0 sps:$4 sm:$0x11]  }
 0x51d   : > { %12131 = vmatprep.subr.bf16.mxu0 %v13243_v13  ;;  %3206 = vmatprep.mubr.bf16.mxu1 %v14106_v0  ;;  %v13307_v13 = vld [vmem:[#allocation2 + $0x334] ss:$12 sps:$4 sm:$0xff]  }
 0x51f   : > { %3592 = vmatpush1.bf16.msra.mxu1 %v13240_v14  ;;  %12132 = vmatpush3.bf16.msra.mxu0 %v13244_v15  ;;  %v13310_v14 = vld [vmem:[#allocation2 + $0x34c] ss:$12 sps:$4 sm:$0xff]   ;;  %v13308_v15 = vld [vmem:[#allocation2 + $0x348] ss:$12 sps:$4 sm:$0xff]  }
 0x520   : > { %3593 = vmatprep.subr.bf16.mxu1 %v13247_v16  ;;  %12133 = vmatprep.subr.bf16.mxu0 %v13248_v18  ;;  %v13313_v16 = vld [vmem:[#allocation2 + $0x364] ss:$12 sps:$4 sm:$0xff]   ;;  %v13311_v18 = vld [vmem:[#allocation2 + $0x360] ss:$12 sps:$4 sm:$0xff]  }
 0x522   : > { %10933 = vmatmul.mubr.msk.bf16.gmra.mrb[52].mxu1 %vm3106_vm6, %v2764_v7  ;;  %v13302_v7 = vld [vmem:[#allocation2 + $0x180] ss:$12 sps:$4 sm:$0xff]  }
 0x523   : > { %3594 = vmatpush1.bf16.msra.mxu1 %v13245_v11  ;;  %12134 = vmatpush3.bf16.msra.mxu0 %v13249_v17  ;;  %v13316_v11 = vld [vmem:[#allocation2 + $0x37c] ss:$12 sps:$4 sm:$0xff]   ;;  %v13314_v17 = vld [vmem:[#allocation2 + $0x378] ss:$12 sps:$4 sm:$0xff]  }
 0x524   : > { %3621 = vmatprep.mubr.bf16.mxu1 %v14999_v39  ;;  %3595 = vmatprep.subr.bf16.mxu1 %v13252_v21  ;;  %v13265_v39 = vld [vmem:[#allocation2 + $0x90] ss:$12 sps:$4 sm:$0xff]   ;;  %v13319_v21 = vld [vmem:[#allocation2 + $0x394] ss:$12 sps:$4 sm:$0xff]  }
 0x525   : > { %12135 = vmatprep.subr.bf16.mxu0 %v13253_v24  ;;  %v13317_v24 = vld [vmem:[#allocation2 + $0x390] ss:$12 sps:$4 sm:$0xff]  }
 0x527   : > { %3596 = vmatpush1.bf16.msra.mxu1 %v13250_v27  ;;  %12136 = vmatpush3.bf16.msra.mxu0 %v13254_v28  ;;  %v13320_v27 = vld [vmem:[#allocation2 + $0x3a8] ss:$12 sps:$4 sm:$0xff]   ;;  %v13325_v28 = vld [vmem:[#allocation2 + $0x3c4] ss:$12 sps:$4 sm:$0xff]  }
 0x528   : > { %3597 = vmatprep.subr.bf16.mxu1 %v13257_v31  ;;  %12137 = vmatprep.subr.bf16.mxu0 %v13258_v32  ;;  %v13323_v31 = vld [vmem:[#allocation2 + $0x3c0] ss:$12 sps:$4 sm:$0xff]   ;;  %v13328_v32 = vld [vmem:[#allocation2 + $0x3dc] ss:$12 sps:$4 sm:$0xff]  }
 0x52b   : > { %3598 = vmatpush1.bf16.msra.mxu1 %v13255_v19  ;;  %12138 = vmatpush3.bf16.msra.mxu0 %v13259_v35  ;;  %v13326_v19 = vld [vmem:[#allocation2 + $0x3d8] ss:$12 sps:$4 sm:$0xff]  }
 0x52c   : > { %3599 = vmatprep.subr.bf16.mxu1 %v13262_v20  ;;  %12139 = vmatprep.subr.bf16.mxu0 %v13263_v36  ;;  %v13329_v35 = vld [vmem:[#allocation2 + $0x3f8] ss:$12 sps:$4 sm:$0xff]   ;;  %v13332_v20 = vld [vmem:[#allocation2 + $0x3f4] ss:$12 sps:$4 sm:$0xff]  }
 0x52d   : > { %v13333_v36 = vld [vmem:[#allocation2 + $0x338] ss:$12 sps:$4 sm:$0xff]  }
 0x52f   : > { %3600 = vmatpush1.bf16.msra.mxu1 %v13260_v37  ;;  %12140 = vmatpush3.bf16.msra.mxu0 %v13264_v25  ;;  %v13330_v37 = vld [vmem:[#allocation2 + $0x3f0] ss:$12 sps:$4 sm:$0xff]  }
 0x530   : > { %3601 = vmatprep.subr.bf16.mxu1 %v13267_v38  ;;  %12141 = vmatprep.subr.bf16.mxu0 %v13268_v10  ;;  %v13334_v25 = vld [vmem:[#allocation2 + $0x410] ss:$12 sps:$4 sm:$0xff]   ;;  %v13337_v38 = vld [vmem:[#allocation2 + $0x40c] ss:$12 sps:$4 sm:$0xff]  }
 0x531   : > { %v13338_v10 = vld [vmem:[#allocation2 + $0x350] ss:$12 sps:$4 sm:$0xff]  }
 0x533   : > { %3602 = vmatpush1.bf16.msra.mxu1 %v13265_v39  ;;  %12142 = vmatpush3.bf16.msra.mxu0 %v13269_v41  ;;  %v13335_v39 = vld [vmem:[#allocation2 + $0x408] ss:$12 sps:$4 sm:$0xff]  }
 0x534   : > { %3603 = vmatprep.subr.bf16.mxu1 %v13272_v42  ;;  %12143 = vmatprep.subr.bf16.mxu0 %v13273_v43  ;;  %v13339_v41 = vld [vmem:[#allocation2 + $0x428] ss:$12 sps:$4 sm:$0xff]   ;;  %v13342_v42 = vld [vmem:[#allocation2 + $0x424] ss:$12 sps:$4 sm:$0xff]  }
 0x535   : > { %v13343_v43 = vld [vmem:[#allocation2 + $0x368] ss:$12 sps:$4 sm:$0xff]  }
 0x537   : > { %3604 = vmatpush1.bf16.msra.mxu1 %v13270_v46  ;;  %12144 = vmatpush3.bf16.msra.mxu0 %v13274_v47  ;;  %v13340_v46 = vld [vmem:[#allocation2 + $0x420] ss:$12 sps:$4 sm:$0xff]  }
 0x538   : > { %3605 = vmatprep.subr.bf16.mxu1 %v13277_v48  ;;  %12486 = vmatprep.subr.bf16.mxu0 %v13278_v49  ;;  %v13344_v47 = vld [vmem:[#allocation2 + $0x440] ss:$12 sps:$4 sm:$0xff]   ;;  %v13345_v48 = vld [vmem:[#allocation2 + $0x438] ss:$12 sps:$4 sm:$0xff]  }
 0x53a   : > { %3724 = vmatmul.mubr.bf16.vlgmr.msra.gmra.mrb[60].mxu0 %v14997_v30 }
 0x53b   : > { %3606 = vmatpush1.bf16.msra.mxu1 %v13275_v51  ;;  %3731 = vmatprep.mubr.bf16.mxu0 %v2572_v53  ;;  %v13348_v51 = vld [vmem:[#allocation2 + $0x380] ss:$12 sps:$4 sm:$0xff]  }
 0x53c   : > { %12487 = vmatpush3.bf16.msra.mxu0 %v13278_v49  ;;  %3607 = vmatprep.subr.bf16.mxu1 %v13281_v52  ;;  %v13347_v49 = vld [vmem:[#allocation2 + $0x43c] ss:$12 sps:$4 sm:$0xff]   ;;  %v13349_v52 = vld [vmem:[#allocation2 + $0x458] ss:$12 sps:$4 sm:$0xff]  }
 0x53d   : > { %3805 = vmatprep.subr.bf16.mxu0 %v14925_v50 }
 0x53f   : > { %3608 = vmatpush1.bf16.msra.mxu1 %v13279_v54  ;;  %v13353_v54 = vld [vmem:[#allocation2 + $0x398] ss:$12 sps:$4 sm:$0xff]  }
 0x540   : > { %3609 = vmatprep.subr.bf16.mxu1 %v13284_v55  ;;  %v13350_v55 = vld [vmem:[#allocation2 + $0x450] ss:$12 sps:$4 sm:$0xff]  }
 0x542   : > { %3732 = vmatmul.mubr.bf16.gmra.mrb[64].mxu0 %v2571_v57 }
 0x543   : > { %3610 = vmatpush1.bf16.msra.mxu1 %v13282_v56  ;;  %12488 = vmatprep.mubr.msk.bf16.mxu0 %vm3106_vm6, %v14995_v26  ;;  %v13354_v56 = vld [vmem:[#allocation2 + $0x470] ss:$12 sps:$4 sm:$0xff]  }
 0x544   : > { %3611 = vmatprep.subr.bf16.mxu1 %v13287_v58  ;;  %v13358_v58 = vld [vmem:[#allocation2 + $0x3b0] ss:$12 sps:$4 sm:$0xff]  }
 0x547   : > { %3612 = vmatpush1.bf16.msra.mxu1 %v13285_v40  ;;  %v13355_v40 = vld [vmem:[#allocation2 + $0x468] ss:$12 sps:$4 sm:$0xff]  }
 0x548   : > { %3613 = vmatprep.subr.bf16.mxu1 %v13290_v59  ;;  %v13359_v59 = vld [vmem:[#allocation2 + $0x488] ss:$12 sps:$4 sm:$0xff]  }
 0x54a   : > { %12489 = vmatmul.mubr.msk.bf16.vlgmr.msra.gmra.mrb[56].mxu0 %vm3106_vm6, %v2573_v61 }
 0x54b   : > { %3806 = vmatpush1.bf16.msra.mxu0 %v14921_v44  ;;  %3614 = vmatpush1.bf16.msra.mxu1 %v13288_v60  ;;  %v13362_v60 = vld [vmem:[#allocation2 + $0x484] ss:$12 sps:$4 sm:$0xff]  }
 0x54c   : > { %3807 = vmatprep.subr.bf16.mxu0 %v14936_v8  ;;  %3615 = vmatprep.subr.bf16.mxu1 %v13293_v62  ;;  %v13360_v62 = vld [vmem:[#allocation2 + $0x480] ss:$12 sps:$4 sm:$0xff]  }
 0x54d   : > { %3837 = vmatprep.mubr.bf16.mxu0 %v14106_v0 }
 0x54f   : > { %3808 = vmatpush1.bf16.msra.mxu0 %v14932_v3  ;;  %3616 = vmatpush1.bf16.msra.mxu1 %v13291_v12  ;;  %v13364_v12 = vld [vmem:[#allocation2 + $0x4a0] ss:$12 sps:$4 sm:$0xff]  }
 0x550   : > { %10996 = vmatprep.subr.msk.bf16.mxu0 %vm454_vm0, %v14944_v33  ;;  %3617 = vmatprep.subr.bf16.mxu1 %v13296_v63  ;;  %v13367_v63 = vld [vmem:[#allocation2 + $0x49c] ss:$12 sps:$4 sm:$0xff]  }
 0x553   : > { %3810 = vmatpush1.bf16.msra.mxu0 %v14953_v23  ;;  %3618 = vmatpush1.bf16.msra.mxu1 %v13294_v1  ;;  %v13368_v1 = vld [vmem:[#allocation2 + $0x3e0] ss:$12 sps:$4 sm:$0xff]  }
 0x554   : > { %12492 = vmatprep.subr.bf16.mxu0 %v14923_v45  ;;  %3619 = vmatprep.subr.bf16.mxu1 %v13300_v34  ;;  %v13365_v34 = vld [vmem:[#allocation2 + $0x498] ss:$12 sps:$4 sm:$0xff]  }
 0x556   : > { %10997 = vmatmul.mubr.msk.bf16.vlgmr.msra.gmra.mrb[68].mxu0 %vm2453_vm4, %v13297_v2 }
 0x557   : > { %12493 = vmatpush3.bf16.msra.mxu0 %v14923_v45  ;;  %3620 = vmatpush1.bf16.msra.mxu1 %v13298_v4  ;;  %v13372_v4 = vld [vmem:[#allocation2 + $0x4b4] ss:$12 sps:$4 sm:$0xff]  }
 0x558   : > { %12494 = vmatprep.subr.bf16.mxu0 %v14934_v6  ;;  %3847 = vmatprep.mubr.bf16.mxu0 %v14106_v0 }
 0x559   : > { %3640 = vmatprep.subr.bf16.mxu1 %v13304_v5 }
 0x55a   : > { %3622 = vmatmul.mubr.bf16.vlgmr.msra.gmra.mrb[48].mxu1 %v14997_v30  ;;  %v13305_v30 = vld [vmem:[#allocation2 + $0x330] ss:$12 sps:$4 sm:$0xff]  }
 0x55b   : > { %12495 = vmatpush3.bf16.msra.mxu0 %v14934_v6  ;;  %3631 = vmatprep.mubr.bf16.mxu1 %v2572_v53  ;;  %v13352_v53 = vld [vmem:[#allocation2 + $0x454] ss:$12 sps:$4 sm:$0xff]  }
 0x55c   : > { %12906 = vmatprep.subr.msk.bf16.mxu0 %vm454_vm0, %v14942_v29  ;;  %3641 = vmatpush1.bf16.msra.mxu1 %v13302_v7 }
 0x55d   : > { %4257 = vmatprep.subr.bf16.mxu1 %v13307_v13 }
 0x55e   : > { %10998 = vmatmul.mubr.msk.bf16.gmra.mrb[72].mxu0 %vm2453_vm4, %v13301_v9 }
 0x55f   : > { %12497 = vmatpush3.bf16.msra.mxu0 %v14950_v22  ;;  %12498 = vmatprep.mubr.msk.bf16.mxu0 %vm2453_vm4, %v13297_v2  ;;  %v13369_v2 = vld [vmem:[#allocation2 + $0x4b8] ss:$12 sps:$4 sm:$0xff]  }
 0x560   : > { %12165 = vmatprep.subr.bf16.mxu0 %v13329_v35 }
 0x562   : > { %3632 = vmatmul.mubr.bf16.gmra.mrb[52].mxu1 %v2571_v57  ;;  %v13357_v57 = vld [vmem:[#allocation2 + $0x46c] ss:$12 sps:$4 sm:$0xff]  }
 0x563   : > { %3672 = vmatprep.mubr.bf16.mxu1 %v14106_v0 }
 0x566   : > { %12499 = vmatmul.mubr.msk.bf16.vlgmr.msra.gmra.mrb[76].mxu0 %vm2453_vm4, %v13301_v9 }
 0x567   : > { %12166 = vmatpush3.bf16.msra.mxu0 %v13333_v36 }
 0x568   : > { %12167 = vmatprep.subr.bf16.mxu0 %v13334_v25 }
 0x56a   : > { %10987 = vmatmul.mubr.msk.bf16.vlgmr.msra.gmra.mrb[48].mxu1 %vm3106_vm6, %v14995_v26  ;;  %v13322_v26 = vld [vmem:[#allocation2 + $0x3ac] ss:$12 sps:$4 sm:$0xff]  }
 0x56b   : > { %3682 = vmatprep.mubr.bf16.mxu1 %v14106_v0  ;;  %4258 = vmatpush1.bf16.msra.mxu1 %v13305_v30 }
 0x56c   : > { %4259 = vmatprep.subr.bf16.mxu1 %v13310_v14  ;;  %12168 = vmatpush3.bf16.msra.mxu0 %v13338_v10 }
 0x56d   : > { %12169 = vmatprep.subr.bf16.mxu0 %v13339_v41 }
 0x56f   : > { %4260 = vmatpush1.bf16.msra.mxu1 %v13308_v15 }
 0x570   : > { %4261 = vmatprep.subr.bf16.mxu1 %v13313_v16  ;;  %12170 = vmatpush3.bf16.msra.mxu0 %v13343_v43 }
 0x571   : > { %12171 = vmatprep.subr.bf16.mxu0 %v13344_v47  ;;  %v13370_v47 = vld [vmem:[#allocation2 + $0x4b0] ss:$12 sps:$4 sm:$0xff]  }
 0x572   : > { %10988 = vmatmul.mubr.msk.bf16.gmra.mrb[52].mxu1 %vm3106_vm6, %v2573_v61  ;;  %v13363_v61 = vld [vmem:[#allocation2 + $0x3c8] ss:$12 sps:$4 sm:$0xff]  }
 0x573   : > { %4262 = vmatpush1.bf16.msra.mxu1 %v13311_v18 }
 0x574   : > { %4263 = vmatprep.subr.bf16.mxu1 %v13316_v11  ;;  %12172 = vmatpush3.bf16.msra.mxu0 %v13348_v51 }
 0x575   : > { %12173 = vmatprep.subr.bf16.mxu0 %v13349_v52 }
 0x577   : > { %4264 = vmatpush1.bf16.msra.mxu1 %v13314_v17 }
 0x578   : > { %4265 = vmatprep.subr.bf16.mxu1 %v13319_v21  ;;  %12174 = vmatpush3.bf16.msra.mxu0 %v13353_v54 }
 0x579   : > { %12175 = vmatprep.subr.bf16.mxu0 %v13354_v56 }
 0x57b   : > { %4266 = vmatpush1.bf16.msra.mxu1 %v13317_v24 }
 0x57c   : > { %4267 = vmatprep.subr.bf16.mxu1 %v13322_v26  ;;  %12176 = vmatpush3.bf16.msra.mxu0 %v13358_v58 }
 0x57d   : > { %12177 = vmatprep.subr.bf16.mxu0 %v13359_v59 }
 0x57f   : > { %4268 = vmatpush1.bf16.msra.mxu1 %v13320_v27 }
 0x580   : > { %4269 = vmatprep.subr.bf16.mxu1 %v13325_v28  ;;  %12178 = vmatpush3.bf16.msra.mxu0 %v13363_v61  ;;  %v13380_v61 = vld [vmem:[#allocation2 + $0x4e4] ss:$12 sps:$4 sm:$0xff]  }
 0x581   : > { %12179 = vmatprep.subr.bf16.mxu0 %v13364_v12  ;;  %v13383_v12 = vld [vmem:[#allocation2 + $0x4fc] ss:$12 sps:$4 sm:$0xff]  }
 0x583   : > { %4270 = vmatpush1.bf16.msra.mxu1 %v13323_v31 }
 0x584   : > { %4271 = vmatprep.subr.bf16.mxu1 %v13328_v32  ;;  %12180 = vmatpush3.bf16.msra.mxu0 %v13368_v1  ;;  %v13384_v1 = vld [vmem:[#allocation2 + $0x510] ss:$12 sps:$4 sm:$0xff]  }
 0x585   : > { %12502 = vmatprep.subr.bf16.mxu0 %v13369_v2 }
 0x587   : > { %4272 = vmatpush1.bf16.msra.mxu1 %v13326_v19 }
 0x588   : > { %4273 = vmatprep.subr.bf16.mxu1 %v13332_v20 }
 0x58b   : > { %4274 = vmatpush1.bf16.msra.mxu1 %v13330_v37 }
 0x58c   : > { %4275 = vmatprep.subr.bf16.mxu1 %v13337_v38 }
 0x58f   : > { %4276 = vmatpush1.bf16.msra.mxu1 %v13335_v39 }
 0x590   : > { %4277 = vmatprep.subr.bf16.mxu1 %v13342_v42 }
 0x593   : > { %4278 = vmatpush1.bf16.msra.mxu1 %v13340_v46 }
 0x594   : > { %4279 = vmatprep.subr.bf16.mxu1 %v13347_v49 }
 0x597   : > { %4280 = vmatpush1.bf16.msra.mxu1 %v13345_v48  ;;  %v13377_v48 = vld [vmem:[#allocation2 + $0x4cc] ss:$12 sps:$4 sm:$0xff]  }
 0x598   : > { %4281 = vmatprep.subr.bf16.mxu1 %v13352_v53 }
 0x59b   : > { %4282 = vmatpush1.bf16.msra.mxu1 %v13350_v55 }
 0x59c   : > { %4283 = vmatprep.subr.bf16.mxu1 %v13357_v57 }
 0x59f   : > { %4284 = vmatpush1.bf16.msra.mxu1 %v13355_v40 }
 0x5a0   : > { %4285 = vmatprep.subr.bf16.mxu1 %v13362_v60 }
 0x5a3   : > { %4286 = vmatpush1.bf16.msra.mxu1 %v13360_v62  ;;  %v13378_v62 = vld [vmem:[#allocation2 + $0x4e0] ss:$12 sps:$4 sm:$0xff]  }
 0x5a4   : > { %4287 = vmatprep.subr.bf16.mxu1 %v13367_v63  ;;  %v13381_v63 = vld [vmem:[#allocation2 + $0x4f8] ss:$12 sps:$4 sm:$0xff]  }
 0x5a7   : > { %4288 = vmatpush1.bf16.msra.mxu1 %v13365_v34  ;;  %v13392_v34 = vld [vmem:[#allocation2 + $0x544] ss:$12 sps:$4 sm:$0xff]  }
 0x5a8   : > { %4308 = vmatprep.subr.bf16.mxu1 %v13372_v4  ;;  %v13393_v4 = vld [vmem:[#allocation2 + $0x558] ss:$12 sps:$4 sm:$0xff]  }
 0x5dd   : > { %v12114_v5 = vpop.f32.mrb[48].mxu0 }
 0x5de   : > { %v12115_v7 = vpop.f32.mrb[49].mxu0 }
 0x5df   : > { %v12116_v9 = vadd.f32 %v12115_v7, %v12114_v5  ;;  %v12117_v30 = vpop.f32.mrb[50].mxu0  ;;  %v13398_v5 = vld [vmem:[#allocation2 + $0x574] ss:$12 sps:$4 sm:$0xff]   ;;  %v13396_v7 = vld [vmem:[#allocation2 + $0x570] ss:$12 sps:$4 sm:$0xff]  }
 0x5e0   : > { %v12118_v13 = vpop.f32.mrb[51].mxu0 }
 0x5e1   : > { %v12119_v14 = vadd.f32 %v12118_v13, %v12117_v30  ;;  %v13403_v30 = vld [vmem:[#allocation2 + $0x4d0] ss:$12 sps:$4 sm:$0xff]   ;;  %v13407_v13 = vld [vmem:[#allocation2 + $0x5a8] ss:$12 sps:$4 sm:$0xff]  }
 0x5e5   : > { %v12120_v15 = vpop.f32.mrb[52].mxu0 }
 0x5e6   : > { %v12121_v16 = vpop.f32.mrb[53].mxu0 }
 0x5e7   : > { %v12122_v18 = vadd.f32 %v12121_v16, %v12120_v15  ;;  %v12123_v11 = vpop.f32.mrb[54].mxu0  ;;  %v13408_v15 = vld [vmem:[#allocation2 + $0x4e8] ss:$12 sps:$4 sm:$0xff]  }
 0x5e8   : > { %v12124_v17 = vpop.f32.mrb[55].mxu0  ;;  %v13411_v16 = vld [vmem:[#allocation2 + $0x5bc] ss:$12 sps:$4 sm:$0xff]   ;;  %v13409_v11 = vld [vmem:[#allocation2 + $0x5b8] ss:$12 sps:$4 sm:$0xff]  }
 0x5e9   : > { %v13413_v17 = vld [vmem:[#allocation2 + $0x500] ss:$12 sps:$4 sm:$0xff]  }
 0x60d   : > { %v12145_v21 = vpop.f32.mrb[60].mxu0 }
 0x60e   : > { %v12146_v24 = vpop.f32.mrb[61].mxu0 }
 0x60f   : > { %v12147_v26 = vadd.f32 %v12146_v24, %v12145_v21  ;;  %v12148_v27 = vpop.f32.mrb[62].mxu0  ;;  %v13414_v21 = vld [vmem:[#allocation2 + $0x5d0] ss:$12 sps:$4 sm:$0xff]   ;;  %v13416_v24 = vld [vmem:[#allocation2 + $0x5d4] ss:$12 sps:$4 sm:$0xff]  }
 0x610   : > { %v12149_v28 = vpop.f32.mrb[63].mxu0 }
 0x611   : > { %v15055_v31 = vadd.f32 %v12147_v26, %v12116_v9  ;;  %v12150_v32 = vadd.f32 %v12149_v28, %v12148_v27  ;;  %v13399_v9 = vld [vmem:[#allocation2 + $0x588] ss:$12 sps:$4 sm:$0xff]   ;;  %v13417_v26 = vld [vmem:[#allocation2 + $0x5d8] ss:$12 sps:$4 sm:$0xff]  }
 0x612   : > { %v13418_v27 = vld [vmem:[#allocation2 + $0x518] ss:$12 sps:$4 sm:$0xff]  }
 0x613   : > { %v15057_v19 = vadd.f32 %v12150_v32, %v12119_v14  ;;  %v13404_v14 = vld [vmem:[#allocation2 + $0x5a0] ss:$12 sps:$4 sm:$0xff]   ;;  %v13422_v32 = vld [vmem:[#allocation2 + $0x5f0] ss:$12 sps:$4 sm:$0xff]  }
 0x614   : > { %v13421_v28 = vld [vmem:[#allocation2 + $0x5ec] ss:$12 sps:$4 sm:$0xff]  }
 0x615   : > { %v12151_v35 = vpop.f32.mrb[64].mxu0 }
 0x616   : > { %v12152_v20 = vpop.f32.mrb[65].mxu0 }
 0x617   : > { %v12153_v36 = vadd.f32 %v12152_v20, %v12151_v35  ;;  %v12154_v37 = vpop.f32.mrb[66].mxu0  ;;  %v13419_v35 = vld [vmem:[#allocation2 + $0x5e8] ss:$12 sps:$4 sm:$0xff]   ;;  %v13423_v20 = vld [vmem:[#allocation2 + $0x530] ss:$12 sps:$4 sm:$0xff]  }
 0x618   : > { %v12155_v25 = vpop.f32.mrb[67].mxu0  ;;  %v13427_v37 = vld [vmem:[#allocation2 + $0x608] ss:$12 sps:$4 sm:$0xff]  }
 0x619   : > { %v15059_v38 = vadd.f32 %v12153_v36, %v12122_v18  ;;  %v13412_v18 = vld [vmem:[#allocation2 + $0x5c0] ss:$12 sps:$4 sm:$0xff]   ;;  %v13426_v36 = vld [vmem:[#allocation2 + $0x604] ss:$12 sps:$4 sm:$0xff]  }
 0x61a   : > { %v13424_v25 = vld [vmem:[#allocation2 + $0x600] ss:$12 sps:$4 sm:$0xff]  }
 0x629   : > { %v3839_v10 = vpop.f32.mrb[68].mxu0 }
 0x62a   : > { %v3841_v39 = vpop.f32.mrb[69].mxu0 }
 0x62b   : > { %v3843_v41 = vpop.f32.mrb[70].mxu0 }
 0x62c   : > { %v3904_v42 = vpack.c.bf16 %v3843_v41, %v3839_v10  ;;  %v3845_v43 = vpop.f32.mrb[71].mxu0  ;;  %v13428_v10 = vld [vmem:[#allocation2 + $0x548] ss:$12 sps:$4 sm:$0xff]   ;;  %v13432_v41 = vld [vmem:[#allocation2 + $0x620] ss:$12 sps:$4 sm:$0xff]  }
 0x62d   : > { %v3905_v46 = vpack.c.bf16 %v3845_v43, %v3841_v39  ;;  %v13431_v39 = vld [vmem:[#allocation2 + $0x61c] ss:$12 sps:$4 sm:$0xff]   ;;  %v13433_v43 = vld [vmem:[#allocation2 + $0x560] ss:$12 sps:$4 sm:$0xff]  }
 0x62f   : > { %4289 = vmatprep.mubr.bf16.mxu1 %v3905_v46  ;;  %4391 = vmatprep.mubr.bf16.mxu0 %v3905_v46  ;;  %v13436_v46 = vld [vmem:[#allocation2 + $0x634] ss:$12 sps:$4 sm:$0xff]  }
 0x630   : > { %4290 = vmatmul.mubr.bf16.vlgmr.msra.gmra.mrb[48].mxu1 %v3904_v42  ;;  %4392 = vmatmul.mubr.bf16.vlgmr.msra.gmra.mrb[80].mxu0 %v3904_v42  ;;  %v13429_v42 = vld [vmem:[#allocation2 + $0x618] ss:$12 sps:$4 sm:$0xff]  }
 0x631   : > { %12503 = vmatpush3.bf16.msra.mxu0 %v13369_v2  ;;  %v3849_v49 = vpop.f32.mrb[72].mxu0  ;;  %4309 = vmatpush1.bf16.msra.mxu1 %v13370_v47  ;;  %v13390_v2 = vld [vmem:[#allocation2 + $0x540] ss:$12 sps:$4 sm:$0xff]   ;;  %v13437_v47 = vld [vmem:[#allocation2 + $0x638] ss:$12 sps:$4 sm:$0xff]  }
 0x632   : > { %4482 = vmatprep.subr.bf16.mxu0 %v14925_v50  ;;  %v3851_v51 = vpop.f32.mrb[73].mxu0  ;;  %4934 = vmatprep.subr.bf16.mxu1 %v13377_v48  ;;  %v3907_v55 = vpack.c.bf16 %v3849_v49, %v3849_v49  ;;  %v13375_v50 = vld [vmem:[#allocation2 + $0x4c8] ss:$12 sps:$4 sm:$0xff]   ;;  %v13434_v48 = vld [vmem:[#allocation2 + $0x630] ss:$12 sps:$4 sm:$0xff]  }
 0x633   : > { %v3908_v52 = vpack.c.bf16 %v3851_v51, %v3851_v51  ;;  %v3853_v53 = vpop.f32.mrb[74].mxu0  ;;  %v13438_v49 = vld [vmem:[#allocation2 + $0x578] ss:$12 sps:$4 sm:$0xff]  }
 0x634   : > { %v3854_v54 = vpop.f32.mrb[75].mxu0  ;;  %v13441_v51 = vld [vmem:[#allocation2 + $0x64c] ss:$12 sps:$4 sm:$0xff]  }
 0x635   : > { %4299 = vmatprep.mubr.bf16.mxu1 %v3908_v52  ;;  %4399 = vmatprep.mubr.bf16.mxu0 %v3908_v52  ;;  %v13442_v52 = vld [vmem:[#allocation2 + $0x650] ss:$12 sps:$4 sm:$0xff]  }
 0x638   : > { %4300 = vmatmul.mubr.bf16.gmra.mrb[52].mxu1 %v3907_v55  ;;  %4400 = vmatmul.mubr.bf16.gmra.mrb[84].mxu0 %v3907_v55 }
 0x639   : > { %v12500_v56 = vpop.f32.mrb[76].mxu0  ;;  %4340 = vmatprep.mubr.bf16.mxu1 %v14106_v0 }
 0x63a   : > { %v3890_v57 = vpop.f32.mrb[77].mxu0  ;;  %v3909_v60 = vpack.c.bf16 %v12500_v56, %v12500_v56 }
 0x63b   : > { %v12501_v58 = vpop.f32.mrb[78].mxu0 }
 0x63c   : > { %v3893_v40 = vpop.f32.mrb[79].mxu0 }
 0x63d   : > { %v3906_v59 = vpack.c.bf16 %v3893_v40, %v3890_v57 }
 0x63f   : > { %12504 = vmatprep.mubr.msk.bf16.mxu0 %vm3106_vm6, %v3906_v59 }
 0x640   : > { %11052 = vmatmul.mubr.msk.bf16.vlgmr.msra.gmra.mrb[48].mxu1 %vm3106_vm6, %v3906_v59  ;;  %12505 = vmatmul.mubr.msk.bf16.vlgmr.msra.gmra.mrb[56].mxu0 %vm3106_vm6, %v3909_v60 }
 0x641   : > { %4483 = vmatpush1.bf16.msra.mxu0 %v14921_v44  ;;  %4350 = vmatprep.mubr.bf16.mxu1 %v14106_v0  ;;  %v13373_v44 = vld [vmem:[%s16727_s3 + $0x24] sm:$0xff]  }
 0x642   : > { %4484 = vmatprep.subr.bf16.mxu0 %v14936_v8  ;;  %4514 = vmatprep.mubr.bf16.mxu0 %v14106_v0  ;;  %v13386_v8 = vld [vmem:[#allocation2 + $0x514] ss:$12 sps:$4 sm:$0xff]  }
 0x643   : > { %4935 = vmatpush1.bf16.msra.mxu1 %v13375_v50 }
 0x644   : > { %4936 = vmatprep.subr.bf16.mxu1 %v13380_v61 }
 0x645   : > { %4485 = vmatpush1.bf16.msra.mxu0 %v14932_v3  ;;  %v13389_v3 = vld [vmem:[#allocation2 + $0x52c] ss:$12 sps:$4 sm:$0xff]  }
 0x646   : > { %11061 = vmatprep.subr.msk.bf16.mxu0 %vm454_vm0, %v14944_v33  ;;  %v13387_v33 = vld [vmem:[#allocation2 + $0x528] ss:$12 sps:$4 sm:$0xff]  }
 0x647   : > { %4937 = vmatpush1.bf16.msra.mxu1 %v13378_v62 }
 0x648   : > { %11053 = vmatmul.mubr.msk.bf16.gmra.mrb[52].mxu1 %vm3106_vm6, %v3909_v60  ;;  %4938 = vmatprep.subr.bf16.mxu1 %v13383_v12 }
 0x649   : > { %4487 = vmatpush1.bf16.msra.mxu0 %v14953_v23  ;;  %v13374_v23 = vld [vmem:[%s16727_s3 + $0x2c] ss:$0 sps:$4 sm:$0x11]  }
 0x64a   : > { %12508 = vmatprep.subr.bf16.mxu0 %v14923_v45 }
 0x64b   : > { %4939 = vmatpush1.bf16.msra.mxu1 %v13381_v63 }
 0x64c   : > { %11062 = vmatmul.mubr.msk.bf16.vlgmr.msra.gmra.mrb[88].mxu0 %vm2453_vm4, %v13373_v44  ;;  %4940 = vmatprep.subr.bf16.mxu1 %v13386_v8 }
 0x64d   : > { %12509 = vmatpush3.bf16.msra.mxu0 %v14923_v45  ;;  %4524 = vmatprep.mubr.bf16.mxu0 %v14106_v0  ;;  %v13395_v45 = vld [vmem:[#allocation2 + $0x55c] ss:$12 sps:$4 sm:$0xff]  }
 0x64e   : > { %12510 = vmatprep.subr.bf16.mxu0 %v14934_v6 }
 0x64f   : > { %4941 = vmatpush1.bf16.msra.mxu1 %v13384_v1 }
 0x650   : > { %4942 = vmatprep.subr.bf16.mxu1 %v13389_v3 }
 0x651   : > { %12511 = vmatpush3.bf16.msra.mxu0 %v14934_v6  ;;  %v13401_v6 = vld [vmem:[#allocation2 + $0x58c] ss:$12 sps:$4 sm:$0xff]  }
 0x652   : > { %12907 = vmatprep.subr.msk.bf16.mxu0 %vm454_vm0, %v14942_v29  ;;  %v13402_v29 = vld [vmem:[#allocation2 + $0x590] ss:$12 sps:$4 sm:$0xff]  }
 0x653   : > { %4943 = vmatpush1.bf16.msra.mxu1 %v13387_v33 }
 0x654   : > { %11063 = vmatmul.mubr.msk.bf16.gmra.mrb[92].mxu0 %vm2453_vm4, %v13374_v23  ;;  %4944 = vmatprep.subr.bf16.mxu1 %v13392_v34  ;;  %v13439_v34 = vld [vmem:[#allocation2 + $0x648] ss:$12 sps:$4 sm:$0xff]  }
 0x655   : > { %12513 = vmatpush3.bf16.msra.mxu0 %v14950_v22  ;;  %12514 = vmatprep.mubr.msk.bf16.mxu0 %vm2453_vm4, %v13373_v44  ;;  %v13406_v22 = vld [vmem:[#allocation2 + $0x5a4] ss:$12 sps:$4 sm:$0xff]  }
 0x656   : > { %12201 = vmatprep.subr.bf16.mxu0 %v13402_v29 }
 0x657   : > { %4945 = vmatpush1.bf16.msra.mxu1 %v13390_v2 }
 0x658   : > { %4946 = vmatprep.subr.bf16.mxu1 %v13395_v45 }
 0x65b   : > { %4947 = vmatpush1.bf16.msra.mxu1 %v13393_v4 }
 0x65c   : > { %12515 = vmatmul.mubr.msk.bf16.vlgmr.msra.gmra.mrb[96].mxu0 %vm2453_vm4, %v13374_v23  ;;  %4948 = vmatprep.subr.bf16.mxu1 %v13398_v5 }
 0x65d   : > { %12202 = vmatpush3.bf16.msra.mxu0 %v13403_v30 }
 0x65e   : > { %12203 = vmatprep.subr.bf16.mxu0 %v13407_v13  ;;  %v13473_v13 = vld [vmem:[%s16730_s6 + $0x1b8] ss:$12 sps:$4 sm:$0xff]  }
 0x65f   : > { %4949 = vmatpush1.bf16.msra.mxu1 %v13396_v7 }
 0x660   : > { %4950 = vmatprep.subr.bf16.mxu1 %v13401_v6 }
 0x661   : > { %12204 = vmatpush3.bf16.msra.mxu0 %v13408_v15  ;;  %v13478_v15 = vld [vmem:[%s16730_s6 + $0x1d0] ss:$12 sps:$4 sm:$0xff]  }
 0x662   : > { %12205 = vmatprep.subr.bf16.mxu0 %v13412_v18  ;;  %v13483_v18 = vld [vmem:[%s16730_s6 + $0x1e8] ss:$12 sps:$4 sm:$0xff]  }
 0x663   : > { %4951 = vmatpush1.bf16.msra.mxu1 %v13399_v9 }
 0x664   : > { %4952 = vmatprep.subr.bf16.mxu1 %v13406_v22  ;;  %v13469_v22 = vld [vmem:[%s16730_s6 + $0x278] ss:$12 sps:$4 sm:$0xff]  }
 0x665   : > { %12206 = vmatpush3.bf16.msra.mxu0 %v13413_v17 }
 0x666   : > { %12207 = vmatprep.subr.bf16.mxu0 %v13417_v26 }
 0x667   : > { %4953 = vmatpush1.bf16.msra.mxu1 %v13404_v14  ;;  %v13474_v14 = vld [vmem:[%s16730_s6 + $0x290] ss:$12 sps:$4 sm:$0xff]  }
 0x668   : > { %4954 = vmatprep.subr.bf16.mxu1 %v13411_v16  ;;  %v13479_v16 = vld [vmem:[%s16730_s6 + $0x2a8] ss:$12 sps:$4 sm:$0xff]  }
 0x669   : > { %12208 = vmatpush3.bf16.msra.mxu0 %v13418_v27 }
 0x66a   : > { %12209 = vmatprep.subr.bf16.mxu0 %v13422_v32 }
 0x66b   : > { %4955 = vmatpush1.bf16.msra.mxu1 %v13409_v11 }
 0x66c   : > { %4956 = vmatprep.subr.bf16.mxu1 %v13416_v24 }
 0x66d   : > { %12210 = vmatpush3.bf16.msra.mxu0 %v13423_v20 }
 0x66e   : > { %12211 = vmatprep.subr.bf16.mxu0 %v13427_v37 }
 0x66f   : > { %4957 = vmatpush1.bf16.msra.mxu1 %v13414_v21 }
 0x670   : > { %4958 = vmatprep.subr.bf16.mxu1 %v13421_v28 }
 0x671   : > { %12212 = vmatpush3.bf16.msra.mxu0 %v13428_v10 }
 0x672   : > { %12213 = vmatprep.subr.bf16.mxu0 %v13432_v41 }
 0x673   : > { %4959 = vmatpush1.bf16.msra.mxu1 %v13419_v35 }
 0x674   : > { %4960 = vmatprep.subr.bf16.mxu1 %v13426_v36 }
 0x675   : > { %12214 = vmatpush3.bf16.msra.mxu0 %v13433_v43 }
 0x676   : > { %12215 = vmatprep.subr.bf16.mxu0 %v13437_v47 }
 0x677   : > { %4961 = vmatpush1.bf16.msra.mxu1 %v13424_v25 }
 0x678   : > { %4962 = vmatprep.subr.bf16.mxu1 %v13431_v39 }
 0x679   : > { %12216 = vmatpush3.bf16.msra.mxu0 %v13438_v49 }
 0x67a   : > { %12518 = vmatprep.subr.bf16.mxu0 %v13442_v52 }
 0x67b   : > { %4963 = vmatpush1.bf16.msra.mxu1 %v13429_v42 }
 0x67c   : > { %4964 = vmatprep.subr.bf16.mxu1 %v13436_v46 }
 0x67f   : > { %4965 = vmatpush1.bf16.msra.mxu1 %v13434_v48 }
 0x680   : > { %4985 = vmatprep.subr.bf16.mxu1 %v13441_v51 }
 0x703   : > { %v12181_v53 = vpop.f32.mrb[80].mxu0 }
 0x704   : > { %v12182_v54 = vpop.f32.mrb[81].mxu0 }
 0x705   : > { %v12183_v55 = vadd.f32 %v12182_v54, %v12181_v53  ;;  %v12184_v56 = vpop.f32.mrb[82].mxu0 }
 0x706   : > { %v12185_v57 = vpop.f32.mrb[83].mxu0 }
 0x707   : > { %v15094_v58 = vadd.f32 %v15055_v31, %v12183_v55  ;;  %v12186_v40 = vadd.f32 %v12185_v57, %v12184_v56 }
 0x709   : > { %v12669_v59 = vadd.f32 %v15057_v19, %v12186_v40 }
 0x70b   : > { %v12187_v60 = vpop.f32.mrb[84].mxu0 }
 0x70c   : > { %v12188_v50 = vpop.f32.mrb[85].mxu0 }
 0x70d   : > { %v12189_v61 = vadd.f32 %v12188_v50, %v12187_v60  ;;  %v12190_v62 = vpop.f32.mrb[86].mxu0 }
 0x70e   : > { %v12191_v12 = vpop.f32.mrb[87].mxu0 }
 0x70f   : > { %v12661_v63 = vadd.f32 %v15059_v38, %v12189_v61 }
 0x71f   : > { %v4516_v44 = vpop.f32.mrb[88].mxu0 }
 0x720   : > { %v4518_v8 = vpop.f32.mrb[89].mxu0 }
 0x721   : > { %v4520_v1 = vpop.f32.mrb[90].mxu0 }
 0x722   : > { %v4581_v3 = vpack.c.bf16 %v4520_v1, %v4516_v44  ;;  %v4522_v33 = vpop.f32.mrb[91].mxu0 }
 0x723   : > { %v4582_v23 = vpack.c.bf16 %v4522_v33, %v4518_v8 }
 0x725   : > { %4966 = vmatprep.mubr.bf16.mxu1 %v4582_v23  ;;  %5068 = vmatprep.mubr.bf16.mxu0 %v4582_v23 }
 0x726   : > { %4967 = vmatmul.mubr.bf16.vlgmr.msra.gmra.mrb[48].mxu1 %v4581_v3  ;;  %5069 = vmatmul.mubr.bf16.vlgmr.msra.gmra.mrb[100].mxu0 %v4581_v3 }
 0x727   : > { %v4526_v31 = vpop.f32.mrb[92].mxu0  ;;  %4986 = vmatpush1.bf16.msra.mxu1 %v13439_v34  ;;  %12519 = vmatpush3.bf16.msra.mxu0 %v13442_v52 }
 0x728   : > { %v4528_v19 = vpop.f32.mrb[93].mxu0  ;;  %v4584_v38 = vpack.c.bf16 %v4526_v31, %v4526_v31  ;;  %12238 = vmatprep.subr.bf16.mxu1 %v13469_v22  ;;  %v13444_v22 = vld [vmem:[%s16729_s5 + $0x8] sm:$0x1f]  }
 0x729   : > { %v4585_v2 = vpack.c.bf16 %v4528_v19, %v4528_v19  ;;  %v4530_v45 = vpop.f32.mrb[94].mxu0 }
 0x72a   : > { %v4531_v4 = vpop.f32.mrb[95].mxu0 }
 0x72b   : > { %4976 = vmatprep.mubr.bf16.mxu1 %v4585_v2  ;;  %5076 = vmatprep.mubr.bf16.mxu0 %v4585_v2 }
 0x72e   : > { %4977 = vmatmul.mubr.bf16.gmra.mrb[52].mxu1 %v4584_v38  ;;  %5077 = vmatmul.mubr.bf16.gmra.mrb[104].mxu0 %v4584_v38 }
 0x72f   : > { %v12516_v5 = vpop.f32.mrb[96].mxu0  ;;  %5017 = vmatprep.mubr.bf16.mxu1 %v14106_v0 }
 0x730   : > { %v4567_v7 = vpop.f32.mrb[97].mxu0  ;;  %v4586_v30 = vpack.c.bf16 %v12516_v5, %v12516_v5 }
 0x731   : > { %v12517_v6 = vpop.f32.mrb[98].mxu0 }
 0x732   : > { %v4570_v29 = vpop.f32.mrb[99].mxu0 }
 0x733   : > { %v4583_v9 = vpack.c.bf16 %v4570_v29, %v4567_v7  ;;  %v13443_v7 = vld [vmem:[%s16729_s5] sm:$0x1f]   ;;  %v14107_v29 = vmov 0.0  }
 0x735   : > { %12520 = vmatprep.mubr.msk.bf16.mxu0 %vm3106_vm6, %v4583_v9 }
 0x736   : > { %11117 = vmatmul.mubr.msk.bf16.vlgmr.msra.gmra.mrb[48].mxu1 %vm3106_vm6, %v4583_v9  ;;  %12521 = vmatmul.mubr.msk.bf16.vlgmr.msra.gmra.mrb[56].mxu0 %vm3106_vm6, %v4586_v30 }
 0x737   : > { %5027 = vmatprep.mubr.bf16.mxu1 %v14106_v0  ;;  %5226 = vmatprep.mubr.bf16.mxu0 %v14106_v0 }
 0x738   : > { %12239 = vmatpush3.bf16.msra.mxu1 %v13473_v13  ;;  %v13447_v13 = vld [vmem:[%s16730_s6 + $0x1b4] ss:$12 sps:$4 sm:$0xff]  }
 0x739   : > { %12240 = vmatprep.subr.bf16.mxu1 %v13474_v14  ;;  %v13445_v14 = vld [vmem:[%s16730_s6 + $0x1b0] ss:$12 sps:$4 sm:$0xff]  }
 0x73c   : > { %12241 = vmatpush3.bf16.msra.mxu1 %v13478_v15  ;;  %v13450_v15 = vld [vmem:[%s16730_s6 + $0x1cc] ss:$12 sps:$4 sm:$0xff]  }
 0x73d   : > { %12242 = vmatprep.subr.bf16.mxu1 %v13479_v16  ;;  %v13448_v16 = vld [vmem:[%s16730_s6 + $0x1c8] ss:$12 sps:$4 sm:$0xff]  }
 0x73e   : > { %11118 = vmatmul.mubr.msk.bf16.gmra.mrb[52].mxu1 %vm3106_vm6, %v4586_v30 }
 0x740   : > { %12243 = vmatpush3.bf16.msra.mxu1 %v13483_v18  ;;  %v13453_v18 = vld [vmem:[%s16730_s6 + $0x1e4] ss:$12 sps:$4 sm:$0xff]  }
 0x7f9   : > { %v12217_v11 = vpop.f32.mrb[100].mxu0 }
 0x7fa   : > { %v12218_v17 = vpop.f32.mrb[101].mxu0 }
 0x7fb   : > { %v12219_v21 = vadd.f32 %v12218_v17, %v12217_v11  ;;  %v12220_v24 = vpop.f32.mrb[102].mxu0  ;;  %v13451_v11 = vld [vmem:[%s16730_s6 + $0x1e0] ss:$12 sps:$4 sm:$0xff]   ;;  %v13456_v17 = vld [vmem:[%s16730_s6 + $0x1fc] ss:$12 sps:$4 sm:$0xff]  }
 0x7fc   : > { %v12221_v26 = vpop.f32.mrb[103].mxu0 }
 0x7fd   : > { %v12222_v27 = vadd.f32 %v12221_v26, %v12220_v24  ;;  %v12666_v28 = vadd.f32 %v15094_v58, %v12219_v21  ;;  %v13454_v21 = vld [vmem:[%s16730_s6 + $0x1f8] ss:$12 sps:$4 sm:$0xff]   ;;  %v13459_v24 = vld [vmem:[%s16730_s6 + $0x214] ss:$12 sps:$4 sm:$0xff]   ;;  %v13457_v26 = vld [vmem:[%s16730_s6 + $0x210] ss:$12 sps:$4 sm:$0xff]  }
 0x7ff   : > { %v12670_v32 = vadd.f32 %v12669_v59, %v12222_v27  ;;  %v13462_v27 = vld [vmem:[%s16730_s6 + $0x22c] ss:$12 sps:$4 sm:$0xff]  }
 0x801   : > { %v12223_v35 = vpop.f32.mrb[104].mxu0 }
 0x802   : > { %v12224_v20 = vpop.f32.mrb[105].mxu0 }
 0x803   : > { %v12225_v36 = vadd.f32 %v12224_v20, %v12223_v35  ;;  %v12226_v37 = vpop.f32.mrb[106].mxu0  ;;  %v13463_v35 = vld [vmem:[%s16730_s6 + $0x240] ss:$12 sps:$4 sm:$0xff]   ;;  %v13468_v20 = vld [vmem:[%s16730_s6 + $0x25c] ss:$12 sps:$4 sm:$0xff]  }
 0x804   : > { %v12227_v25 = vpop.f32.mrb[107].mxu0  ;;  %v13472_v37 = vld [vmem:[%s16730_s6 + $0x274] ss:$12 sps:$4 sm:$0xff]  }
 0x805   : > { %v12662_v10 = vadd.f32 %v12661_v63, %v12225_v36  ;;  %v13466_v36 = vld [vmem:[%s16730_s6 + $0x258] ss:$12 sps:$4 sm:$0xff]   ;;  %v13470_v25 = vld [vmem:[%s16730_s6 + $0x270] ss:$12 sps:$4 sm:$0xff]  }
 0x809   : > { %v5019_v39 = vpop.f32.mrb[48].mxu1  ;;  %v12522_v41 = vpop.f32.mrb[56].mxu0 }
 0x80a   : > { %v12663_v42 = vadd.f32 %v12662_v10, %v12522_v41  ;;  %v5021_v43 = vpop.f32.mrb[49].mxu1  ;;  %v5118_v46 = vpop.f32.mrb[57].mxu0  ;;  %v5150_v47 = vmul.f32 0.2, %v5019_v39  ;;  %vm5141_vm4 = vcmp.ge.f32.partialorder %v5019_v39, 0.0 }
 0x80b   : > { %v5151_v48 = vmul.f32 0.2, %v5021_v43  ;;  %v12667_v49 = vadd.f32 %v12666_v28, %v5118_v46  ;;  %v5023_v51 = vpop.f32.mrb[50].mxu1  ;;  %v12523_v52 = vpop.f32.mrb[58].mxu0  ;;  %vm5142_vm7 = vcmp.ge.f32.partialorder %v5021_v43, 0.0 }
 0x80c   : > { %vm5144_vm8 = vcmp.ge.f32.partialorder %v5023_v51, 0.0  ;;  %v5025_v53 = vpop.f32.mrb[51].mxu1  ;;  %v5121_v54 = vpop.f32.mrb[59].mxu0  ;;  %v5153_v55 = vmul.f32 0.2, %v5023_v51  ;;  %v5159_v40 = vsel %vm5141_vm4, %v5019_v39, %v5150_v47  ;;  %vm5149_vm14 = vcmp.ge.f32.partialorder %v12663_v42, 0.0 }
 0x80d   : > { %v5152_v56 = vmul.f32 0.2, %v12667_v49  ;;  %vm5145_vm9 = vcmp.ge.f32.partialorder %v5025_v53, 0.0  ;;  %v5154_v57 = vmul.f32 0.2, %v5025_v53  ;;  %v12671_v58 = vadd.f32 %v12670_v32, %v5121_v54 }
 0x80e   : > { %v5160_v59 = vsel %vm5142_vm7, %v5021_v43, %v5151_v48  ;;  %vm5143_vm10 = vcmp.ge.f32.partialorder %v12667_v49, 0.0  ;;  %v5162_v60 = vsel %vm5144_vm8, %v5023_v51, %v5153_v55  ;;  %v5158_v2 = vmul.f32 0.2, %v12663_v42  ;;  %v13460_v28 = vld [vmem:[%s16730_s6 + $0x228] ss:$12 sps:$4 sm:$0xff]  }
 0x80f   : > { %v15124_v50 = vpack.c.bf16 %v5162_v60, %v5159_v40  ;;  %v5163_v61 = vsel %vm5145_vm9, %v5025_v53, %v5154_v57  ;;  %vm5146_vm11 = vcmp.ge.f32.partialorder %v12671_v58, 0.0  ;;  %v5155_v62 = vmul.f32 0.2, %v12671_v58  ;;  %v13465_v32 = vld [vmem:[%s16730_s6 + $0x244] ss:$12 sps:$4 sm:$0xff]  }
 0x810   : > { %v15126_v12 = vpack.c.bf16 %v5163_v61, %v5160_v59  ;;  %v5161_v44 = vsel %vm5143_vm10, %v12667_v49, %v5152_v56  ;;  %v5167_v6 = vsel %vm5149_vm14, %v12663_v42, %v5158_v2  ;;  %v13477_v10 = vld [vmem:[%s16730_s6 + $0x28c] ss:$12 sps:$4 sm:$0xff]   ;;  %v13475_v39 = vld [vmem:[%s16730_s6 + $0x288] ss:$12 sps:$4 sm:$0xff]   ;;  %v13482_v41 = vld [vmem:[%s16730_s6 + $0x2a4] ss:$12 sps:$4 sm:$0xff]  }
 0x811   : > { %v5029_v63 = vpop.f32.mrb[52].mxu1  ;;  %v5164_v8 = vsel %vm5146_vm11, %v12671_v58, %v5155_v62  ;;  %v5173_v9 = vpack.c.bf16 %v5167_v6, %v5167_v6  ;;  %v13480_v42 = vld [vmem:[%s16730_s6 + $0x2a0] ss:$12 sps:$4 sm:$0xff]   ;;  %v13487_v46 = vld [vmem:[%s16730_s6 + $0x2bc] ss:$12 sps:$4 sm:$0xff]   ;;  %vm7741_vm8 = vcmask 1044480  }
 0x812   : > { %vm5147_vm12 = vcmp.ge.f32.partialorder %v5029_v63, 0.0  ;;  %v5156_v1 = vmul.f32 0.2, %v5029_v63  ;;  %v5031_v3 = vpop.f32.mrb[53].mxu1  ;;  %v15128_v33 = vpack.c.bf16 %v5164_v8, %v5161_v44  ;;  %5194 = vmatprep.subr.bf16.mxu0 %v15126_v12  ;;  %v13484_v43 = vld [vmem:[%s16730_s6 + $0x2c0] ss:$12 sps:$4 sm:$0xff]  }
 0x813   : > { %vm5148_vm13 = vcmp.ge.f32.partialorder %v5031_v3, 0.0  ;;  %v5157_v23 = vmul.f32 0.2, %v5031_v3  ;;  %v5033_v34 = vpop.f32.mrb[54].mxu1  ;;  %5195 = vmatpush1.bf16.msra.mxu0 %v15124_v50  ;;  %v15150_v30 = vsel %vm454_vm0, %v5173_v9, 0  ;;  %12244 = vmatprep.subr.bf16.mxu1 %v13484_v43  ;;  %vm7737_vm9 = vcmask 80896  }
 0x814   : > { %v5165_v31 = vsel %vm5147_vm12, %v5029_v63, %v5156_v1  ;;  %v5034_v19 = vpop.f32.mrb[55].mxu1  ;;  %v13488_v47 = vld [vmem:[%s16730_s6 + $0x200] ss:$12 sps:$4 sm:$0xff]   ;;  %v13485_v48 = vld [vmem:[%s16730_s6 + $0x2b8] ss:$12 sps:$4 sm:$0xff]   ;;  %vm8405_vm10 = vcmask 523264  }
 0x815   : > { %v5171_v45 = vpack.c.bf16 %v5165_v31, %v5165_v31  ;;  %v5166_v4 = vsel %vm5148_vm13, %v5031_v3, %v5157_v23  ;;  %12245 = vmatpush3.bf16.msra.mxu1 %v13488_v47  ;;  %v13489_v49 = vld [vmem:[%s16730_s6 + $0x2d8] ss:$12 sps:$4 sm:$0xff]   ;;  %v13492_v51 = vld [vmem:[%s16730_s6 + $0x2d4] ss:$12 sps:$4 sm:$0xff]   ;;  %v13490_v52 = vld [vmem:[%s16730_s6 + $0x2d0] ss:$12 sps:$4 sm:$0xff]  }
 0x816   : > { %v15132_v38 = vpack.c.bf16 %v5166_v4, %v5166_v4  ;;  %v13493_v53 = vld [vmem:[%s16730_s6 + $0x218] ss:$12 sps:$4 sm:$0xff]   ;;  %12246 = vmatprep.subr.bf16.mxu1 %v13489_v49  ;;  %v13494_v54 = vld [vmem:[%s16730_s6 + $0x2f0] ss:$12 sps:$4 sm:$0xff]   ;;  %v13495_v57 = vld [vmem:[%s16730_s6 + $0x2e8] ss:$12 sps:$4 sm:$0xff]  }
 0x817   : > { %v15135_v5 = vsel %vm454_vm0, %v5171_v45, 0  ;;  %v13497_v55 = vld [vmem:[%s16730_s6 + $0x2ec] ss:$12 sps:$4 sm:$0xff]   ;;  %v13498_v56 = vld [vmem:[%s16730_s6 + $0x230] ss:$12 sps:$4 sm:$0xff]   ;;  %vm10393_vm14 = vcmask 1045504  }
 0x818   : > { %11122 = vmatprep.subr.msk.bf16.mxu0 %vm454_vm0, %v15132_v38  ;;  %v13499_v58 = vld [vmem:[%s16730_s6 + $0x308] ss:$12 sps:$4 sm:$0xff]   ;;  %v13502_v40 = vld [vmem:[%s16730_s6 + $0x304] ss:$12 sps:$4 sm:$0xff]   ;;  %v13500_v60 = vld [vmem:[%s16730_s6 + $0x300] ss:$12 sps:$4 sm:$0xff]  }
 0x819   : > { %5197 = vmatpush1.bf16.msra.mxu0 %v15135_v5  ;;  %12247 = vmatpush3.bf16.msra.mxu1 %v13493_v53  ;;  %v13503_v59 = vld [vmem:[%s16730_s6 + $0x248] ss:$12 sps:$4 sm:$0xff]   ;;  %v13504_v61 = vld [vmem:[%s16730_s6 + $0x320] ss:$12 sps:$4 sm:$0xff]   ;;  %v13505_v44 = vld [vmem:[%s16730_s6 + $0x318] ss:$12 sps:$4 sm:$0xff]  }
 0x81a   : > { %12524 = vmatprep.subr.bf16.mxu0 %v14107_v29  ;;  %12248 = vmatprep.subr.bf16.mxu1 %v13494_v54  ;;  %v13507_v62 = vld [vmem:[%s16730_s6 + $0x31c] ss:$12 sps:$4 sm:$0xff]   ;;  %v13508_v63 = vld [vmem:[%s16730_s6 + $0x260] ss:$12 sps:$4 sm:$0xff]   ;;  %v13533_v47 = vld [vmem:[%s16730_s6 + $0x64] ss:$12 sps:$4 sm:$0xff]  }
 0x81b   : > { %v13512_v8 = vld [vmem:[%s16730_s6 + $0x334] ss:$12 sps:$4 sm:$0xff]   ;;  %v13530_v43 = vld [vmem:[%s16730_s6 + $0x4c] ss:$12 sps:$4 sm:$0xff]   ;;  %v13538_v54 = vld [vmem:[%s16730_s6 + $0x90] ss:$12 sps:$4 sm:$0xff]  }
 0x81c   : > { %11123 = vmatmul.mubr.msk.bf16.vlgmr.msra.gmra.mrb[108].mxu0 %vm5181_vm15, %v13443_v7  ;;  %v13531_v49 = vld [vmem:[%s16730_s6 + $0x60] ss:$12 sps:$4 sm:$0xff]  }
 0x81d   : > { %12525 = vmatpush3.bf16.msra.mxu0 %v15128_v33  ;;  %12528 = vmatprep.mubr.msk.bf16.mxu0 %vm14108_vm1, %v14107_v29  ;;  %v13540_v53 = vld [vmem:[%s16730_s6 + $0x94] ss:$12 sps:$4 sm:$0xff]  }
 0x81e   : > { %12526 = vmatprep.subr.bf16.mxu0 %v14107_v29  ;;  %12249 = vmatpush3.bf16.msra.mxu1 %v13498_v56  ;;  %v13541_v56 = vld [vmem:[%s16730_s6 + $0xa8] ss:$12 sps:$4 sm:$0xff]  }
 0x81f   : > { %12250 = vmatprep.subr.bf16.mxu1 %v13499_v58  ;;  %v13544_v58 = vld [vmem:[%s16730_s6 + $0xc0] ss:$12 sps:$4 sm:$0xff]  }
 0x821   : > { %12527 = vmatpush3.bf16.msra.mxu0 %v15150_v30 }
 0x822   : > { %5364 = vmatprep.subr.bf16.mxu0 %v15126_v12  ;;  %12251 = vmatpush3.bf16.msra.mxu1 %v13503_v59  ;;  %v13547_v59 = vld [vmem:[%s16730_s6 + $0xd8] ss:$12 sps:$4 sm:$0xff]  }
 0x823   : > { %12252 = vmatprep.subr.bf16.mxu1 %v13504_v61  ;;  %v13550_v61 = vld [vmem:[%s16730_s6 + $0xf0] ss:$12 sps:$4 sm:$0xff]  }
 0x824   : > { %12529 = vmatmul.mubr.msk.bf16.vlgmr.msra.gmra.mrb[112].mxu0 %vm5181_vm15, %v13443_v7 }
 0x825   : > { %5365 = vmatpush1.bf16.msra.mxu0 %v15124_v50  ;;  %5396 = vmatprep.mubr.bf16.mxu0 %v14106_v0 }
 0x826   : > { %11128 = vmatprep.subr.msk.bf16.mxu0 %vm454_vm0, %v15132_v38  ;;  %12253 = vmatpush3.bf16.msra.mxu1 %v13508_v63  ;;  %v13553_v63 = vld [vmem:[%s16730_s6 + $0x108] ss:$12 sps:$4 sm:$0xff]  }
 0x827   : > { %12540 = vmatprep.subr.bf16.mxu1 %v14107_v29 }
 0x829   : > { %5367 = vmatpush1.bf16.msra.mxu0 %v15135_v5 }
 0x82a   : > { %12532 = vmatprep.subr.bf16.mxu0 %v14107_v29 }
 0x82c   : > { %11129 = vmatmul.mubr.msk.bf16.vlgmr.msra.gmra.mrb[116].mxu0 %vm5181_vm15, %v13444_v22 }
 0x82d   : > { %12533 = vmatpush3.bf16.msra.mxu0 %v15128_v33  ;;  %12536 = vmatprep.mubr.msk.bf16.mxu0 %vm14108_vm1, %v14107_v29 }
 0x82e   : > { %12534 = vmatprep.subr.bf16.mxu0 %v14107_v29 }
 0x831   : > { %12535 = vmatpush3.bf16.msra.mxu0 %v15150_v30 }
 0x832   : > { %5816 = vmatprep.subr.bf16.mxu0 %v13447_v13 }
 0x834   : > { %12537 = vmatmul.mubr.msk.bf16.vlgmr.msra.gmra.mrb[120].mxu0 %vm5181_vm15, %v13444_v22 }
 0x835   : > { %5817 = vmatpush1.bf16.msra.mxu0 %v13445_v14 }
 0x836   : > { %5818 = vmatprep.subr.bf16.mxu0 %v13450_v15 }
 0x839   : > { %5819 = vmatpush1.bf16.msra.mxu0 %v13448_v16 }
 0x83a   : > { %5820 = vmatprep.subr.bf16.mxu0 %v13453_v18  ;;  %v13509_v18 = vld [vmem:[%s16730_s6 + $0x338] ss:$12 sps:$4 sm:$0xff]  }
 0x83d   : > { %5821 = vmatpush1.bf16.msra.mxu0 %v13451_v11  ;;  %v13510_v11 = vld [vmem:[%s16730_s6 + $0x330] ss:$12 sps:$4 sm:$0xff]  }
 0x83e   : > { %5822 = vmatprep.subr.bf16.mxu0 %v13456_v17  ;;  %v13516_v17 = vld [vmem:[%s16730_s6 + $0x34c] ss:$12 sps:$4 sm:$0xff]  }
 0x841   : > { %5823 = vmatpush1.bf16.msra.mxu0 %v13454_v21 }
 0x842   : > { %5824 = vmatprep.subr.bf16.mxu0 %v13459_v24  ;;  %v13513_v24 = vld [vmem:[%s16730_s6 + $0x350] ss:$12 sps:$4 sm:$0xff]  }
 0x845   : > { %5825 = vmatpush1.bf16.msra.mxu0 %v13457_v26  ;;  %v13514_v26 = vld [vmem:[%s16730_s6 + $0x348] ss:$12 sps:$4 sm:$0xff]  }
 0x846   : > { %5826 = vmatprep.subr.bf16.mxu0 %v13462_v27 }
 0x849   : > { %5827 = vmatpush1.bf16.msra.mxu0 %v13460_v28  ;;  %v13520_v28 = vld [vmem:[%s16730_s6 + $0x4] ss:$12 sps:$4 sm:$0xff]  }
 0x84a   : > { %5828 = vmatprep.subr.bf16.mxu0 %v13465_v32 }
 0x84d   : > { %5829 = vmatpush1.bf16.msra.mxu0 %v13463_v35 }
 0x84e   : > { %5830 = vmatprep.subr.bf16.mxu0 %v13468_v20 }
 0x851   : > { %5831 = vmatpush1.bf16.msra.mxu0 %v13466_v36  ;;  %v13517_v36 = vld [vmem:[%s16730_s6 + $0x188] ss:$12 sps:$4 sm:$0xff]  }
 0x852   : > { %5832 = vmatprep.subr.bf16.mxu0 %v13472_v37  ;;  %v13518_v37 = vld [vmem:[%s16730_s6] ss:$12 sps:$4 sm:$0xff]  }
 0x855   : > { %5833 = vmatpush1.bf16.msra.mxu0 %v13470_v25  ;;  %v13521_v25 = vld [vmem:[%s16730_s6 + $0x1a0] ss:$12 sps:$4 sm:$0xff]  }
 0x856   : > { %5834 = vmatprep.subr.bf16.mxu0 %v13477_v10  ;;  %v13524_v10 = vld [vmem:[%s16730_s6 + $0x1c] ss:$12 sps:$4 sm:$0xff]  }
 0x859   : > { %5835 = vmatpush1.bf16.msra.mxu0 %v13475_v39  ;;  %v13522_v39 = vld [vmem:[%s16730_s6 + $0x18] ss:$12 sps:$4 sm:$0xff]  }
 0x85a   : > { %5836 = vmatprep.subr.bf16.mxu0 %v13482_v41  ;;  %v13527_v41 = vld [vmem:[%s16730_s6 + $0x34] ss:$12 sps:$4 sm:$0xff]  }
 0x85d   : > { %5837 = vmatpush1.bf16.msra.mxu0 %v13480_v42  ;;  %v13525_v42 = vld [vmem:[%s16730_s6 + $0x30] ss:$12 sps:$4 sm:$0xff]  }
 0x85e   : > { %5838 = vmatprep.subr.bf16.mxu0 %v13487_v46  ;;  %v13528_v46 = vld [vmem:[%s16730_s6 + $0x48] ss:$12 sps:$4 sm:$0xff]  }
 0x861   : > { %5839 = vmatpush1.bf16.msra.mxu0 %v13485_v48  ;;  %v13534_v48 = vld [vmem:[%s16729_s5 + $0x10] sm:$0x1f]  }
 0x862   : > { %5840 = vmatprep.subr.bf16.mxu0 %v13492_v51  ;;  %v13537_v51 = vld [vmem:[%s16730_s6 + $0x7c] ss:$12 sps:$4 sm:$0xff]  }
 0x865   : > { %5841 = vmatpush1.bf16.msra.mxu0 %v13490_v52  ;;  %v13535_v52 = vld [vmem:[%s16730_s6 + $0x78] ss:$12 sps:$4 sm:$0xff]  }
 0x866   : > { %5842 = vmatprep.subr.bf16.mxu0 %v13497_v55  ;;  %v13543_v55 = vld [vmem:[%s16730_s6 + $0xac] ss:$12 sps:$4 sm:$0xff]  }
 0x869   : > { %5843 = vmatpush1.bf16.msra.mxu0 %v13495_v57  ;;  %v13546_v57 = vld [vmem:[%s16730_s6 + $0xc4] ss:$12 sps:$4 sm:$0xff]  }
 0x86a   : > { %5844 = vmatprep.subr.bf16.mxu0 %v13502_v40  ;;  %v13549_v40 = vld [vmem:[%s16730_s6 + $0xdc] ss:$12 sps:$4 sm:$0xff]  }
 0x86d   : > { %5845 = vmatpush1.bf16.msra.mxu0 %v13500_v60  ;;  %v13552_v60 = vld [vmem:[%s16730_s6 + $0xf4] ss:$12 sps:$4 sm:$0xff]  }
 0x86e   : > { %5846 = vmatprep.subr.bf16.mxu0 %v13507_v62  ;;  %v13555_v62 = vld [vmem:[%s16730_s6 + $0x10c] ss:$12 sps:$4 sm:$0xff]  }
 0x871   : > { %5847 = vmatpush1.bf16.msra.mxu0 %v13505_v44  ;;  %v13558_v44 = vld [vmem:[%s16730_s6 + $0x124] ss:$12 sps:$4 sm:$0xff]  }
 0x872   : > { %5859 = vmatprep.subr.bf16.mxu0 %v13512_v8  ;;  %v13556_v8 = vld [vmem:[%s16730_s6 + $0x120] ss:$12 sps:$4 sm:$0xff]  }
 0x8ef   : > { %v5228_v1 = vpop.f32.mrb[108].mxu0 }
 0x8f0   : > { %v5230_v3 = vpop.f32.mrb[109].mxu0 }
 0x8f1   : > { %v5232_v23 = vpop.f32.mrb[110].mxu0 }
 0x8f2   : > { %v15301_v34 = vpack.c.bf16 %v5232_v23, %v5228_v1  ;;  %v5234_v31 = vpop.f32.mrb[111].mxu0  ;;  %v13561_v1 = vld [vmem:[%s16730_s6 + $0x13c] ss:$12 sps:$4 sm:$0xff]   ;;  %v13564_v23 = vld [vmem:[%s16730_s6 + $0x154] ss:$12 sps:$4 sm:$0xff]  }
 0x8f3   : > { %v15303_v19 = vpack.c.bf16 %v5234_v31, %v5230_v3  ;;  %v13559_v3 = vld [vmem:[%s16730_s6 + $0x138] ss:$12 sps:$4 sm:$0xff]   ;;  %v13562_v31 = vld [vmem:[%s16730_s6 + $0x150] ss:$12 sps:$4 sm:$0xff]  }
 0x8f7   : > { %v5271_v2 = vpop.f32.mrb[112].mxu0 }
 0x8f8   : > { %v12530_v45 = vpop.f32.mrb[113].mxu0 }
 0x8f9   : > { %v5274_v4 = vpop.f32.mrb[114].mxu0  ;;  %v13565_v45 = vld [vmem:[%s16730_s6 + $0x168] ss:$12 sps:$4 sm:$0xff]  }
 0x8fa   : > { %v15305_v7 = vpack.c.bf16 %v5274_v4, %v5271_v2  ;;  %v12531_v6 = vpop.f32.mrb[115].mxu0  ;;  %v13567_v2 = vld [vmem:[%s16730_s6 + $0x16c] ss:$12 sps:$4 sm:$0xff]   ;;  %v13570_v4 = vld [vmem:[%s16730_s6 + $0x184] ss:$12 sps:$4 sm:$0xff]  }
 0x8fb   : > { %v13568_v6 = vld [vmem:[%s16730_s6 + $0x180] ss:$12 sps:$4 sm:$0xff]  }
 0x8ff   : > { %v5398_v9 = vpop.f32.mrb[116].mxu0 }
 0x900   : > { %v5400_v22 = vpop.f32.mrb[117].mxu0 }
 0x901   : > { %v5402_v13 = vpop.f32.mrb[118].mxu0 }
 0x902   : > { %v5448_v14 = vpack.c.bf16 %v5402_v13, %v5398_v9  ;;  %v5404_v15 = vpop.f32.mrb[119].mxu0  ;;  %v13573_v9 = vld [vmem:[%s16730_s6 + $0x19c] ss:$12 sps:$4 sm:$0xff]  }
 0x903   : > { %v5449_v16 = vpack.c.bf16 %v5404_v15, %v5400_v22  ;;  %v13571_v22 = vld [vmem:[%s16730_s6 + $0x198] ss:$12 sps:$4 sm:$0xff]   ;;  %v13574_v13 = vld [vmem:[%s16730_s6 + $0xc8] ss:$12 sps:$4 sm:$0xff]  }
 0x904   : > { %v13614_v15 = vld [vmem:[%s16730_s6 + $0x428] ss:$12 sps:$4 sm:$0xff]  }
 0x905   : > { %5848 = vmatprep.mubr.bf16.mxu0 %v5449_v16  ;;  %5934 = vmatprep.mubr.bf16.mxu1 %v5449_v16  ;;  %v13576_v16 = vld [vmem:[%s16730_s6 + $0xe0] ss:$12 sps:$4 sm:$0xff]  }
 0x906   : > { %5849 = vmatmul.mubr.bf16.vlgmr.msra.gmra.mrb[124].mxu0 %v5448_v14  ;;  %5935 = vmatmul.mubr.bf16.vlgmr.msra.gmra.mrb[56].mxu1 %v5448_v14  ;;  %v13575_v14 = vld [vmem:[%s16730_s6 + $0x8] ss:$12 sps:$4 sm:$0xff]  }
 0x907   : > { %12541 = vmatpush3.bf16.msra.mxu1 %v13509_v18  ;;  %v5441_v21 = vpop.f32.mrb[120].mxu0  ;;  %5860 = vmatpush1.bf16.msra.mxu0 %v13510_v11  ;;  %v13618_v18 = vld [vmem:[%s16730_s6 + $0x368] ss:$12 sps:$4 sm:$0xff]   ;;  %v13619_v11 = vld [vmem:[%s16730_s6 + $0x440] ss:$12 sps:$4 sm:$0xff]  }
 0x908   : > { %v12538_v27 = vpop.f32.mrb[121].mxu0  ;;  %12542 = vmatprep.subr.bf16.mxu1 %v14107_v29  ;;  %5861 = vmatprep.subr.bf16.mxu0 %v13516_v17  ;;  %v13623_v17 = vld [vmem:[%s16730_s6 + $0x380] ss:$12 sps:$4 sm:$0xff]  }
 0x909   : > { %v5444_v32 = vpop.f32.mrb[122].mxu0  ;;  %12544 = vmatprep.mubr.msk.bf16.mxu1 %vm14108_vm1, %v14107_v29  ;;  %5891 = vmatprep.mubr.bf16.mxu0 %v14106_v0  ;;  %v13629_v27 = vld [vmem:[%s16730_s6 + $0x470] ss:$12 sps:$4 sm:$0xff]  }
 0x90a   : > { %v5450_v35 = vpack.c.bf16 %v5444_v32, %v5441_v21  ;;  %v12539_v20 = vpop.f32.mrb[123].mxu0  ;;  %v13577_v21 = vld [vmem:[%s16730_s6 + $0x20] ss:$12 sps:$4 sm:$0xff]   ;;  %v13633_v32 = vld [vmem:[%s16730_s6 + $0x3b0] ss:$12 sps:$4 sm:$0xff]  }
 0x90b   : > { %12543 = vmatpush3.bf16.msra.mxu1 %v13513_v24  ;;  %5862 = vmatpush1.bf16.msra.mxu0 %v13514_v26  ;;  %v13624_v24 = vld [vmem:[%s16730_s6 + $0x458] ss:$12 sps:$4 sm:$0xff]   ;;  %v13634_v20 = vld [vmem:[%s16730_s6 + $0x488] ss:$12 sps:$4 sm:$0xff]  }
 0x90c   : > { %12548 = vmatprep.subr.bf16.mxu1 %v14107_v29  ;;  %6275 = vmatprep.subr.bf16.mxu0 %v13520_v28  ;;  %v13628_v26 = vld [vmem:[%s16730_s6 + $0x398] ss:$12 sps:$4 sm:$0xff]   ;;  %v13580_v28 = vld [vmem:[%s16730_s6 + $0x110] ss:$12 sps:$4 sm:$0xff]  }
 0x90e   : > { %12545 = vmatmul.mubr.msk.bf16.vlgmr.msra.gmra.mrb[60].mxu1 %vm5812_vm2, %v5450_v35 }
 0x90f   : > { %12549 = vmatpush3.bf16.msra.mxu1 %v13517_v36  ;;  %12552 = vmatprep.mubr.msk.bf16.mxu1 %vm14108_vm1, %v14107_v29  ;;  %v13582_v36 = vld [vmem:[%s16730_s6 + $0x128] ss:$12 sps:$4 sm:$0xff]  }
 0x910   : > { %12550 = vmatprep.subr.bf16.mxu1 %v14107_v29 }
 0x912   : > { %11257 = vmatmul.mubr.msk.bf16.vlgmr.msra.gmra.mrb[124].mxu0 %vm5812_vm2, %v5450_v35  ;;  %v13581_v35 = vld [vmem:[%s16730_s6 + $0x50] ss:$12 sps:$4 sm:$0xff]  }
 0x913   : > { %6276 = vmatpush1.bf16.msra.mxu0 %v13518_v37  ;;  %12551 = vmatpush3.bf16.msra.mxu1 %v13521_v25  ;;  %v13638_v37 = vld [vmem:[%s16730_s6 + $0x3c8] ss:$12 sps:$4 sm:$0xff]  }
 0x914   : > { %6307 = vmatprep.mubr.bf16.mxu0 %v15303_v19  ;;  %6454 = vmatprep.subr.bf16.mxu1 %v15126_v12  ;;  %v13583_v25 = vld [vmem:[%s16730_s6 + $0x68] ss:$12 sps:$4 sm:$0xff]  }
 0x915   : > { %6277 = vmatprep.subr.bf16.mxu0 %v13524_v10  ;;  %v13639_v10 = vld [vmem:[%s16730_s6 + $0x4a0] ss:$12 sps:$4 sm:$0xff]  }
 0x917   : > { %6278 = vmatpush1.bf16.msra.mxu0 %v13522_v39  ;;  %v13584_v39 = vld [vmem:[%s16730_s6 + $0x140] ss:$12 sps:$4 sm:$0xff]  }
 0x918   : > { %6279 = vmatprep.subr.bf16.mxu0 %v13527_v41  ;;  %v13643_v41 = vld [vmem:[%s16730_s6 + $0x3e0] ss:$12 sps:$4 sm:$0xff]  }
 0x91a   : > { %12553 = vmatmul.mubr.msk.bf16.vlgmr.msra.gmra.mrb[60].mxu1 %vm5812_vm2, %v15305_v7 }
 0x91b   : > { %6280 = vmatpush1.bf16.msra.mxu0 %v13525_v42  ;;  %6455 = vmatpush1.bf16.msra.mxu1 %v15124_v50  ;;  %v13585_v42 = vld [vmem:[%s16730_s6 + $0x80] ss:$12 sps:$4 sm:$0xff]  }
 0x91c   : > { %11318 = vmatprep.subr.msk.bf16.mxu1 %vm454_vm0, %v15132_v38  ;;  %6281 = vmatprep.subr.bf16.mxu0 %v13530_v43  ;;  %v13644_v43 = vld [vmem:[%s16730_s6 + $0x4b8] ss:$12 sps:$4 sm:$0xff]  }
 0x91d   : > { %6486 = vmatprep.mubr.bf16.mxu1 %v14106_v0 }
 0x91f   : > { %6282 = vmatpush1.bf16.msra.mxu0 %v13528_v46  ;;  %6457 = vmatpush1.bf16.msra.mxu1 %v15135_v5  ;;  %v13586_v46 = vld [vmem:[%s16730_s6 + $0x158] ss:$12 sps:$4 sm:$0xff]  }
 0x920   : > { %6283 = vmatprep.subr.bf16.mxu0 %v13533_v47  ;;  %12556 = vmatprep.subr.bf16.mxu1 %v14107_v29  ;;  %v13648_v47 = vld [vmem:[%s16730_s6 + $0x3f8] ss:$12 sps:$4 sm:$0xff]  }
 0x922   : > { %11319 = vmatmul.mubr.msk.bf16.vlgmr.msra.gmra.mrb[64].mxu1 %vm5181_vm15, %v13534_v48 }
 0x923   : > { %6284 = vmatpush1.bf16.msra.mxu0 %v13531_v49  ;;  %12557 = vmatpush3.bf16.msra.mxu1 %v15128_v33  ;;  %v13588_v49 = vld [vmem:[%s16730_s6 + $0x170] ss:$12 sps:$4 sm:$0xff]  }
 0x924   : > { %6285 = vmatprep.subr.bf16.mxu0 %v13537_v51  ;;  %12558 = vmatprep.subr.bf16.mxu1 %v14107_v29  ;;  %v13589_v51 = vld [vmem:[%s16730_s6 + $0xb0] ss:$12 sps:$4 sm:$0xff]  }
 0x925   : > { %12560 = vmatprep.mubr.msk.bf16.mxu1 %vm14108_vm1, %v14107_v29 }
 0x927   : > { %6286 = vmatpush1.bf16.msra.mxu0 %v13535_v52  ;;  %12559 = vmatpush3.bf16.msra.mxu1 %v15150_v30  ;;  %v13649_v52 = vld [vmem:[%s16730_s6 + $0x4d0] ss:$12 sps:$4 sm:$0xff]  }
 0x928   : > { %6287 = vmatprep.subr.bf16.mxu0 %v13540_v53  ;;  %12291 = vmatprep.subr.bf16.mxu1 %v13614_v15  ;;  %v13592_v53 = vld [vmem:[%s16730_s6 + $0x364] ss:$12 sps:$4 sm:$0xff]   ;;  %v13642_v15 = vld [vmem:[%s16730_s6 + $0x49c] ss:$12 sps:$4 sm:$0xff]  }
 0x92a   : > { %12561 = vmatmul.mubr.msk.bf16.vlgmr.msra.gmra.mrb[68].mxu1 %vm5181_vm15, %v13534_v48  ;;  %v13587_v48 = vld [vmem:[%s16730_s6 + $0x98] ss:$12 sps:$4 sm:$0xff]  }
 0x92b   : > { %6288 = vmatpush1.bf16.msra.mxu0 %v13538_v54  ;;  %12292 = vmatpush3.bf16.msra.mxu1 %v13618_v18  ;;  %v13653_v54 = vld [vmem:[%s16730_s6 + $0x410] ss:$12 sps:$4 sm:$0xff]   ;;  %v13647_v18 = vld [vmem:[%s16730_s6 + $0x4b4] ss:$12 sps:$4 sm:$0xff]  }
 0x92c   : > { %6289 = vmatprep.subr.bf16.mxu0 %v13543_v55  ;;  %12293 = vmatprep.subr.bf16.mxu1 %v13619_v11  ;;  %v13590_v55 = vld [vmem:[%s16730_s6 + $0x360] ss:$12 sps:$4 sm:$0xff]   ;;  %v13645_v11 = vld [vmem:[%s16730_s6 + $0x4b0] ss:$12 sps:$4 sm:$0xff]  }
 0x92f   : > { %6290 = vmatpush1.bf16.msra.mxu0 %v13541_v56  ;;  %12294 = vmatpush3.bf16.msra.mxu1 %v13623_v17  ;;  %v13595_v56 = vld [vmem:[%s16730_s6 + $0x37c] ss:$12 sps:$4 sm:$0xff]   ;;  %v13652_v17 = vld [vmem:[%s16730_s6 + $0x4cc] ss:$12 sps:$4 sm:$0xff]  }
 0x930   : > { %6291 = vmatprep.subr.bf16.mxu0 %v13546_v57  ;;  %12295 = vmatprep.subr.bf16.mxu1 %v13624_v24  ;;  %v13593_v57 = vld [vmem:[%s16730_s6 + $0x378] ss:$12 sps:$4 sm:$0xff]  }
 0x931   : > { %v13657_v24 = vld [vmem:[%s16730_s6 + $0x4e4] ss:$12 sps:$4 sm:$0xff]  }
 0x933   : > { %6292 = vmatpush1.bf16.msra.mxu0 %v13544_v58  ;;  %12296 = vmatpush3.bf16.msra.mxu1 %v13628_v26  ;;  %v13598_v58 = vld [vmem:[%s16730_s6 + $0x394] ss:$12 sps:$4 sm:$0xff]  }
 0x934   : > { %6293 = vmatprep.subr.bf16.mxu0 %v13549_v40  ;;  %12297 = vmatprep.subr.bf16.mxu1 %v13629_v27  ;;  %v13596_v40 = vld [vmem:[%s16730_s6 + $0x390] ss:$12 sps:$4 sm:$0xff]  }
 0x937   : > { %6294 = vmatpush1.bf16.msra.mxu0 %v13547_v59  ;;  %12298 = vmatpush3.bf16.msra.mxu1 %v13633_v32  ;;  %v13599_v59 = vld [vmem:[%s16730_s6 + $0x3a8] ss:$12 sps:$4 sm:$0xff]  }
 0x938   : > { %6295 = vmatprep.subr.bf16.mxu0 %v13552_v60  ;;  %12299 = vmatprep.subr.bf16.mxu1 %v13634_v20  ;;  %v13604_v60 = vld [vmem:[%s16730_s6 + $0x3c4] ss:$12 sps:$4 sm:$0xff]  }
 0x93b   : > { %6296 = vmatpush1.bf16.msra.mxu0 %v13550_v61  ;;  %12300 = vmatpush3.bf16.msra.mxu1 %v13638_v37  ;;  %v13602_v61 = vld [vmem:[%s16730_s6 + $0x3c0] ss:$12 sps:$4 sm:$0xff]  }
 0x93c   : > { %6297 = vmatprep.subr.bf16.mxu0 %v13555_v62  ;;  %12301 = vmatprep.subr.bf16.mxu1 %v13639_v10  ;;  %v13607_v62 = vld [vmem:[%s16730_s6 + $0x3dc] ss:$12 sps:$4 sm:$0xff]  }
 0x93f   : > { %6298 = vmatpush1.bf16.msra.mxu0 %v13553_v63  ;;  %12302 = vmatpush3.bf16.msra.mxu1 %v13643_v41  ;;  %v13605_v63 = vld [vmem:[%s16730_s6 + $0x3d8] ss:$12 sps:$4 sm:$0xff]   ;;  %v13655_v41 = vld [vmem:[%s16730_s6 + $0x4e0] ss:$12 sps:$4 sm:$0xff]  }
 0x940   : > { %6299 = vmatprep.subr.bf16.mxu0 %v13558_v44  ;;  %12303 = vmatprep.subr.bf16.mxu1 %v13644_v43  ;;  %v13610_v44 = vld [vmem:[%s16730_s6 + $0x3f4] ss:$12 sps:$4 sm:$0xff]  }
 0x943   : > { %6300 = vmatpush1.bf16.msra.mxu0 %v13556_v8  ;;  %12304 = vmatpush3.bf16.msra.mxu1 %v13648_v47  ;;  %v13608_v8 = vld [vmem:[%s16730_s6 + $0x3f0] ss:$12 sps:$4 sm:$0xff]   ;;  %v13659_v47 = vld [vmem:[%s16730_s6 + $0x4f8] ss:$12 sps:$4 sm:$0xff]  }
 0x944   : > { %6301 = vmatprep.subr.bf16.mxu0 %v13561_v1  ;;  %12305 = vmatprep.subr.bf16.mxu1 %v13649_v52  ;;  %v13613_v1 = vld [vmem:[%s16730_s6 + $0x40c] ss:$12 sps:$4 sm:$0xff]  }
 0x947   : > { %6302 = vmatpush1.bf16.msra.mxu0 %v13559_v3  ;;  %12306 = vmatpush3.bf16.msra.mxu1 %v13653_v54  ;;  %v13611_v3 = vld [vmem:[%s16730_s6 + $0x408] ss:$12 sps:$4 sm:$0xff]   ;;  %v13663_v54 = vld [vmem:[%s16730_s6 + $0x510] ss:$12 sps:$4 sm:$0xff]  }
 0x948   : > { %6303 = vmatprep.subr.bf16.mxu0 %v13564_v23  ;;  %12564 = vmatprep.subr.bf16.mxu1 %v14107_v29  ;;  %v13617_v23 = vld [vmem:[%s16730_s6 + $0x424] ss:$12 sps:$4 sm:$0xff]  }
 0x94b   : > { %6304 = vmatpush1.bf16.msra.mxu0 %v13562_v31  ;;  %v13615_v31 = vld [vmem:[%s16730_s6 + $0x420] ss:$12 sps:$4 sm:$0xff]  }
 0x94c   : > { %6305 = vmatprep.subr.bf16.mxu0 %v13567_v2  ;;  %v13622_v2 = vld [vmem:[%s16730_s6 + $0x43c] ss:$12 sps:$4 sm:$0xff]  }
 0x94f   : > { %6306 = vmatpush1.bf16.msra.mxu0 %v13565_v45  ;;  %v13620_v45 = vld [vmem:[%s16730_s6 + $0x438] ss:$12 sps:$4 sm:$0xff]  }
 0x950   : > { %6318 = vmatprep.subr.bf16.mxu0 %v13570_v4  ;;  %v13627_v4 = vld [vmem:[%s16730_s6 + $0x454] ss:$12 sps:$4 sm:$0xff]  }
 0x952   : > { %6308 = vmatmul.mubr.bf16.vlgmr.msra.gmra.mrb[124].mxu0 %v15301_v34 }
 0x953   : > { %6319 = vmatpush1.bf16.msra.mxu0 %v13568_v6  ;;  %6350 = vmatprep.mubr.bf16.mxu0 %v14106_v0  ;;  %v13625_v6 = vld [vmem:[%s16730_s6 + $0x450] ss:$12 sps:$4 sm:$0xff]  }
 0x954   : > { %6320 = vmatprep.subr.bf16.mxu0 %v13573_v9  ;;  %v13632_v9 = vld [vmem:[%s16730_s6 + $0x46c] ss:$12 sps:$4 sm:$0xff]  }
 0x957   : > { %6321 = vmatpush1.bf16.msra.mxu0 %v13571_v22  ;;  %v13630_v22 = vld [vmem:[%s16730_s6 + $0x468] ss:$12 sps:$4 sm:$0xff]  }
 0x958   : > { %12263 = vmatprep.subr.bf16.mxu0 %v13574_v13  ;;  %v13637_v13 = vld [vmem:[%s16730_s6 + $0x484] ss:$12 sps:$4 sm:$0xff]  }
 0x95e   : > { %11313 = vmatmul.mubr.msk.bf16.vlgmr.msra.gmra.mrb[124].mxu0 %vm5812_vm2, %v15305_v7  ;;  %v13578_v7 = vld [vmem:[%s16730_s6 + $0xf8] ss:$12 sps:$4 sm:$0xff]  }
 0x95f   : > { %12264 = vmatpush3.bf16.msra.mxu0 %v13575_v14  ;;  %6393 = vmatprep.mubr.bf16.mxu0 %v15303_v19  ;;  %v13579_v19 = vld [vmem:[%s16730_s6 + $0x38] ss:$12 sps:$4 sm:$0xff]   ;;  %v13635_v14 = vld [vmem:[%s16730_s6 + $0x480] ss:$12 sps:$4 sm:$0xff]  }
 0x960   : > { %12265 = vmatprep.subr.bf16.mxu0 %v13576_v16  ;;  %v13640_v16 = vld [vmem:[%s16730_s6 + $0x498] ss:$12 sps:$4 sm:$0xff]  }
 0x963   : > { %12266 = vmatpush3.bf16.msra.mxu0 %v13577_v21  ;;  %v13650_v21 = vld [vmem:[%s16730_s6 + $0x4c8] ss:$12 sps:$4 sm:$0xff]  }
 0x964   : > { %12267 = vmatprep.subr.bf16.mxu0 %v13578_v7 }
 0x967   : > { %12268 = vmatpush3.bf16.msra.mxu0 %v13579_v19 }
 0x968   : > { %12269 = vmatprep.subr.bf16.mxu0 %v13580_v28 }
 0x96b   : > { %12270 = vmatpush3.bf16.msra.mxu0 %v13581_v35 }
 0x96c   : > { %12271 = vmatprep.subr.bf16.mxu0 %v13582_v36 }
 0x96f   : > { %12272 = vmatpush3.bf16.msra.mxu0 %v13583_v25 }
 0x970   : > { %12273 = vmatprep.subr.bf16.mxu0 %v13584_v39  ;;  %v13654_v39 = vld [vmem:[%s16730_s6 + $0x4e8] ss:$12 sps:$4 sm:$0xff]  }
 0x973   : > { %12274 = vmatpush3.bf16.msra.mxu0 %v13585_v42  ;;  %v13661_v42 = vld [vmem:[%s16730_s6 + $0x4fc] ss:$12 sps:$4 sm:$0xff]  }
 0x974   : > { %12275 = vmatprep.subr.bf16.mxu0 %v13586_v46  ;;  %v13658_v46 = vld [vmem:[%s16730_s6 + $0x500] ss:$12 sps:$4 sm:$0xff]  }
 0x977   : > { %12276 = vmatpush3.bf16.msra.mxu0 %v13587_v48 }
 0x978   : > { %12277 = vmatprep.subr.bf16.mxu0 %v13588_v49  ;;  %v13665_v49 = vld [vmem:[%s16730_s6 + $0x514] ss:$12 sps:$4 sm:$0xff]  }
 0x97b   : > { %12278 = vmatpush3.bf16.msra.mxu0 %v13589_v51 }
 0x97c   : > { %6905 = vmatprep.subr.bf16.mxu0 %v13592_v53 }
 0x97e   : > { %6394 = vmatmul.mubr.bf16.vlgmr.msra.gmra.mrb[128].mxu0 %v15301_v34  ;;  %v13601_v34 = vld [vmem:[%s16730_s6 + $0x3ac] ss:$12 sps:$4 sm:$0xff]  }
 0x97f   : > { %6906 = vmatpush1.bf16.msra.mxu0 %v13590_v55  ;;  %v13668_v55 = vld [vmem:[%s16730_s6 + $0x52c] ss:$12 sps:$4 sm:$0xff]  }
 0x980   : > { %6907 = vmatprep.subr.bf16.mxu0 %v13595_v56  ;;  %v13690_v56 = vld [vmem:[%s16730_s6 + $0x5d8] ss:$12 sps:$4 sm:$0xff]  }
 0x983   : > { %6908 = vmatpush1.bf16.msra.mxu0 %v13593_v57  ;;  %v13674_v57 = vld [vmem:[%s16730_s6 + $0x55c] ss:$12 sps:$4 sm:$0xff]  }
 0x984   : > { %6909 = vmatprep.subr.bf16.mxu0 %v13598_v58  ;;  %v13672_v58 = vld [vmem:[%s16730_s6 + $0x558] ss:$12 sps:$4 sm:$0xff]  }
 0x987   : > { %6910 = vmatpush1.bf16.msra.mxu0 %v13596_v40  ;;  %v13695_v40 = vld [vmem:[%s16730_s6 + $0x5f0] ss:$12 sps:$4 sm:$0xff]  }
 0x988   : > { %6911 = vmatprep.subr.bf16.mxu0 %v13601_v34  ;;  %v13677_v34 = vld [vmem:[%s16730_s6 + $0x574] ss:$12 sps:$4 sm:$0xff]  }
 0x98b   : > { %6912 = vmatpush1.bf16.msra.mxu0 %v13599_v59  ;;  %v13675_v59 = vld [vmem:[%s16730_s6 + $0x570] ss:$12 sps:$4 sm:$0xff]  }
 0x98c   : > { %6913 = vmatprep.subr.bf16.mxu0 %v13604_v60  ;;  %v13700_v60 = vld [vmem:[%s16730_s6 + $0x608] ss:$12 sps:$4 sm:$0xff]  }
 0x98f   : > { %6914 = vmatpush1.bf16.msra.mxu0 %v13602_v61  ;;  %v13680_v61 = vld [vmem:[%s16730_s6 + $0x58c] ss:$12 sps:$4 sm:$0xff]  }
 0x990   : > { %6915 = vmatprep.subr.bf16.mxu0 %v13607_v62  ;;  %v13678_v62 = vld [vmem:[%s16730_s6 + $0x588] ss:$12 sps:$4 sm:$0xff]  }
 0x993   : > { %6916 = vmatpush1.bf16.msra.mxu0 %v13605_v63  ;;  %v13683_v63 = vld [vmem:[%s16730_s6 + $0x5a4] ss:$12 sps:$4 sm:$0xff]  }
 0x994   : > { %6917 = vmatprep.subr.bf16.mxu0 %v13610_v44  ;;  %v13681_v44 = vld [vmem:[%s16730_s6 + $0x5a0] ss:$12 sps:$4 sm:$0xff]  }
 0x997   : > { %6918 = vmatpush1.bf16.msra.mxu0 %v13608_v8  ;;  %v13686_v8 = vld [vmem:[%s16730_s6 + $0x5bc] ss:$12 sps:$4 sm:$0xff]  }
 0x998   : > { %6919 = vmatprep.subr.bf16.mxu0 %v13613_v1  ;;  %v13684_v1 = vld [vmem:[%s16730_s6 + $0x5b8] ss:$12 sps:$4 sm:$0xff]  }
 0x99b   : > { %6920 = vmatpush1.bf16.msra.mxu0 %v13611_v3  ;;  %v13689_v3 = vld [vmem:[%s16730_s6 + $0x5d4] ss:$12 sps:$4 sm:$0xff]  }
 0x99c   : > { %6921 = vmatprep.subr.bf16.mxu0 %v13617_v23  ;;  %v13687_v23 = vld [vmem:[%s16730_s6 + $0x5d0] ss:$12 sps:$4 sm:$0xff]  }
 0x99f   : > { %6922 = vmatpush1.bf16.msra.mxu0 %v13615_v31  ;;  %v13694_v31 = vld [vmem:[%s16730_s6 + $0x5ec] ss:$12 sps:$4 sm:$0xff]  }
 0x9a0   : > { %6923 = vmatprep.subr.bf16.mxu0 %v13622_v2  ;;  %v13692_v2 = vld [vmem:[%s16730_s6 + $0x5e8] ss:$12 sps:$4 sm:$0xff]  }
 0x9a3   : > { %6924 = vmatpush1.bf16.msra.mxu0 %v13620_v45  ;;  %v13699_v45 = vld [vmem:[%s16730_s6 + $0x604] ss:$12 sps:$4 sm:$0xff]  }
 0x9a4   : > { %6925 = vmatprep.subr.bf16.mxu0 %v13627_v4  ;;  %v13697_v4 = vld [vmem:[%s16730_s6 + $0x600] ss:$12 sps:$4 sm:$0xff]  }
 0x9a7   : > { %6926 = vmatpush1.bf16.msra.mxu0 %v13625_v6  ;;  %v13701_v6 = vld [vmem:[%s16730_s6 + $0x548] ss:$12 sps:$4 sm:$0xff]  }
 0x9a8   : > { %6927 = vmatprep.subr.bf16.mxu0 %v13632_v9 }
 0x9ab   : > { %6928 = vmatpush1.bf16.msra.mxu0 %v13630_v22 }
 0x9ac   : > { %6929 = vmatprep.subr.bf16.mxu0 %v13637_v13  ;;  %v13704_v13 = vld [vmem:[%s16730_s6 + $0x61c] ss:$12 sps:$4 sm:$0xff]  }
 0x9af   : > { %6930 = vmatpush1.bf16.msra.mxu0 %v13635_v14  ;;  %v13705_v14 = vld [vmem:[%s16730_s6 + $0x620] ss:$12 sps:$4 sm:$0xff]  }
 0x9b0   : > { %6931 = vmatprep.subr.bf16.mxu0 %v13642_v15 }
 0x9b3   : > { %6932 = vmatpush1.bf16.msra.mxu0 %v13640_v16 }
 0x9b4   : > { %6933 = vmatprep.subr.bf16.mxu0 %v13647_v18  ;;  %v13702_v18 = vld [vmem:[%s16730_s6 + $0x618] ss:$12 sps:$4 sm:$0xff]  }
 0x9b7   : > { %6934 = vmatpush1.bf16.msra.mxu0 %v13645_v11  ;;  %v13706_v11 = vld [vmem:[%s16730_s6 + $0x560] ss:$12 sps:$4 sm:$0xff]  }
 0x9b8   : > { %6935 = vmatprep.subr.bf16.mxu0 %v13652_v17 }
 0x9bb   : > { %6936 = vmatpush1.bf16.msra.mxu0 %v13650_v21 }
 0x9bc   : > { %6948 = vmatprep.subr.bf16.mxu0 %v13657_v24 }
 0x9d9   : > { %v12254_v7 = vpop.f32.mrb[56].mxu1 }
 0x9da   : > { %v12255_v26 = vpop.f32.mrb[57].mxu1 }
 0x9db   : > { %v15668_v19 = vadd.f32 %v12255_v26, %v12254_v7  ;;  %v12257_v27 = vpop.f32.mrb[58].mxu1  ;;  %v13707_v7 = vld [vmem:[%s16730_s6 + $0x630] ss:$12 sps:$4 sm:$0xff]   ;;  %v13709_v26 = vld [vmem:[%s16730_s6 + $0x634] ss:$12 sps:$4 sm:$0xff]  }
 0x9dc   : > { %v12258_v28 = vpop.f32.mrb[59].mxu1 }
 0x9dd   : > { %v15670_v32 = vadd.f32 %v12258_v28, %v12257_v27  ;;  %v13710_v27 = vld [vmem:[%s16730_s6 + $0x638] ss:$12 sps:$4 sm:$0xff]  }
 0x9de   : > { %v13711_v28 = vld [vmem:[%s16730_s6 + $0x578] ss:$12 sps:$4 sm:$0xff]  }
 0x9f5   : > { %v6488_v35 = vpop.f32.mrb[64].mxu1 }
 0x9f6   : > { %v6490_v20 = vpop.f32.mrb[65].mxu1 }
 0x9f7   : > { %v6492_v36 = vpop.f32.mrb[66].mxu1 }
 0x9f8   : > { %v6538_v37 = vpack.c.bf16 %v6492_v36, %v6488_v35  ;;  %v6494_v25 = vpop.f32.mrb[67].mxu1  ;;  %v13712_v36 = vld [vmem:[%s16730_s6 + $0x648] ss:$12 sps:$4 sm:$0xff]  }
 0x9f9   : > { %v6539_v10 = vpack.c.bf16 %v6494_v25, %v6490_v20  ;;  %v13715_v20 = vld [vmem:[%s16730_s6 + $0x650] ss:$12 sps:$4 sm:$0xff]   ;;  %v13720_v25 = vld [vmem:[%s16730_s6 + $0x668] ss:$12 sps:$4 sm:$0xff]  }
 0x9fb   : > { %6937 = vmatprep.mubr.bf16.mxu0 %v6539_v10  ;;  %7023 = vmatprep.mubr.bf16.mxu1 %v6539_v10  ;;  %v13717_v10 = vld [vmem:[%s16730_s6 + $0x660] ss:$12 sps:$4 sm:$0xff]  }
 0x9fc   : > { %6938 = vmatmul.mubr.bf16.vlgmr.msra.gmra.mrb[124].mxu0 %v6538_v37  ;;  %7024 = vmatmul.mubr.bf16.vlgmr.msra.gmra.mrb[72].mxu1 %v6538_v37  ;;  %v13716_v37 = vld [vmem:[%s16730_s6 + $0x590] ss:$12 sps:$4 sm:$0xff]  }
 0x9fd   : > { %12565 = vmatpush3.bf16.msra.mxu1 %v13654_v39  ;;  %v6531_v43 = vpop.f32.mrb[68].mxu1  ;;  %6949 = vmatpush1.bf16.msra.mxu0 %v13655_v41  ;;  %v13721_v39 = vld [vmem:[%s16730_s6 + $0x5a8] ss:$12 sps:$4 sm:$0xff]  }
 0x9fe   : > { %v12562_v48 = vpop.f32.mrb[69].mxu1  ;;  %12566 = vmatprep.subr.bf16.mxu1 %v14107_v29  ;;  %12568 = vmatprep.mubr.msk.bf16.mxu1 %vm14108_vm1, %v14107_v29  ;;  %v13724_v41 = vld [vmem:[%s16730_s6 + $0x67c] ss:$12 sps:$4 sm:$0xff]  }
 0x9ff   : > { %v6534_v51 = vpop.f32.mrb[70].mxu1  ;;  %6950 = vmatprep.subr.bf16.mxu0 %v13661_v42  ;;  %6980 = vmatprep.mubr.bf16.mxu0 %v14106_v0  ;;  %v13725_v42 = vld [vmem:[%s16730_s6 + $0x680] ss:$12 sps:$4 sm:$0xff]  }
 0xa00   : > { %v6540_v52 = vpack.c.bf16 %v6534_v51, %v6531_v43  ;;  %v12563_v53 = vpop.f32.mrb[71].mxu1  ;;  %v13722_v43 = vld [vmem:[%s16730_s6 + $0x678] ss:$12 sps:$4 sm:$0xff]  }
 0xa01   : > { %12567 = vmatpush3.bf16.msra.mxu1 %v13658_v46  ;;  %6951 = vmatpush1.bf16.msra.mxu0 %v13659_v47  ;;  %v13726_v46 = vld [vmem:[%s16730_s6 + $0x5c0] ss:$12 sps:$4 sm:$0xff]  }
 0xa02   : > { %7090 = vmatprep.subr.bf16.mxu1 %v15126_v12  ;;  %7541 = vmatprep.subr.bf16.mxu0 %v13665_v49  ;;  %v13662_v12 = vld [vmem:[%s16729_s5 + $0x18] sm:$0x1f]   ;;  %v13730_v47 = vld [vmem:[%s16730_s6 + $0x694] ss:$12 sps:$4 sm:$0xff]  }
 0xa04   : > { %12569 = vmatmul.mubr.msk.bf16.vlgmr.msra.gmra.mrb[60].mxu1 %vm5812_vm2, %v6540_v52 }
 0xa05   : > { %7091 = vmatpush1.bf16.msra.mxu1 %v15124_v50  ;;  %7122 = vmatprep.mubr.bf16.mxu1 %v14106_v0  ;;  %v13666_v50 = vld [vmem:[%s16730_s6 + $0x528] ss:$12 sps:$4 sm:$0xff]  }
 0xa06   : > { %11452 = vmatprep.subr.msk.bf16.mxu1 %vm454_vm0, %v15132_v38  ;;  %v13671_v38 = vld [vmem:[%s16730_s6 + $0x544] ss:$12 sps:$4 sm:$0xff]  }
 0xa08   : > { %11447 = vmatmul.mubr.msk.bf16.vlgmr.msra.gmra.mrb[124].mxu0 %vm5812_vm2, %v6540_v52 }
 0xa09   : > { %7093 = vmatpush1.bf16.msra.mxu1 %v15135_v5  ;;  %7542 = vmatpush1.bf16.msra.mxu0 %v13663_v54  ;;  %v13669_v5 = vld [vmem:[%s16730_s6 + $0x540] ss:$12 sps:$4 sm:$0xff]  }
 0xa0a   : > { %12572 = vmatprep.subr.bf16.mxu1 %v14107_v29  ;;  %7543 = vmatprep.subr.bf16.mxu0 %v13668_v55 }
 0xa0c   : > { %11453 = vmatmul.mubr.msk.bf16.vlgmr.msra.gmra.mrb[76].mxu1 %vm5181_vm15, %v13662_v12 }
 0xa0d   : > { %12573 = vmatpush3.bf16.msra.mxu1 %v15128_v33  ;;  %12576 = vmatprep.mubr.msk.bf16.mxu1 %vm14108_vm1, %v14107_v29  ;;  %v13691_v33 = vld [vmem:[%s16730_s6 + $0x518] ss:$12 sps:$4 sm:$0xff]  }
 0xa0e   : > { %12574 = vmatprep.subr.bf16.mxu1 %v14107_v29  ;;  %7544 = vmatpush1.bf16.msra.mxu0 %v13666_v50 }
 0xa0f   : > { %7545 = vmatprep.subr.bf16.mxu0 %v13671_v38 }
 0xa11   : > { %12575 = vmatpush3.bf16.msra.mxu1 %v15150_v30  ;;  %v13696_v30 = vld [vmem:[%s16730_s6 + $0x530] ss:$12 sps:$4 sm:$0xff]  }
 0xa12   : > { %7546 = vmatpush1.bf16.msra.mxu0 %v13669_v5  ;;  %12319 = vmatprep.subr.bf16.mxu1 %v13690_v56 }
 0xa13   : > { %7547 = vmatprep.subr.bf16.mxu0 %v13674_v57 }
 0xa14   : > { %12577 = vmatmul.mubr.msk.bf16.vlgmr.msra.gmra.mrb[80].mxu1 %vm5181_vm15, %v13662_v12  ;;  %vm10408_vm15 = vcmask 0  }
 0xa15   : > { %12320 = vmatpush3.bf16.msra.mxu1 %v13691_v33 }
 0xa16   : > { %7548 = vmatpush1.bf16.msra.mxu0 %v13672_v58  ;;  %12321 = vmatprep.subr.bf16.mxu1 %v13695_v40  ;;  %v13727_v58 = vld [vmem:[%s16730_s6 + $0x698] ss:$12 sps:$4 sm:$0xff]   ;;  %v13728_v40 = vld [vmem:[%s16730_s6 + $0x690] ss:$12 sps:$4 sm:$0xff]  }
 0xa17   : > { %7549 = vmatprep.subr.bf16.mxu0 %v13677_v34  ;;  %v13734_v34 = vld [vmem:[%s16730_s6 + $0x6ac] ss:$12 sps:$4 sm:$0xff]  }
 0xa19   : > { %12322 = vmatpush3.bf16.msra.mxu1 %v13696_v30 }
 0xa1a   : > { %7550 = vmatpush1.bf16.msra.mxu0 %v13675_v59  ;;  %12323 = vmatprep.subr.bf16.mxu1 %v13700_v60  ;;  %v13731_v59 = vld [vmem:[%s16730_s6 + $0x6b0] ss:$12 sps:$4 sm:$0xff]   ;;  %v13732_v60 = vld [vmem:[%s16730_s6 + $0x6a8] ss:$12 sps:$4 sm:$0xff]  }
 0xa1b   : > { %7551 = vmatprep.subr.bf16.mxu0 %v13680_v61 }
 0xa1d   : > { %12324 = vmatpush3.bf16.msra.mxu1 %v13701_v6 }
 0xa1e   : > { %7552 = vmatpush1.bf16.msra.mxu0 %v13678_v62  ;;  %12325 = vmatprep.subr.bf16.mxu1 %v13705_v14 }
 0xa1f   : > { %7553 = vmatprep.subr.bf16.mxu0 %v13683_v63 }
 0xa21   : > { %12326 = vmatpush3.bf16.msra.mxu1 %v13706_v11 }
 0xa22   : > { %7554 = vmatpush1.bf16.msra.mxu0 %v13681_v44  ;;  %12327 = vmatprep.subr.bf16.mxu1 %v13710_v27 }
 0xa23   : > { %7555 = vmatprep.subr.bf16.mxu0 %v13686_v8  ;;  %v13762_v8 = vld [vmem:[%s16732_s8 + $0x2a8] ss:$12 sps:$4 sm:$0xff]  }
 0xa25   : > { %12328 = vmatpush3.bf16.msra.mxu1 %v13711_v28 }
 0xa26   : > { %7556 = vmatpush1.bf16.msra.mxu0 %v13684_v1  ;;  %12329 = vmatprep.subr.bf16.mxu1 %v13715_v20  ;;  %v13763_v1 = vld [vmem:[%s16732_s8 + $0x1e8] ss:$12 sps:$4 sm:$0xff]  }
 0xa27   : > { %7557 = vmatprep.subr.bf16.mxu0 %v13689_v3  ;;  %v13767_v3 = vld [vmem:[%s16732_s8 + $0x2c0] ss:$12 sps:$4 sm:$0xff]  }
 0xa29   : > { %12330 = vmatpush3.bf16.msra.mxu1 %v13716_v37 }
 0xa2a   : > { %7558 = vmatpush1.bf16.msra.mxu0 %v13687_v23  ;;  %12331 = vmatprep.subr.bf16.mxu1 %v13720_v25  ;;  %v13768_v23 = vld [vmem:[%s16732_s8 + $0x200] ss:$12 sps:$4 sm:$0xff]  }
 0xa2b   : > { %7559 = vmatprep.subr.bf16.mxu0 %v13694_v31  ;;  %v13772_v31 = vld [vmem:[%s16732_s8 + $0x2d8] ss:$12 sps:$4 sm:$0xff]  }
 0xa2d   : > { %12332 = vmatpush3.bf16.msra.mxu1 %v13721_v39 }
 0xa2e   : > { %7560 = vmatpush1.bf16.msra.mxu0 %v13692_v2  ;;  %12333 = vmatprep.subr.bf16.mxu1 %v13725_v42  ;;  %v13773_v2 = vld [vmem:[%s16732_s8 + $0x218] ss:$12 sps:$4 sm:$0xff]  }
 0xa2f   : > { %7561 = vmatprep.subr.bf16.mxu0 %v13699_v45  ;;  %v13777_v45 = vld [vmem:[%s16732_s8 + $0x2f0] ss:$12 sps:$4 sm:$0xff]  }
 0xa31   : > { %12334 = vmatpush3.bf16.msra.mxu1 %v13726_v46 }
 0xa32   : > { %7562 = vmatpush1.bf16.msra.mxu0 %v13697_v4  ;;  %12580 = vmatprep.subr.bf16.mxu1 %v14107_v29  ;;  %v13778_v4 = vld [vmem:[%s16732_s8 + $0x230] ss:$12 sps:$4 sm:$0xff]  }
 0xa33   : > { %7563 = vmatprep.subr.bf16.mxu0 %v13704_v13 }
 0xa36   : > { %7564 = vmatpush1.bf16.msra.mxu0 %v13702_v18 }
 0xa37   : > { %7565 = vmatprep.subr.bf16.mxu0 %v13709_v26 }
 0xa3a   : > { %7566 = vmatpush1.bf16.msra.mxu0 %v13707_v7 }
 0xa51   : > { %v12279_v9 = vpop.f32.mrb[128].mxu0 }
 0xa52   : > { %v12280_v22 = vpop.f32.mrb[129].mxu0 }
 0xa53   : > { %v12281_v15 = vadd.f32 %v12280_v22, %v12279_v9  ;;  %v12282_v16 = vpop.f32.mrb[130].mxu0 }
 0xa54   : > { %v12283_v17 = vpop.f32.mrb[131].mxu0 }
 0xa55   : > { %v12672_v21 = vadd.f32 %v12281_v15, %v15668_v19  ;;  %v12284_v24 = vadd.f32 %v12283_v17, %v12282_v16  ;;  %v13714_v19 = vld [vmem:[%s16730_s6 + $0x64c] ss:$12 sps:$4 sm:$0xff]  }
 0xa56   : > { %7567 = vmatprep.subr.bf16.mxu0 %v13714_v19 }
 0xa57   : > { %v12676_v35 = vadd.f32 %v12284_v24, %v15670_v32  ;;  %v13719_v32 = vld [vmem:[%s16730_s6 + $0x664] ss:$12 sps:$4 sm:$0xff]   ;;  %7568 = vmatpush1.bf16.msra.mxu0 %v13712_v36 }
 0xa58   : > { %7569 = vmatprep.subr.bf16.mxu0 %v13719_v32 }
 0xa5b   : > { %7570 = vmatpush1.bf16.msra.mxu0 %v13717_v10 }
 0xa5c   : > { %7571 = vmatprep.subr.bf16.mxu0 %v13724_v41 }
 0xa5f   : > { %7572 = vmatpush1.bf16.msra.mxu0 %v13722_v43 }
 0xa60   : > { %7584 = vmatprep.subr.bf16.mxu0 %v13730_v47 }
 0xacf   : > { %v12307_v48 = vpop.f32.mrb[72].mxu1 }
 0xad0   : > { %v12308_v49 = vpop.f32.mrb[73].mxu1 }
 0xad1   : > { %v12309_v51 = vadd.f32 %v12308_v49, %v12307_v48  ;;  %v12310_v52 = vpop.f32.mrb[74].mxu1 }
 0xad2   : > { %v12311_v53 = vpop.f32.mrb[75].mxu1 }
 0xad3   : > { %v12673_v54 = vadd.f32 %v12672_v21, %v12309_v51  ;;  %v12312_v55 = vadd.f32 %v12311_v53, %v12310_v52  ;;  %v7736_v53 = vld [vmem:[%s16731_s7] sm:$0x7] }
 0xad5   : > { %v12677_v12 = vadd.f32 %v12676_v35, %v12312_v55  ;;  %v11586_v55 = vld [vmem:[%s16731_s7 + $0x4] sm:$0x7] }
 0xadf   : > { %v7124_v50 = vpop.f32.mrb[76].mxu1 }
 0xae0   : > { %v7126_v38 = vpop.f32.mrb[77].mxu1 }
 0xae1   : > { %v7128_v5 = vpop.f32.mrb[78].mxu1 }
 0xae2   : > { %v7174_v56 = vpack.c.bf16 %v7128_v5, %v7124_v50  ;;  %v7130_v57 = vpop.f32.mrb[79].mxu1  ;;  %v13735_v50 = vld [vmem:[%s16732_s8 + $0x1e0] ss:$12 sps:$4 sm:$0xff]   ;;  %v13738_v5 = vld [vmem:[%s16732_s8 + $0x1f8] ss:$12 sps:$4 sm:$0xff]  }
 0xae3   : > { %v7175_v33 = vpack.c.bf16 %v7130_v57, %v7126_v38  ;;  %v13740_v38 = vld [vmem:[%s16732_s8 + $0x1fc] ss:$12 sps:$4 sm:$0xff]  }
 0xae4   : > { %v13741_v57 = vld [vmem:[%s16732_s8 + $0x210] ss:$12 sps:$4 sm:$0xff]  }
 0xae5   : > { %7573 = vmatprep.mubr.bf16.mxu0 %v7175_v33  ;;  %7659 = vmatprep.mubr.bf16.mxu1 %v7175_v33  ;;  %v13746_v33 = vld [vmem:[%s16732_s8 + $0x22c] ss:$12 sps:$4 sm:$0xff]  }
 0xae6   : > { %7574 = vmatmul.mubr.bf16.vlgmr.msra.gmra.mrb[124].mxu0 %v7174_v56  ;;  %7660 = vmatmul.mubr.bf16.vlgmr.msra.gmra.mrb[84].mxu1 %v7174_v56  ;;  %v13743_v56 = vld [vmem:[%s16732_s8 + $0x214] ss:$12 sps:$4 sm:$0xff]  }
 0xae7   : > { %12581 = vmatpush3.bf16.msra.mxu1 %v13727_v58  ;;  %v7167_v30 = vpop.f32.mrb[80].mxu1  ;;  %7585 = vmatpush1.bf16.msra.mxu0 %v13728_v40  ;;  %v13744_v58 = vld [vmem:[%s16732_s8 + $0x228] ss:$12 sps:$4 sm:$0xff]   ;;  %v13749_v40 = vld [vmem:[%s16732_s8 + $0x244] ss:$12 sps:$4 sm:$0xff]  }
 0xae8   : > { %v12578_v61 = vpop.f32.mrb[81].mxu1  ;;  %12582 = vmatprep.subr.bf16.mxu1 %v14107_v29  ;;  %12584 = vmatprep.mubr.msk.bf16.mxu1 %vm14108_vm1, %v14107_v29 }
 0xae9   : > { %v7170_v62 = vpop.f32.mrb[82].mxu1  ;;  %7586 = vmatprep.subr.bf16.mxu0 %v13734_v34  ;;  %7616 = vmatprep.mubr.bf16.mxu0 %v14106_v0  ;;  %v13747_v34 = vld [vmem:[%s16732_s8 + $0x240] ss:$12 sps:$4 sm:$0xff]   ;;  %v13753_v61 = vld [vmem:[%s16732_s8 + $0x270] ss:$12 sps:$4 sm:$0xff]  }
 0xaea   : > { %v7176_v63 = vpack.c.bf16 %v7170_v62, %v7167_v30  ;;  %v12579_v44 = vpop.f32.mrb[83].mxu1  ;;  %v13752_v30 = vld [vmem:[%s16732_s8 + $0x25c] ss:$12 sps:$4 sm:$0xff]   ;;  %v13758_v62 = vld [vmem:[%s16732_s8 + $0x28c] ss:$12 sps:$4 sm:$0xff]  }
 0xaeb   : > { %12583 = vmatpush3.bf16.msra.mxu1 %v13731_v59  ;;  %7587 = vmatpush1.bf16.msra.mxu0 %v13732_v60  ;;  %v13750_v59 = vld [vmem:[%s16732_s8 + $0x258] ss:$12 sps:$4 sm:$0xff]   ;;  %v13755_v60 = vld [vmem:[%s16732_s8 + $0x274] ss:$12 sps:$4 sm:$0xff]  }
 0xaec   : > { %12348 = vmatprep.subr.bf16.mxu0 %v13762_v8  ;;  %v13761_v44 = vld [vmem:[%s16732_s8 + $0x2a4] ss:$12 sps:$4 sm:$0xff]   ;;  %v13759_v8 = vld [vmem:[%s16732_s8 + $0x2a0] ss:$12 sps:$4 sm:$0xff]  }
 0xaee   : > { %12585 = vmatmul.mubr.msk.bf16.vlgmr.msra.gmra.mrb[60].mxu1 %vm5812_vm2, %v7176_v63 }
 0xaef   : > { %7783 = vmatprep.mubr.bf16.mxu1 %v14106_v0 }
 0xaf2   : > { %11581 = vmatmul.mubr.msk.bf16.vlgmr.msra.gmra.mrb[124].mxu0 %vm5812_vm2, %v7176_v63  ;;  %v13756_v63 = vld [vmem:[%s16732_s8 + $0x288] ss:$12 sps:$4 sm:$0xff]  }
 0xaf3   : > { %12349 = vmatpush3.bf16.msra.mxu0 %v13763_v1  ;;  %v13766_v1 = vld [vmem:[%s16732_s8 + $0x2bc] ss:$12 sps:$4 sm:$0xff]  }
 0xaf4   : > { %12350 = vmatprep.subr.bf16.mxu0 %v13767_v3  ;;  %v13764_v3 = vld [vmem:[%s16732_s8 + $0x2b8] ss:$12 sps:$4 sm:$0xff]  }
 0xaf7   : > { %12351 = vmatpush3.bf16.msra.mxu0 %v13768_v23  ;;  %v13771_v23 = vld [vmem:[%s16732_s8 + $0x2d4] ss:$12 sps:$4 sm:$0xff]  }
 0xaf8   : > { %12352 = vmatprep.subr.bf16.mxu0 %v13772_v31  ;;  %v13769_v31 = vld [vmem:[%s16732_s8 + $0x2d0] ss:$12 sps:$4 sm:$0xff]  }
 0xafb   : > { %12353 = vmatpush3.bf16.msra.mxu0 %v13773_v2  ;;  %v13776_v2 = vld [vmem:[%s16732_s8 + $0x2ec] ss:$12 sps:$4 sm:$0xff]  }
 0xafc   : > { %12354 = vmatprep.subr.bf16.mxu0 %v13777_v45  ;;  %v13774_v45 = vld [vmem:[%s16732_s8 + $0x2e8] ss:$12 sps:$4 sm:$0xff]  }
 0xaff   : > { %12355 = vmatpush3.bf16.msra.mxu0 %v13778_v4  ;;  %v13779_v4 = vld [vmem:[%s16732_s8 + $0x300] ss:$12 sps:$4 sm:$0xff]  }
 0xbb9   : > { %v12335_v6 = vpop.f32.mrb[84].mxu1 }
 0xbba   : > { %v12336_v9 = vpop.f32.mrb[85].mxu1 }
 0xbbb   : > { %v12337_v22 = vadd.f32 %v12336_v9, %v12335_v6  ;;  %v12338_v13 = vpop.f32.mrb[86].mxu1  ;;  %v13781_v6 = vld [vmem:[%s16732_s8 + $0x304] ss:$12 sps:$4 sm:$0xff]   ;;  %v13782_v9 = vld [vmem:[%s16732_s8 + $0x308] ss:$12 sps:$4 sm:$0xff]  }
 0xbbc   : > { %v12339_v14 = vpop.f32.mrb[87].mxu1  ;;  %12356 = vmatprep.subr.bf16.mxu0 %v13782_v9  ;;  %v13833_v9 = vld [vmem:[%s16732_s8 + $0x110] ss:$12 sps:$4 sm:$0xff]  }
 0xbbd   : > { %v12340_v15 = vadd.f32 %v12339_v14, %v12338_v13  ;;  %v12674_v16 = vadd.f32 %v12673_v54, %v12337_v22  ;;  %v13783_v22 = vld [vmem:[%s16732_s8 + $0x248] ss:$12 sps:$4 sm:$0xff]   ;;  %v13787_v14 = vld [vmem:[%s16732_s8 + $0x320] ss:$12 sps:$4 sm:$0xff]  }
 0xbbe   : > { %v13786_v13 = vld [vmem:[%s16732_s8 + $0x31c] ss:$12 sps:$4 sm:$0xff]   ;;  %12357 = vmatpush3.bf16.msra.mxu0 %v13783_v22 }
 0xbbf   : > { %v12678_v18 = vadd.f32 %v12677_v12, %v12340_v15  ;;  %v13737_v12 = vld [vmem:[%s16732_s8 + $0x1e4] ss:$12 sps:$4 sm:$0xff]   ;;  %12358 = vmatprep.subr.bf16.mxu0 %v13787_v14  ;;  %v13830_v22 = vld [vmem:[%s16732_s8 + $0x48] ss:$12 sps:$4 sm:$0xff]  }
 0xbc0   : > { %v13784_v15 = vld [vmem:[%s16732_s8 + $0x318] ss:$12 sps:$4 sm:$0xff]  }
 0xbc1   : > { %v7702_v11 = vpop.f32.mrb[60].mxu1  ;;  %v13837_v14 = vld [vmem:[%s16732_s8 + $0x64] ss:$12 sps:$4 sm:$0xff]  }
 0xbc2   : > { %v12675_v17 = vadd.f32 %v12674_v16, %v7702_v11  ;;  %v12586_v21 = vpop.f32.mrb[61].mxu1  ;;  %v13788_v16 = vld [vmem:[%s16732_s8 + $0x260] ss:$12 sps:$4 sm:$0xff]  }
 0xbc3   : > { %v7705_v24 = vpop.f32.mrb[62].mxu1  ;;  %12359 = vmatpush3.bf16.msra.mxu0 %v13788_v16  ;;  %v13791_v11 = vld [vmem:[%s16732_s8 + $0x334] ss:$12 sps:$4 sm:$0xff]   ;;  %v13793_v21 = vld [vmem:[%s16732_s8 + $0x278] ss:$12 sps:$4 sm:$0xff]  }
 0xbc4   : > { %v12679_v7 = vadd.f32 %v12678_v18, %v7705_v24  ;;  %v12587_v26 = vpop.f32.mrb[63].mxu1  ;;  %v7723_v27 = vmul.f32 0.2, %v12675_v17  ;;  %vm7717_vm0 = vcmp.ge.f32.partialorder %v12675_v17, 0.0  ;;  %v13789_v18 = vld [vmem:[%s16732_s8 + $0x330] ss:$12 sps:$4 sm:$0xff]  }
 0xbc5   : > { %v7618_v28 = vpop.f32.mrb[124].mxu0  ;;  %v13796_v24 = vld [vmem:[%s16732_s8 + $0x34c] ss:$12 sps:$4 sm:$0xff]   ;;  %v13794_v26 = vld [vmem:[%s16732_s8 + $0x348] ss:$12 sps:$4 sm:$0xff]  }
 0xbc6   : > { %vm7720_vm3 = vcmp.ge.f32.partialorder %v12679_v7, 0.0  ;;  %v7726_v19 = vmul.f32 0.2, %v12679_v7  ;;  %v7620_v35 = vpop.f32.mrb[125].mxu0  ;;  %vm7715_vm5 = vcmp.ge.f32.partialorder %v7618_v28, 0.0  ;;  %v7729_v39 = vsel %vm7717_vm0, %v12675_v17, %v7723_v27 }
 0xbc7   : > { %v7721_v20 = vmul.f32 0.2, %v7618_v28  ;;  %v7722_v36 = vmul.f32 0.2, %v7620_v35  ;;  %v7622_v37 = vpop.f32.mrb[126].mxu0  ;;  %vm7716_vm6 = vcmp.ge.f32.partialorder %v7620_v35, 0.0 }
 0xbc8   : > { %v7732_v32 = vsel %vm7720_vm3, %v12679_v7, %v7726_v19  ;;  %vm7718_vm4 = vcmp.ge.f32.partialorder %v7622_v37, 0.0  ;;  %v7724_v25 = vmul.f32 0.2, %v7622_v37  ;;  %v7624_v10 = vpop.f32.mrb[127].mxu0  ;;  %v13792_v17 = vld [vmem:[%s16732_s8 + $0x338] ss:$12 sps:$4 sm:$0xff]  }
 0xbc9   : > { %vm7719_vm7 = vcmp.ge.f32.partialorder %v7624_v10, 0.0  ;;  %v7725_v41 = vmul.f32 0.2, %v7624_v10  ;;  %v7727_v42 = vsel %vm7715_vm5, %v7618_v28, %v7721_v20  ;;  %v7735_v46 = vpack.c.bf16 %v7732_v32, %v7729_v39  ;;  %12360 = vmatprep.subr.bf16.mxu0 %v13792_v17  ;;  %v13797_v7 = vld [vmem:[%s16732_s8 + $0x350] ss:$12 sps:$4 sm:$0xff]  }
 0xbca   : > { %v7730_v43 = vsel %vm7718_vm4, %v7622_v37, %v7724_v25  ;;  %v7728_v47 = vsel %vm7716_vm6, %v7620_v35, %v7722_v36  ;;  %12361 = vmatpush3.bf16.msra.mxu0 %v13793_v21  ;;  %v13798_v27 = vld [vmem:[%s16732_s8 + $0x290] ss:$12 sps:$4 sm:$0xff]   ;;  %v13835_v16 = vld [vmem:[%s16732_s8 + $0x60] ss:$12 sps:$4 sm:$0xff]   ;;  %v13840_v21 = vld [vmem:[%s16732_s8 + $0x78] ss:$12 sps:$4 sm:$0xff]  }
 0xbcb   : > { %v7733_v48 = vpack.c.bf16 %v7730_v43, %v7727_v42  ;;  %v7731_v49 = vsel %vm7719_vm7, %v7624_v10, %v7725_v41  ;;  %v15920_v54 = vsel %vm7741_vm8, %v7735_v46, 0  ;;  %12362 = vmatprep.subr.bf16.mxu0 %v13797_v7  ;;  %v13801_v28 = vld [vmem:[%s16732_s8 + $0x364] ss:$12 sps:$4 sm:$0xff]   ;;  %v13799_v46 = vld [vmem:[%s16732_s8 + $0x360] ss:$12 sps:$4 sm:$0xff]  }
 0xbcc   : > { %v15906_v51 = vpack.c.bf16 %v7731_v49, %v7728_v47  ;;  %v13802_v47 = vld [vmem:[%s16732_s8 + $0x368] ss:$12 sps:$4 sm:$0xff]   ;;  %v13843_v17 = vld [vmem:[%s16732_s8 + $0x140] ss:$12 sps:$4 sm:$0xff]  }
 0xbcd   : > { %v15909_v52 = vsel %vm7741_vm8, %v7733_v48, 0  ;;  %v13847_v7 = vld [vmem:[%s16732_s8 + $0x94] ss:$12 sps:$4 sm:$0xff]  }
 0xbce   : > { %11583 = vmatprep.subr.msk.bf16.mxu1 %vm7741_vm8, %v15906_v51  ;;  %12363 = vmatpush3.bf16.msra.mxu0 %v13798_v27  ;;  %v13845_v27 = vld [vmem:[%s16732_s8 + $0x90] ss:$12 sps:$4 sm:$0xff]  }
 0xbcf   : > { %7752 = vmatpush1.bf16.msra.mxu1 %v15909_v52  ;;  %12600 = vmatprep.subr.bf16.mxu0 %v14107_v29 }
 0xbd0   : > { %12588 = vmatprep.subr.bf16.mxu1 %v14107_v29 }
 0xbd2   : > { %11584 = vmatmul.mubr.msk.bf16.vlgmr.msra.gmra.mrb[88].mxu1 %vm7737_vm9, %v7736_v53 }
 0xbd3   : > { %12589 = vmatpush3.bf16.msra.mxu1 %v15920_v54  ;;  %12590 = vmatprep.mubr.msk.bf16.mxu1 %vm14108_vm1, %v14107_v29 }
 0xbd4   : > { %11587 = vmatprep.subr.msk.bf16.mxu1 %vm7741_vm8, %v15906_v51 }
 0xbda   : > { %12591 = vmatmul.mubr.msk.bf16.vlgmr.msra.gmra.mrb[92].mxu1 %vm7737_vm9, %v7736_v53  ;;  %v13805_v53 = vld [vmem:[%s16732_s8 + $0x37c] ss:$12 sps:$4 sm:$0xff]  }
 0xbdb   : > { %7921 = vmatpush1.bf16.msra.mxu1 %v15909_v52  ;;  %7952 = vmatprep.mubr.bf16.mxu1 %v14106_v0 }
 0xbdc   : > { %12594 = vmatprep.subr.bf16.mxu1 %v14107_v29 }
 0xbe2   : > { %11588 = vmatmul.mubr.msk.bf16.vlgmr.msra.gmra.mrb[96].mxu1 %vm7737_vm9, %v11586_v55 }
 0xbe3   : > { %12595 = vmatpush3.bf16.msra.mxu1 %v15920_v54  ;;  %12596 = vmatprep.mubr.msk.bf16.mxu1 %vm14108_vm1, %v14107_v29 }
 0xbe4   : > { %8409 = vmatprep.subr.bf16.mxu1 %v13737_v12  ;;  %v13806_v12 = vld [vmem:[%s16732_s8 + $0x380] ss:$12 sps:$4 sm:$0xff]  }
 0xbea   : > { %12597 = vmatmul.mubr.msk.bf16.vlgmr.msra.gmra.mrb[100].mxu1 %vm7737_vm9, %v11586_v55  ;;  %v13803_v55 = vld [vmem:[%s16732_s8 + $0x378] ss:$12 sps:$4 sm:$0xff]  }
 0xbeb   : > { %8410 = vmatpush1.bf16.msra.mxu1 %v13735_v50  ;;  %v13809_v50 = vld [vmem:[%s16732_s8 + $0x394] ss:$12 sps:$4 sm:$0xff]  }
 0xbec   : > { %8411 = vmatprep.subr.bf16.mxu1 %v13740_v38 }
 0xbef   : > { %8412 = vmatpush1.bf16.msra.mxu1 %v13738_v5 }
 0xbf0   : > { %8413 = vmatprep.subr.bf16.mxu1 %v13743_v56  ;;  %v13807_v56 = vld [vmem:[%s16732_s8 + $0x390] ss:$12 sps:$4 sm:$0xff]  }
 0xbf3   : > { %8414 = vmatpush1.bf16.msra.mxu1 %v13741_v57  ;;  %v13810_v57 = vld [vmem:[%s16732_s8 + $0x398] ss:$12 sps:$4 sm:$0xff]  }
 0xbf4   : > { %8415 = vmatprep.subr.bf16.mxu1 %v13746_v33 }
 0xbf7   : > { %8416 = vmatpush1.bf16.msra.mxu1 %v13744_v58  ;;  %v13813_v58 = vld [vmem:[%s16732_s8 + $0x3ac] ss:$12 sps:$4 sm:$0xff]  }
 0xbf8   : > { %8417 = vmatprep.subr.bf16.mxu1 %v13749_v40 }
 0xbfb   : > { %8418 = vmatpush1.bf16.msra.mxu1 %v13747_v34  ;;  %v13811_v34 = vld [vmem:[%s16732_s8 + $0x3a8] ss:$12 sps:$4 sm:$0xff]  }
 0xbfc   : > { %8419 = vmatprep.subr.bf16.mxu1 %v13752_v30  ;;  %v13814_v30 = vld [vmem:[%s16732_s8 + $0x3b0] ss:$12 sps:$4 sm:$0xff]  }
 0xbff   : > { %8420 = vmatpush1.bf16.msra.mxu1 %v13750_v59  ;;  %v13817_v59 = vld [vmem:[%s16732_s8 + $0x4] ss:$12 sps:$4 sm:$0xff]  }
 0xc00   : > { %8421 = vmatprep.subr.bf16.mxu1 %v13755_v60  ;;  %v13818_v60 = vld [vmem:[%s16732_s8 + $0xc8] ss:$12 sps:$4 sm:$0xff]  }
 0xc03   : > { %8422 = vmatpush1.bf16.msra.mxu1 %v13753_v61 }
 0xc04   : > { %8423 = vmatprep.subr.bf16.mxu1 %v13758_v62  ;;  %v13815_v62 = vld [vmem:[%s16732_s8] ss:$12 sps:$4 sm:$0xff]  }
 0xc07   : > { %8424 = vmatpush1.bf16.msra.mxu1 %v13756_v63  ;;  %v13819_v63 = vld [vmem:[%s16732_s8 + $0x8] ss:$12 sps:$4 sm:$0xff]  }
 0xc08   : > { %8425 = vmatprep.subr.bf16.mxu1 %v13761_v44 }
 0xc0b   : > { %8426 = vmatpush1.bf16.msra.mxu1 %v13759_v8  ;;  %v13822_v8 = vld [vmem:[%s16732_s8 + $0x1c] ss:$12 sps:$4 sm:$0xff]  }
 0xc0c   : > { %8427 = vmatprep.subr.bf16.mxu1 %v13766_v1  ;;  %v13823_v1 = vld [vmem:[%s16732_s8 + $0xe0] ss:$12 sps:$4 sm:$0xff]  }
 0xc0f   : > { %8428 = vmatpush1.bf16.msra.mxu1 %v13764_v3  ;;  %v13820_v3 = vld [vmem:[%s16732_s8 + $0x18] ss:$12 sps:$4 sm:$0xff]  }
 0xc10   : > { %8429 = vmatprep.subr.bf16.mxu1 %v13771_v23  ;;  %v13824_v23 = vld [vmem:[%s16732_s8 + $0x20] ss:$12 sps:$4 sm:$0xff]  }
 0xc13   : > { %8430 = vmatpush1.bf16.msra.mxu1 %v13769_v31  ;;  %v13827_v31 = vld [vmem:[%s16732_s8 + $0x34] ss:$12 sps:$4 sm:$0xff]  }
 0xc14   : > { %8431 = vmatprep.subr.bf16.mxu1 %v13776_v2  ;;  %v13828_v2 = vld [vmem:[%s16732_s8 + $0xf8] ss:$12 sps:$4 sm:$0xff]  }
 0xc17   : > { %8432 = vmatpush1.bf16.msra.mxu1 %v13774_v45  ;;  %v13825_v45 = vld [vmem:[%s16732_s8 + $0x30] ss:$12 sps:$4 sm:$0xff]  }
 0xc18   : > { %8433 = vmatprep.subr.bf16.mxu1 %v13781_v6  ;;  %v13832_v6 = vld [vmem:[%s16732_s8 + $0x4c] ss:$12 sps:$4 sm:$0xff]  }
 0xc1b   : > { %8434 = vmatpush1.bf16.msra.mxu1 %v13779_v4  ;;  %v13829_v4 = vld [vmem:[%s16732_s8 + $0x38] ss:$12 sps:$4 sm:$0xff]  }
 0xc1c   : > { %8435 = vmatprep.subr.bf16.mxu1 %v13786_v13  ;;  %v13834_v13 = vld [vmem:[%s16732_s8 + $0x50] ss:$12 sps:$4 sm:$0xff]  }
 0xc1f   : > { %8436 = vmatpush1.bf16.msra.mxu1 %v13784_v15  ;;  %v13838_v15 = vld [vmem:[%s16732_s8 + $0x128] ss:$12 sps:$4 sm:$0xff]  }
 0xc20   : > { %8437 = vmatprep.subr.bf16.mxu1 %v13791_v11  ;;  %v13842_v11 = vld [vmem:[%s16732_s8 + $0x7c] ss:$12 sps:$4 sm:$0xff]  }
 0xc23   : > { %8438 = vmatpush1.bf16.msra.mxu1 %v13789_v18  ;;  %v13839_v18 = vld [vmem:[%s16732_s8 + $0x68] ss:$12 sps:$4 sm:$0xff]  }
 0xc24   : > { %8439 = vmatprep.subr.bf16.mxu1 %v13796_v24  ;;  %v13844_v24 = vld [vmem:[%s16732_s8 + $0x80] ss:$12 sps:$4 sm:$0xff]  }
 0xc27   : > { %8440 = vmatpush1.bf16.msra.mxu1 %v13794_v26  ;;  %v13848_v26 = vld [vmem:[%s16732_s8 + $0x158] ss:$12 sps:$4 sm:$0xff]  }
 0xc28   : > { %8450 = vmatprep.subr.bf16.mxu1 %v13801_v28  ;;  %v13849_v28 = vld [vmem:[%s16732_s8 + $0x98] ss:$12 sps:$4 sm:$0xff]  }
 0xca5   : > { %v16063_v19 = vpop.f32.mrb[88].mxu1 }
 0xca6   : > { %v7787_v35 = vpop.f32.mrb[89].mxu1 }
 0xca7   : > { %v7789_v20 = vpop.f32.mrb[90].mxu1  ;;  %v7833_v44 = vpack.c.bf16 %v7787_v35, %v7787_v35  ;;  %v13852_v35 = vld [vmem:[%s16732_s8 + $0xac] ss:$12 sps:$4 sm:$0xff]  }
 0xca8   : > { %v7790_v36 = vpop.f32.mrb[91].mxu1  ;;  %v13853_v20 = vld [vmem:[%s16732_s8 + $0x170] ss:$12 sps:$4 sm:$0xff]  }
 0xca9   : > { %v13850_v36 = vld [vmem:[%s16732_s8 + $0xa8] ss:$12 sps:$4 sm:$0xff]  }
 0xcad   : > { %v16065_v37 = vpop.f32.mrb[92].mxu1 }
 0xcae   : > { %v12592_v32 = vpop.f32.mrb[93].mxu1 }
 0xcaf   : > { %v7829_v25 = vpop.f32.mrb[94].mxu1  ;;  %v13854_v32 = vld [vmem:[%s16732_s8 + $0xb0] ss:$12 sps:$4 sm:$0xff]  }
 0xcb0   : > { %v12593_v10 = vpop.f32.mrb[95].mxu1  ;;  %v13857_v25 = vld [vmem:[%s16732_s8 + $0xc4] ss:$12 sps:$4 sm:$0xff]  }
 0xcb1   : > { %v13855_v10 = vld [vmem:[%s16732_s8 + $0xc0] ss:$12 sps:$4 sm:$0xff]  }
 0xcb5   : > { %v7954_v39 = vpop.f32.mrb[96].mxu1 }
 0xcb6   : > { %v7956_v41 = vpop.f32.mrb[97].mxu1  ;;  %v8001_v48 = vpack.c.bf16 %v7954_v39, %v7954_v39  ;;  %v13858_v39 = vld [vmem:[%s16732_s8 + $0x188] ss:$12 sps:$4 sm:$0xff]  }
 0xcb7   : > { %v8002_v42 = vpack.c.bf16 %v7956_v41, %v7956_v41  ;;  %v7958_v43 = vpop.f32.mrb[98].mxu1  ;;  %v13861_v41 = vld [vmem:[%s16732_s8 + $0xdc] ss:$12 sps:$4 sm:$0xff]  }
 0xcb8   : > { %v7959_v49 = vpop.f32.mrb[99].mxu1  ;;  %v13859_v43 = vld [vmem:[%s16732_s8 + $0xd8] ss:$12 sps:$4 sm:$0xff]  }
 0xcb9   : > { %8441 = vmatprep.mubr.bf16.mxu1 %v8002_v42  ;;  %8523 = vmatprep.mubr.bf16.mxu0 %v8002_v42  ;;  %v7832_v42 = vpack.c.bf16 %v16063_v19, %v16063_v19  ;;  %v13863_v19 = vld [vmem:[%s16732_s8 + $0xf0] ss:$12 sps:$4 sm:$0xff]   ;;  %v13869_v49 = vld [vmem:[%s16732_s8 + $0x10c] ss:$12 sps:$4 sm:$0xff]  }
 0xcba   : > { %8442 = vmatmul.mubr.bf16.vlgmr.msra.gmra.mrb[104].mxu1 %v8001_v48  ;;  %8524 = vmatmul.mubr.bf16.vlgmr.msra.gmra.mrb[132].mxu0 %v8001_v48  ;;  %v13866_v48 = vld [vmem:[%s16732_s8 + $0x1b8] ss:$12 sps:$4 sm:$0xff]  }
 0xcbb   : > { %8451 = vmatpush1.bf16.msra.mxu1 %v13799_v46  ;;  %12601 = vmatpush3.bf16.msra.mxu0 %v13802_v47  ;;  %v13862_v46 = vld [vmem:[%s16732_s8 + $0x1a0] ss:$12 sps:$4 sm:$0xff]  }
 0xcbc   : > { %8452 = vmatprep.subr.bf16.mxu1 %v13805_v53  ;;  %12602 = vmatprep.subr.bf16.mxu0 %v14107_v29  ;;  %v13865_v47 = vld [vmem:[%s16732_s8 + $0xf4] ss:$12 sps:$4 sm:$0xff]  }
 0xcbd   : > { %v7995_v38 = vpop.f32.mrb[100].mxu1  ;;  %8482 = vmatprep.mubr.bf16.mxu1 %v14106_v0  ;;  %12608 = vmatprep.mubr.msk.bf16.mxu0 %vm14108_vm1, %v14107_v29  ;;  %v13867_v53 = vld [vmem:[%s16732_s8 + $0x108] ss:$12 sps:$4 sm:$0xff]  }
 0xcbe   : > { %v12598_v5 = vpop.f32.mrb[101].mxu1  ;;  %v8003_v61 = vpack.c.bf16 %v7995_v38, %v7995_v38  ;;  %v13876_v38 = vld [vmem:[%s16732_s8 + $0x13c] ss:$12 sps:$4 sm:$0xff]  }
 0xcbf   : > { %8453 = vmatpush1.bf16.msra.mxu1 %v13803_v55  ;;  %12603 = vmatpush3.bf16.msra.mxu0 %v13806_v12  ;;  %v7998_v33 = vpop.f32.mrb[102].mxu1  ;;  %v13870_v55 = vld [vmem:[%s16732_s8 + $0x1d0] ss:$12 sps:$4 sm:$0xff]   ;;  %v7834_v5 = vpack.c.bf16 %v16065_v37, %v16065_v37 }
 0xcc0   : > { %8454 = vmatprep.subr.bf16.mxu1 %v13809_v50  ;;  %12604 = vmatprep.subr.bf16.mxu0 %v14107_v29  ;;  %v12599_v40 = vpop.f32.mrb[103].mxu1  ;;  %v13873_v12 = vld [vmem:[%s16732_s8 + $0x124] ss:$12 sps:$4 sm:$0xff]   ;;  %v13871_v50 = vld [vmem:[%s16732_s8 + $0x120] ss:$12 sps:$4 sm:$0xff]  }
 0xcc1   : > { %v13877_v37 = vld [vmem:[%s16732_s8 + $0x150] ss:$12 sps:$4 sm:$0xff]   ;;  %v11794_v33 = vld [vmem:[%s16731_s7 + $0x8] sm:$0x7] }
 0xcc2   : > { %v13880_v40 = vld [vmem:[%s16732_s8 + $0x168] ss:$12 sps:$4 sm:$0xff]  }
 0xcc3   : > { %8455 = vmatpush1.bf16.msra.mxu1 %v13807_v56  ;;  %12605 = vmatpush3.bf16.msra.mxu0 %v13810_v57  ;;  %v13874_v56 = vld [vmem:[%s16732_s8 + $0x138] ss:$12 sps:$4 sm:$0xff]   ;;  %v13879_v57 = vld [vmem:[%s16732_s8 + $0x154] ss:$12 sps:$4 sm:$0xff]  }
 0xcc4   : > { %8456 = vmatprep.subr.bf16.mxu1 %v13813_v58  ;;  %12606 = vmatprep.subr.bf16.mxu0 %v14107_v29  ;;  %v13882_v58 = vld [vmem:[%s16732_s8 + $0x16c] ss:$12 sps:$4 sm:$0xff]  }
 0xcc7   : > { %8457 = vmatpush1.bf16.msra.mxu1 %v13811_v34  ;;  %12607 = vmatpush3.bf16.msra.mxu0 %v13814_v30  ;;  %v13885_v34 = vld [vmem:[%s16732_s8 + $0x184] ss:$12 sps:$4 sm:$0xff]   ;;  %v13883_v30 = vld [vmem:[%s16732_s8 + $0x180] ss:$12 sps:$4 sm:$0xff]  }
 0xcc8   : > { %8894 = vmatprep.subr.bf16.mxu1 %v13817_v59  ;;  %12375 = vmatprep.subr.bf16.mxu0 %v13818_v60  ;;  %v13888_v59 = vld [vmem:[%s16732_s8 + $0x19c] ss:$12 sps:$4 sm:$0xff]   ;;  %v13886_v60 = vld [vmem:[%s16732_s8 + $0x198] ss:$12 sps:$4 sm:$0xff]  }
 0xcca   : > { %11730 = vmatmul.mubr.msk.bf16.vlgmr.msra.gmra.mrb[104].mxu1 %vm8405_vm10, %v8003_v61  ;;  %12609 = vmatmul.mubr.msk.bf16.vlgmr.msra.gmra.mrb[136].mxu0 %vm8405_vm10, %v8003_v61  ;;  %v13891_v61 = vld [vmem:[%s16732_s8 + $0x1b4] ss:$12 sps:$4 sm:$0xff]  }
 0xccb   : > { %8895 = vmatpush1.bf16.msra.mxu1 %v13815_v62  ;;  %8926 = vmatprep.mubr.bf16.mxu1 %v7833_v44  ;;  %v13889_v62 = vld [vmem:[%s16732_s8 + $0x1b0] ss:$12 sps:$4 sm:$0xff]  }
 0xccc   : > { %12376 = vmatpush3.bf16.msra.mxu0 %v13819_v63  ;;  %9008 = vmatprep.mubr.bf16.mxu0 %v7833_v44  ;;  %v13894_v63 = vld [vmem:[%s16732_s8 + $0x1cc] ss:$12 sps:$4 sm:$0xff]   ;;  %v13892_v44 = vld [vmem:[%s16732_s8 + $0x1c8] ss:$12 sps:$4 sm:$0xff]  }
 0xccd   : > { %8896 = vmatprep.subr.bf16.mxu1 %v13822_v8  ;;  %12377 = vmatprep.subr.bf16.mxu0 %v13823_v1  ;;  %v13897_v8 = vld [vmem:[%s16732_s8 + $0x3c4] ss:$12 sps:$4 sm:$0xff]   ;;  %v13919_v1 = vld [vmem:[%s16732_s8 + $0x488] ss:$12 sps:$4 sm:$0xff]  }
 0xccf   : > { %8897 = vmatpush1.bf16.msra.mxu1 %v13820_v3  ;;  %v13920_v3 = vld [vmem:[%s16732_s8 + $0x3c8] ss:$12 sps:$4 sm:$0xff]  }
 0xcd0   : > { %12378 = vmatpush3.bf16.msra.mxu0 %v13824_v23  ;;  %8898 = vmatprep.subr.bf16.mxu1 %v13827_v31  ;;  %v13895_v23 = vld [vmem:[%s16732_s8 + $0x3c0] ss:$12 sps:$4 sm:$0xff]   ;;  %v13900_v31 = vld [vmem:[%s16732_s8 + $0x3dc] ss:$12 sps:$4 sm:$0xff]  }
 0xcd1   : > { %12379 = vmatprep.subr.bf16.mxu0 %v13828_v2  ;;  %v13898_v2 = vld [vmem:[%s16732_s8 + $0x3d8] ss:$12 sps:$4 sm:$0xff]  }
 0xcd3   : > { %8899 = vmatpush1.bf16.msra.mxu1 %v13825_v45  ;;  %v13903_v45 = vld [vmem:[%s16732_s8 + $0x3f4] ss:$12 sps:$4 sm:$0xff]  }
 0xcd4   : > { %12380 = vmatpush3.bf16.msra.mxu0 %v13829_v4  ;;  %8900 = vmatprep.subr.bf16.mxu1 %v13832_v6  ;;  %v13901_v4 = vld [vmem:[%s16732_s8 + $0x3f0] ss:$12 sps:$4 sm:$0xff]   ;;  %v13906_v6 = vld [vmem:[%s16732_s8 + $0x40c] ss:$12 sps:$4 sm:$0xff]  }
 0xcd5   : > { %12381 = vmatprep.subr.bf16.mxu0 %v13833_v9  ;;  %v13904_v9 = vld [vmem:[%s16732_s8 + $0x408] ss:$12 sps:$4 sm:$0xff]  }
 0xcd7   : > { %8901 = vmatpush1.bf16.msra.mxu1 %v13830_v22  ;;  %v13909_v22 = vld [vmem:[%s16732_s8 + $0x424] ss:$12 sps:$4 sm:$0xff]  }
 0xcd8   : > { %12382 = vmatpush3.bf16.msra.mxu0 %v13834_v13  ;;  %8902 = vmatprep.subr.bf16.mxu1 %v13837_v14  ;;  %v13907_v13 = vld [vmem:[%s16732_s8 + $0x420] ss:$12 sps:$4 sm:$0xff]   ;;  %v13912_v14 = vld [vmem:[%s16732_s8 + $0x43c] ss:$12 sps:$4 sm:$0xff]  }
 0xcd9   : > { %12383 = vmatprep.subr.bf16.mxu0 %v13838_v15  ;;  %v13910_v15 = vld [vmem:[%s16732_s8 + $0x438] ss:$12 sps:$4 sm:$0xff]  }
 0xcdb   : > { %8903 = vmatpush1.bf16.msra.mxu1 %v13835_v16  ;;  %v13915_v16 = vld [vmem:[%s16732_s8 + $0x454] ss:$12 sps:$4 sm:$0xff]  }
 0xcdc   : > { %12384 = vmatpush3.bf16.msra.mxu0 %v13839_v18  ;;  %8904 = vmatprep.subr.bf16.mxu1 %v13842_v11  ;;  %v13913_v18 = vld [vmem:[%s16732_s8 + $0x450] ss:$12 sps:$4 sm:$0xff]   ;;  %v13918_v11 = vld [vmem:[%s16732_s8 + $0x46c] ss:$12 sps:$4 sm:$0xff]  }
 0xcdd   : > { %12385 = vmatprep.subr.bf16.mxu0 %v13843_v17  ;;  %v13916_v17 = vld [vmem:[%s16732_s8 + $0x468] ss:$12 sps:$4 sm:$0xff]  }
 0xcdf   : > { %8905 = vmatpush1.bf16.msra.mxu1 %v13840_v21  ;;  %v13923_v21 = vld [vmem:[%s16732_s8 + $0x484] ss:$12 sps:$4 sm:$0xff]  }
 0xce0   : > { %12386 = vmatpush3.bf16.msra.mxu0 %v13844_v24  ;;  %8906 = vmatprep.subr.bf16.mxu1 %v13847_v7  ;;  %v13921_v24 = vld [vmem:[%s16732_s8 + $0x480] ss:$12 sps:$4 sm:$0xff]  }
 0xce1   : > { %12387 = vmatprep.subr.bf16.mxu0 %v13848_v26  ;;  %v13924_v7 = vld [vmem:[%s16732_s8 + $0x4a0] ss:$12 sps:$4 sm:$0xff]   ;;  %v13928_v26 = vld [vmem:[%s16732_s8 + $0x49c] ss:$12 sps:$4 sm:$0xff]  }
 0xce3   : > { %8907 = vmatpush1.bf16.msra.mxu1 %v13845_v27  ;;  %v13925_v27 = vld [vmem:[%s16732_s8 + $0x3e0] ss:$12 sps:$4 sm:$0xff]  }
 0xce4   : > { %12388 = vmatpush3.bf16.msra.mxu0 %v13849_v28  ;;  %8908 = vmatprep.subr.bf16.mxu1 %v13852_v35  ;;  %v13926_v28 = vld [vmem:[%s16732_s8 + $0x498] ss:$12 sps:$4 sm:$0xff]  }
 0xce5   : > { %12389 = vmatprep.subr.bf16.mxu0 %v13853_v20  ;;  %v13929_v35 = vld [vmem:[%s16732_s8 + $0x4b8] ss:$12 sps:$4 sm:$0xff]   ;;  %v13933_v20 = vld [vmem:[%s16732_s8 + $0x4b4] ss:$12 sps:$4 sm:$0xff]  }
 0xce7   : > { %8909 = vmatpush1.bf16.msra.mxu1 %v13850_v36  ;;  %v13930_v36 = vld [vmem:[%s16732_s8 + $0x3f8] ss:$12 sps:$4 sm:$0xff]  }
 0xce8   : > { %12390 = vmatpush3.bf16.msra.mxu0 %v13854_v32  ;;  %8910 = vmatprep.subr.bf16.mxu1 %v13857_v25  ;;  %v13931_v32 = vld [vmem:[%s16732_s8 + $0x4b0] ss:$12 sps:$4 sm:$0xff]  }
 0xce9   : > { %12612 = vmatprep.subr.bf16.mxu0 %v14107_v29  ;;  %v13934_v25 = vld [vmem:[%s16732_s8 + $0x4d0] ss:$12 sps:$4 sm:$0xff]  }
 0xceb   : > { %9009 = vmatmul.mubr.bf16.vlgmr.msra.gmra.mrb[140].mxu0 %v7832_v42  ;;  %8911 = vmatpush1.bf16.msra.mxu1 %v13855_v10  ;;  %v13938_v10 = vld [vmem:[%s16732_s8 + $0x4cc] ss:$12 sps:$4 sm:$0xff]  }
 0xcec   : > { %12613 = vmatpush3.bf16.msra.mxu0 %v13858_v39  ;;  %8912 = vmatprep.subr.bf16.mxu1 %v13861_v41  ;;  %v13935_v39 = vld [vmem:[%s16732_s8 + $0x410] ss:$12 sps:$4 sm:$0xff]   ;;  %v13936_v41 = vld [vmem:[%s16732_s8 + $0x4c8] ss:$12 sps:$4 sm:$0xff]  }
 0xced   : > { %12614 = vmatprep.subr.bf16.mxu0 %v14107_v29  ;;  %12620 = vmatprep.mubr.msk.bf16.mxu0 %vm14108_vm1, %v14107_v29 }
 0xcef   : > { %8913 = vmatpush1.bf16.msra.mxu1 %v13859_v43  ;;  %v13943_v43 = vld [vmem:[%s16732_s8 + $0x4e4] ss:$12 sps:$4 sm:$0xff]  }
 0xcf0   : > { %12615 = vmatpush3.bf16.msra.mxu0 %v13862_v46  ;;  %8914 = vmatprep.subr.bf16.mxu1 %v13865_v47  ;;  %v13940_v46 = vld [vmem:[%s16732_s8 + $0x428] ss:$12 sps:$4 sm:$0xff]   ;;  %v13941_v47 = vld [vmem:[%s16732_s8 + $0x4e0] ss:$12 sps:$4 sm:$0xff]  }
 0xcf1   : > { %12616 = vmatprep.subr.bf16.mxu0 %v14107_v29 }
 0xcf3   : > { %8915 = vmatpush1.bf16.msra.mxu1 %v13863_v19  ;;  %v13944_v19 = vld [vmem:[%s16732_s8 + $0x500] ss:$12 sps:$4 sm:$0xff]  }
 0xcf4   : > { %12617 = vmatpush3.bf16.msra.mxu0 %v13866_v48  ;;  %8916 = vmatprep.subr.bf16.mxu1 %v13869_v49  ;;  %v13948_v48 = vld [vmem:[%s16732_s8 + $0x4fc] ss:$12 sps:$4 sm:$0xff]   ;;  %v13945_v49 = vld [vmem:[%s16732_s8 + $0x440] ss:$12 sps:$4 sm:$0xff]  }
 0xcf5   : > { %12618 = vmatprep.subr.bf16.mxu0 %v14107_v29 }
 0xcf7   : > { %8917 = vmatpush1.bf16.msra.mxu1 %v13867_v53  ;;  %v13946_v53 = vld [vmem:[%s16732_s8 + $0x4f8] ss:$12 sps:$4 sm:$0xff]  }
 0xcf8   : > { %12619 = vmatpush3.bf16.msra.mxu0 %v13870_v55  ;;  %8918 = vmatprep.subr.bf16.mxu1 %v13873_v12  ;;  %v13949_v55 = vld [vmem:[%s16732_s8 + $0x518] ss:$12 sps:$4 sm:$0xff]  }
 0xcf9   : > { %11795 = vmatprep.subr.msk.bf16.mxu0 %vm7741_vm8, %v15906_v51  ;;  %v13950_v12 = vld [vmem:[%s16732_s8 + $0x458] ss:$12 sps:$4 sm:$0xff]  }
 0xcfb   : > { %12621 = vmatmul.mubr.msk.bf16.vlgmr.msra.gmra.mrb[136].mxu0 %vm8405_vm10, %v7834_v5  ;;  %8919 = vmatpush1.bf16.msra.mxu1 %v13871_v50  ;;  %v13953_v50 = vld [vmem:[%s16732_s8 + $0x514] ss:$12 sps:$4 sm:$0xff]  }
 0xcfc   : > { %9062 = vmatpush1.bf16.msra.mxu0 %v15909_v52  ;;  %8920 = vmatprep.subr.bf16.mxu1 %v13876_v38  ;;  %v13951_v38 = vld [vmem:[%s16732_s8 + $0x510] ss:$12 sps:$4 sm:$0xff]  }
 0xcfd   : > { %9093 = vmatprep.mubr.bf16.mxu0 %v14106_v0  ;;  %12624 = vmatprep.subr.bf16.mxu0 %v14107_v29 }
 0xcff   : > { %8921 = vmatpush1.bf16.msra.mxu1 %v13874_v56  ;;  %v13958_v56 = vld [vmem:[%s16732_s8 + $0x52c] ss:$12 sps:$4 sm:$0xff]  }
 0xd00   : > { %8922 = vmatprep.subr.bf16.mxu1 %v13879_v57  ;;  %v13955_v57 = vld [vmem:[%s16732_s8 + $0x470] ss:$12 sps:$4 sm:$0xff]  }
 0xd03   : > { %11796 = vmatmul.mubr.msk.bf16.vlgmr.msra.gmra.mrb[144].mxu0 %vm7737_vm9, %v11794_v33  ;;  %8923 = vmatpush1.bf16.msra.mxu1 %v13877_v37  ;;  %v13956_v37 = vld [vmem:[%s16732_s8 + $0x528] ss:$12 sps:$4 sm:$0xff]  }
 0xd04   : > { %12625 = vmatpush3.bf16.msra.mxu0 %v15920_v54  ;;  %8924 = vmatprep.subr.bf16.mxu1 %v13882_v58 }
 0xd05   : > { %12626 = vmatprep.mubr.msk.bf16.mxu0 %vm14108_vm1, %v14107_v29  ;;  %12404 = vmatprep.subr.bf16.mxu0 %v13919_v1 }
 0xd07   : > { %8925 = vmatpush1.bf16.msra.mxu1 %v13880_v40 }
 0xd08   : > { %8935 = vmatprep.subr.bf16.mxu1 %v13885_v34 }
 0xd0a   : > { %8927 = vmatmul.mubr.bf16.vlgmr.msra.gmra.mrb[104].mxu1 %v7832_v42  ;;  %v13939_v42 = vld [vmem:[%s16732_s8 + $0x4e8] ss:$12 sps:$4 sm:$0xff]  }
 0xd0b   : > { %8936 = vmatpush1.bf16.msra.mxu1 %v13883_v30  ;;  %12627 = vmatmul.mubr.msk.bf16.vlgmr.msra.gmra.mrb[148].mxu0 %vm7737_vm9, %v11794_v33  ;;  %v13963_v33 = vld [vmem:[%s16732_s8 + $0x544] ss:$12 sps:$4 sm:$0xff]  }
 0xd0c   : > { %8937 = vmatprep.subr.bf16.mxu1 %v13888_v59  ;;  %8967 = vmatprep.mubr.bf16.mxu1 %v14106_v0 }
 0xd0d   : > { %12405 = vmatpush3.bf16.msra.mxu0 %v13920_v3 }
 0xd0e   : > { %12406 = vmatprep.subr.bf16.mxu0 %v13924_v7  ;;  %v13968_v7 = vld [vmem:[%s16732_s8 + $0x590] ss:$12 sps:$4 sm:$0xff]  }
 0xd0f   : > { %8938 = vmatpush1.bf16.msra.mxu1 %v13886_v60 }
 0xd10   : > { %8939 = vmatprep.subr.bf16.mxu1 %v13891_v61 }
 0xd11   : > { %12407 = vmatpush3.bf16.msra.mxu0 %v13925_v27  ;;  %v13977_v27 = vld [vmem:[%s16732_s8 + $0x5a4] ss:$12 sps:$4 sm:$0xff]  }
 0xd12   : > { %12408 = vmatprep.subr.bf16.mxu0 %v13929_v35  ;;  %v13975_v35 = vld [vmem:[%s16732_s8 + $0x5a0] ss:$12 sps:$4 sm:$0xff]  }
 0xd13   : > { %8940 = vmatpush1.bf16.msra.mxu1 %v13889_v62 }
 0xd14   : > { %8941 = vmatprep.subr.bf16.mxu1 %v13894_v63 }
 0xd15   : > { %12409 = vmatpush3.bf16.msra.mxu0 %v13930_v36  ;;  %v13983_v36 = vld [vmem:[%s16732_s8 + $0x5d4] ss:$12 sps:$4 sm:$0xff]  }
 0xd16   : > { %12410 = vmatprep.subr.bf16.mxu0 %v13934_v25  ;;  %v14002_v25 = vld [vmem:[%s16732_s8 + $0x668] ss:$12 sps:$4 sm:$0xff]  }
 0xd17   : > { %8942 = vmatpush1.bf16.msra.mxu1 %v13892_v44 }
 0xd18   : > { %9549 = vmatprep.subr.bf16.mxu1 %v13897_v8 }
 0xd19   : > { %12411 = vmatpush3.bf16.msra.mxu0 %v13935_v39  ;;  %v13984_v39 = vld [vmem:[%s16732_s8 + $0x5e8] ss:$12 sps:$4 sm:$0xff]  }
 0xd1a   : > { %11792 = vmatmul.mubr.msk.bf16.vlgmr.msra.gmra.mrb[104].mxu1 %vm8405_vm10, %v7834_v5  ;;  %12412 = vmatprep.subr.bf16.mxu0 %v13939_v42  ;;  %v13954_v5 = vld [vmem:[%s16732_s8 + $0x530] ss:$12 sps:$4 sm:$0xff]   ;;  %v14003_v42 = vld [vmem:[%s16732_s8 + $0x5a8] ss:$12 sps:$4 sm:$0xff]  }
 0xd1b   : > { %9550 = vmatpush1.bf16.msra.mxu1 %v13895_v23 }
 0xd1c   : > { %9551 = vmatprep.subr.bf16.mxu1 %v13900_v31 }
 0xd1d   : > { %12413 = vmatpush3.bf16.msra.mxu0 %v13940_v46  ;;  %v13992_v46 = vld [vmem:[%s16732_s8 + $0x61c] ss:$12 sps:$4 sm:$0xff]  }
 0xd1e   : > { %12414 = vmatprep.subr.bf16.mxu0 %v13944_v19  ;;  %v13995_v19 = vld [vmem:[%s16732_s8 + $0x634] ss:$12 sps:$4 sm:$0xff]  }
 0xd1f   : > { %9552 = vmatpush1.bf16.msra.mxu1 %v13898_v2  ;;  %v13959_v2 = vld [vmem:[%s16732_s8 + $0x548] ss:$12 sps:$4 sm:$0xff]  }
 0xd20   : > { %9553 = vmatprep.subr.bf16.mxu1 %v13903_v45  ;;  %v13961_v45 = vld [vmem:[%s16732_s8 + $0x540] ss:$12 sps:$4 sm:$0xff]  }
 0xd21   : > { %12415 = vmatpush3.bf16.msra.mxu0 %v13945_v49  ;;  %v13998_v49 = vld [vmem:[%s16732_s8 + $0x64c] ss:$12 sps:$4 sm:$0xff]  }
 0xd22   : > { %12416 = vmatprep.subr.bf16.mxu0 %v13949_v55  ;;  %v14001_v55 = vld [vmem:[%s16732_s8 + $0x664] ss:$12 sps:$4 sm:$0xff]  }
 0xd23   : > { %9554 = vmatpush1.bf16.msra.mxu1 %v13901_v4 }
 0xd24   : > { %9555 = vmatprep.subr.bf16.mxu1 %v13906_v6 }
 0xd25   : > { %12417 = vmatpush3.bf16.msra.mxu0 %v13950_v12  ;;  %v13999_v12 = vld [vmem:[%s16732_s8 + $0x660] ss:$12 sps:$4 sm:$0xff]  }
 0xd26   : > { %12418 = vmatprep.subr.bf16.mxu0 %v13954_v5  ;;  %v14008_v5 = vld [vmem:[%s16732_s8 + $0x5c0] ss:$12 sps:$4 sm:$0xff]  }
 0xd27   : > { %9556 = vmatpush1.bf16.msra.mxu1 %v13904_v9  ;;  %v13967_v9 = vld [vmem:[%s16732_s8 + $0x55c] ss:$12 sps:$4 sm:$0xff]  }
 0xd28   : > { %9557 = vmatprep.subr.bf16.mxu1 %v13909_v22  ;;  %v13960_v22 = vld [vmem:[%s16732_s8 + $0x560] ss:$12 sps:$4 sm:$0xff]  }
 0xd29   : > { %12419 = vmatpush3.bf16.msra.mxu0 %v13955_v57  ;;  %v14012_v57 = vld [vmem:[%s16732_s8 + $0x698] ss:$12 sps:$4 sm:$0xff]  }
 0xd2a   : > { %12630 = vmatprep.subr.bf16.mxu0 %v14107_v29 }
 0xd2b   : > { %9558 = vmatpush1.bf16.msra.mxu1 %v13907_v13  ;;  %v13965_v13 = vld [vmem:[%s16732_s8 + $0x558] ss:$12 sps:$4 sm:$0xff]  }
 0xd2c   : > { %9559 = vmatprep.subr.bf16.mxu1 %v13912_v14  ;;  %v13971_v14 = vld [vmem:[%s16732_s8 + $0x574] ss:$12 sps:$4 sm:$0xff]  }
 0xd2f   : > { %9560 = vmatpush1.bf16.msra.mxu1 %v13910_v15 }
 0xd30   : > { %9561 = vmatprep.subr.bf16.mxu1 %v13915_v16 }
 0xd33   : > { %9562 = vmatpush1.bf16.msra.mxu1 %v13913_v18  ;;  %v13964_v18 = vld [vmem:[%s16732_s8 + $0x578] ss:$12 sps:$4 sm:$0xff]  }
 0xd34   : > { %9563 = vmatprep.subr.bf16.mxu1 %v13918_v11  ;;  %v13969_v11 = vld [vmem:[%s16732_s8 + $0x570] ss:$12 sps:$4 sm:$0xff]  }
 0xd37   : > { %9564 = vmatpush1.bf16.msra.mxu1 %v13916_v17 }
 0xd38   : > { %9565 = vmatprep.subr.bf16.mxu1 %v13923_v21  ;;  %v13974_v21 = vld [vmem:[%s16732_s8 + $0x58c] ss:$12 sps:$4 sm:$0xff]  }
 0xd3b   : > { %9566 = vmatpush1.bf16.msra.mxu1 %v13921_v24 }
 0xd3c   : > { %9567 = vmatprep.subr.bf16.mxu1 %v13928_v26  ;;  %v13972_v26 = vld [vmem:[%s16732_s8 + $0x588] ss:$12 sps:$4 sm:$0xff]  }
 0xd3f   : > { %9568 = vmatpush1.bf16.msra.mxu1 %v13926_v28 }
 0xd40   : > { %9569 = vmatprep.subr.bf16.mxu1 %v13933_v20  ;;  %v13980_v20 = vld [vmem:[%s16732_s8 + $0x5bc] ss:$12 sps:$4 sm:$0xff]  }
 0xd43   : > { %9570 = vmatpush1.bf16.msra.mxu1 %v13931_v32  ;;  %v11940_v32 = vld [vmem:[%s16731_s7 + $0xc] sm:$0x7] }
 0xd44   : > { %9571 = vmatprep.subr.bf16.mxu1 %v13938_v10  ;;  %v13986_v10 = vld [vmem:[%s16732_s8 + $0x5ec] ss:$12 sps:$4 sm:$0xff]  }
 0xd47   : > { %9572 = vmatpush1.bf16.msra.mxu1 %v13936_v41  ;;  %v13989_v41 = vld [vmem:[%s16732_s8 + $0x604] ss:$12 sps:$4 sm:$0xff]  }
 0xd48   : > { %9573 = vmatprep.subr.bf16.mxu1 %v13943_v43  ;;  %v14007_v43 = vld [vmem:[%s16732_s8 + $0x680] ss:$12 sps:$4 sm:$0xff]  }
 0xd4b   : > { %9574 = vmatpush1.bf16.msra.mxu1 %v13941_v47  ;;  %v13990_v47 = vld [vmem:[%s16732_s8 + $0x618] ss:$12 sps:$4 sm:$0xff]  }
 0xd4c   : > { %9575 = vmatprep.subr.bf16.mxu1 %v13948_v48  ;;  %v13993_v48 = vld [vmem:[%s16732_s8 + $0x630] ss:$12 sps:$4 sm:$0xff]  }
 0xd4f   : > { %9576 = vmatpush1.bf16.msra.mxu1 %v13946_v53  ;;  %v13996_v53 = vld [vmem:[%s16732_s8 + $0x648] ss:$12 sps:$4 sm:$0xff]  }
 0xd50   : > { %9577 = vmatprep.subr.bf16.mxu1 %v13953_v50  ;;  %v14006_v50 = vld [vmem:[%s16732_s8 + $0x67c] ss:$12 sps:$4 sm:$0xff]  }
 0xd53   : > { %9578 = vmatpush1.bf16.msra.mxu1 %v13951_v38  ;;  %v14004_v38 = vld [vmem:[%s16732_s8 + $0x678] ss:$12 sps:$4 sm:$0xff]  }
 0xd54   : > { %9579 = vmatprep.subr.bf16.mxu1 %v13958_v56  ;;  %v14011_v56 = vld [vmem:[%s16732_s8 + $0x694] ss:$12 sps:$4 sm:$0xff]  }
 0xd57   : > { %9580 = vmatpush1.bf16.msra.mxu1 %v13956_v37  ;;  %v14009_v37 = vld [vmem:[%s16732_s8 + $0x690] ss:$12 sps:$4 sm:$0xff]  }
 0xd58   : > { %9590 = vmatprep.subr.bf16.mxu1 %v13963_v33  ;;  %v14013_v33 = vld [vmem:[%s16732_s8 + $0x5d8] ss:$12 sps:$4 sm:$0xff]  }
 0xd8d   : > { %v12364_v58 = vpop.f32.mrb[132].mxu0 }
 0xd8e   : > { %v12365_v40 = vpop.f32.mrb[133].mxu0 }
 0xd8f   : > { %v12366_v34 = vadd.f32 %v12365_v40, %v12364_v58  ;;  %v12367_v30 = vpop.f32.mrb[134].mxu0  ;;  %v14016_v58 = vld [vmem:[%s16732_s8 + $0x6ac] ss:$12 sps:$4 sm:$0xff]   ;;  %v14017_v40 = vld [vmem:[%s16732_s8 + $0x6b0] ss:$12 sps:$4 sm:$0xff]  }
 0xd90   : > { %v12368_v59 = vpop.f32.mrb[135].mxu0  ;;  %v14018_v30 = vld [vmem:[%s16732_s8 + $0x5f0] ss:$12 sps:$4 sm:$0xff]  }
 0xd91   : > { %v14021_v59 = vld [vmem:[%s16732_s8 + $0x6c4] ss:$12 sps:$4 sm:$0xff]  }
 0xdbe   : > { %v12391_v60 = vpop.f32.mrb[140].mxu0 }
 0xdbf   : > { %v12392_v61 = vpop.f32.mrb[141].mxu0 }
 0xdc0   : > { %v12393_v62 = vadd.f32 %v12392_v61, %v12391_v60  ;;  %v12394_v63 = vpop.f32.mrb[142].mxu0  ;;  %v14022_v60 = vld [vmem:[%s16732_s8 + $0x6c8] ss:$12 sps:$4 sm:$0xff]   ;;  %v14019_v61 = vld [vmem:[%s16732_s8 + $0x6c0] ss:$12 sps:$4 sm:$0xff]  }
 0xdc1   : > { %v12395_v44 = vpop.f32.mrb[143].mxu0  ;;  %v14026_v63 = vld [vmem:[%s16732_s8 + $0x6dc] ss:$12 sps:$4 sm:$0xff]  }
 0xdc2   : > { %v16462_v8 = vadd.f32 %v12393_v62, %v12366_v34  ;;  %v14014_v34 = vld [vmem:[%s16732_s8 + $0x6a8] ss:$12 sps:$4 sm:$0xff]   ;;  %v14027_v44 = vld [vmem:[%s16732_s8 + $0x6e0] ss:$12 sps:$4 sm:$0xff]  }
 0xdc3   : > { %v14023_v62 = vld [vmem:[%s16732_s8 + $0x608] ss:$12 sps:$4 sm:$0xff]  }
 0xdd6   : > { %v9095_v1 = vpop.f32.mrb[144].mxu0 }
 0xdd7   : > { %v9097_v3 = vpop.f32.mrb[145].mxu0  ;;  %v9142_v4 = vpack.c.bf16 %v9095_v1, %v9095_v1  ;;  %v14024_v1 = vld [vmem:[%s16732_s8 + $0x6d8] ss:$12 sps:$4 sm:$0xff]  }
 0xdd8   : > { %v9143_v23 = vpack.c.bf16 %v9097_v3, %v9097_v3  ;;  %v9099_v31 = vpop.f32.mrb[146].mxu0  ;;  %v14028_v3 = vld [vmem:[%s16732_s8 + $0x620] ss:$12 sps:$4 sm:$0xff]  }
 0xdd9   : > { %v9100_v6 = vpop.f32.mrb[147].mxu0  ;;  %v14032_v31 = vld [vmem:[%s16732_s8 + $0x6f8] ss:$12 sps:$4 sm:$0xff]  }
 0xdda   : > { %9663 = vmatprep.mubr.bf16.mxu0 %v9143_v23  ;;  %9581 = vmatprep.mubr.bf16.mxu1 %v9143_v23  ;;  %v14031_v23 = vld [vmem:[%s16732_s8 + $0x6f4] ss:$12 sps:$4 sm:$0xff]   ;;  %v14037_v6 = vld [vmem:[%s16732_s8 + $0x710] ss:$12 sps:$4 sm:$0xff]  }
 0xddb   : > { %9664 = vmatmul.mubr.bf16.vlgmr.msra.gmra.mrb[152].mxu0 %v9142_v4  ;;  %9582 = vmatmul.mubr.bf16.vlgmr.msra.gmra.mrb[104].mxu1 %v9142_v4  ;;  %v14036_v4 = vld [vmem:[%s16732_s8 + $0x70c] ss:$12 sps:$4 sm:$0xff]  }
 0xddc   : > { %12631 = vmatpush3.bf16.msra.mxu0 %v13959_v2  ;;  %9591 = vmatpush1.bf16.msra.mxu1 %v13961_v45  ;;  %v14029_v2 = vld [vmem:[%s16732_s8 + $0x6f0] ss:$12 sps:$4 sm:$0xff]   ;;  %v14033_v45 = vld [vmem:[%s16732_s8 + $0x638] ss:$12 sps:$4 sm:$0xff]  }
 0xddd   : > { %12632 = vmatprep.subr.bf16.mxu0 %v14107_v29  ;;  %9592 = vmatprep.subr.bf16.mxu1 %v13967_v9  ;;  %v14034_v9 = vld [vmem:[%s16732_s8 + $0x708] ss:$12 sps:$4 sm:$0xff]  }
 0xdde   : > { %v9136_v15 = vpop.f32.mrb[148].mxu0  ;;  %12638 = vmatprep.mubr.msk.bf16.mxu0 %vm14108_vm1, %v14107_v29  ;;  %9622 = vmatprep.mubr.bf16.mxu1 %v14106_v0 }
 0xddf   : > { %v12628_v16 = vpop.f32.mrb[149].mxu0  ;;  %v9144_v28 = vpack.c.bf16 %v9136_v15, %v9136_v15 }
 0xde0   : > { %12633 = vmatpush3.bf16.msra.mxu0 %v13960_v22  ;;  %9593 = vmatpush1.bf16.msra.mxu1 %v13965_v13  ;;  %v9139_v17 = vpop.f32.mrb[150].mxu0  ;;  %v14038_v22 = vld [vmem:[%s16732_s8 + $0x650] ss:$12 sps:$4 sm:$0xff]  }
 0xde1   : > { %12634 = vmatprep.subr.bf16.mxu0 %v14107_v29  ;;  %9594 = vmatprep.subr.bf16.mxu1 %v13971_v14  ;;  %v12629_v24 = vpop.f32.mrb[151].mxu0  ;;  %v14041_v13 = vld [vmem:[%s16732_s8 + $0x724] ss:$12 sps:$4 sm:$0xff]  }
 0xde4   : > { %12635 = vmatpush3.bf16.msra.mxu0 %v13964_v18  ;;  %9595 = vmatpush1.bf16.msra.mxu1 %v13969_v11 }
 0xde5   : > { %12636 = vmatprep.subr.bf16.mxu0 %v14107_v29  ;;  %9596 = vmatprep.subr.bf16.mxu1 %v13974_v21 }
 0xde8   : > { %12637 = vmatpush3.bf16.msra.mxu0 %v13968_v7  ;;  %9597 = vmatpush1.bf16.msra.mxu1 %v13972_v26  ;;  %v14039_v26 = vld [vmem:[%s16732_s8 + $0x720] ss:$12 sps:$4 sm:$0xff]  }
 0xde9   : > { %11941 = vmatprep.subr.msk.bf16.mxu0 %vm7741_vm8, %v15906_v51  ;;  %10207 = vmatprep.subr.bf16.mxu1 %v13977_v27  ;;  %v13978_v51 = vld [vmem:[%s16732_s8 + $0x5b8] ss:$12 sps:$4 sm:$0xff]  }
 0xdeb   : > { %12639 = vmatmul.mubr.msk.bf16.vlgmr.msra.gmra.mrb[136].mxu0 %vm8405_vm10, %v9144_v28  ;;  %11938 = vmatmul.mubr.msk.bf16.vlgmr.msra.gmra.mrb[104].mxu1 %vm8405_vm10, %v9144_v28  ;;  %v14042_v28 = vld [vmem:[%s16732_s8 + $0x728] ss:$12 sps:$4 sm:$0xff]  }
 0xdec   : > { %9720 = vmatpush1.bf16.msra.mxu0 %v15909_v52  ;;  %9751 = vmatprep.mubr.bf16.mxu0 %v14106_v0  ;;  %v13981_v52 = vld [vmem:[%s16732_s8 + $0x5d0] ss:$12 sps:$4 sm:$0xff]  }
 0xded   : > { %12642 = vmatprep.subr.bf16.mxu0 %v14107_v29  ;;  %10208 = vmatpush1.bf16.msra.mxu1 %v13975_v35 }
 0xdee   : > { %10209 = vmatprep.subr.bf16.mxu1 %v13980_v20 }
 0xdf1   : > { %10210 = vmatpush1.bf16.msra.mxu1 %v13978_v51  ;;  %v14045_v51 = vld [vmem:[%s16732_s8 + $0x73c] ss:$12 sps:$4 sm:$0xff]  }
 0xdf2   : > { %10211 = vmatprep.subr.bf16.mxu1 %v13983_v36  ;;  %v14046_v36 = vld [vmem:[%s16732_s8 + $0x740] ss:$12 sps:$4 sm:$0xff]  }
 0xdf3   : > { %11942 = vmatmul.mubr.msk.bf16.vlgmr.msra.gmra.mrb[156].mxu0 %vm7737_vm9, %v11940_v32 }
 0xdf4   : > { %12643 = vmatpush3.bf16.msra.mxu0 %v15920_v54  ;;  %12644 = vmatprep.mubr.msk.bf16.mxu0 %vm14108_vm1, %v14107_v29  ;;  %v13987_v54 = vld [vmem:[%s16732_s8 + $0x600] ss:$12 sps:$4 sm:$0xff]  }
 0xdf5   : > { %10212 = vmatpush1.bf16.msra.mxu1 %v13981_v52  ;;  %12433 = vmatprep.subr.bf16.mxu0 %v14002_v25 }
 0xdf6   : > { %10213 = vmatprep.subr.bf16.mxu1 %v13986_v10  ;;  %v14047_v10 = vld [vmem:[%s16732_s8 + $0x750] ss:$12 sps:$4 sm:$0xff]  }
 0xdf9   : > { %10214 = vmatpush1.bf16.msra.mxu1 %v13984_v39  ;;  %v14050_v39 = vld [vmem:[%s16732_s8 + $0x758] ss:$12 sps:$4 sm:$0xff]  }
 0xdfa   : > { %10215 = vmatprep.subr.bf16.mxu1 %v13989_v41 }
 0xdfb   : > { %12645 = vmatmul.mubr.msk.bf16.vlgmr.msra.gmra.mrb[160].mxu0 %vm7737_vm9, %v11940_v32  ;;  %v14049_v32 = vld [vmem:[%s16732_s8 + $0x754] ss:$12 sps:$4 sm:$0xff]  }
 0xdfc   : > { %12434 = vmatpush3.bf16.msra.mxu0 %v14003_v42 }
 0xdfd   : > { %10216 = vmatpush1.bf16.msra.mxu1 %v13987_v54  ;;  %12435 = vmatprep.subr.bf16.mxu0 %v14007_v43  ;;  %v14051_v54 = vld [vmem:[%s16732_s8 + $0x768] ss:$12 sps:$4 sm:$0xff]   ;;  %v14054_v43 = vld [vmem:[%s16732_s8 + $0x770] ss:$12 sps:$4 sm:$0xff]  }
 0xdfe   : > { %10217 = vmatprep.subr.bf16.mxu1 %v13992_v46 }
 0xe00   : > { %12436 = vmatpush3.bf16.msra.mxu0 %v14008_v5 }
 0xe01   : > { %10218 = vmatpush1.bf16.msra.mxu1 %v13990_v47  ;;  %12437 = vmatprep.subr.bf16.mxu0 %v14012_v57 }
 0xe02   : > { %10219 = vmatprep.subr.bf16.mxu1 %v13995_v19 }
 0xe04   : > { %12438 = vmatpush3.bf16.msra.mxu0 %v14013_v33 }
 0xe05   : > { %10220 = vmatpush1.bf16.msra.mxu1 %v13993_v48  ;;  %12439 = vmatprep.subr.bf16.mxu0 %v14017_v40 }
 0xe06   : > { %10221 = vmatprep.subr.bf16.mxu1 %v13998_v49 }
 0xe08   : > { %12440 = vmatpush3.bf16.msra.mxu0 %v14018_v30 }
 0xe09   : > { %10222 = vmatpush1.bf16.msra.mxu1 %v13996_v53  ;;  %12441 = vmatprep.subr.bf16.mxu0 %v14022_v60 }
 0xe0a   : > { %10223 = vmatprep.subr.bf16.mxu1 %v14001_v55 }
 0xe0c   : > { %12442 = vmatpush3.bf16.msra.mxu0 %v14023_v62 }
 0xe0d   : > { %10224 = vmatpush1.bf16.msra.mxu1 %v13999_v12  ;;  %12443 = vmatprep.subr.bf16.mxu0 %v14027_v44 }
 0xe0e   : > { %10225 = vmatprep.subr.bf16.mxu1 %v14006_v50 }
 0xe10   : > { %12444 = vmatpush3.bf16.msra.mxu0 %v14028_v3  ;;  %v10388_v3 = vld [vmem:[%s16733_s9 + $0x8] sm:$0x3f] }
 0xe11   : > { %10226 = vmatpush1.bf16.msra.mxu1 %v14004_v38  ;;  %12445 = vmatprep.subr.bf16.mxu0 %v14032_v31  ;;  %v10389_v31 = vld [vmem:[%s16733_s9 + $0x10] sm:$0x3f] }
 0xe12   : > { %10227 = vmatprep.subr.bf16.mxu1 %v14011_v56 }
 0xe14   : > { %12446 = vmatpush3.bf16.msra.mxu0 %v14033_v45 }
 0xe15   : > { %10228 = vmatpush1.bf16.msra.mxu1 %v14009_v37  ;;  %12447 = vmatprep.subr.bf16.mxu0 %v14037_v6 }
 0xe16   : > { %10229 = vmatprep.subr.bf16.mxu1 %v14016_v58 }
 0xe18   : > { %12448 = vmatpush3.bf16.msra.mxu0 %v14038_v22 }
 0xe19   : > { %10230 = vmatpush1.bf16.msra.mxu1 %v14014_v34  ;;  %12648 = vmatprep.subr.bf16.mxu0 %v14107_v29 }
 0xe1a   : > { %10231 = vmatprep.subr.bf16.mxu1 %v14021_v59 }
 0xe1d   : > { %10232 = vmatpush1.bf16.msra.mxu1 %v14019_v61 }
 0xe1e   : > { %10233 = vmatprep.subr.bf16.mxu1 %v14026_v63  ;;  %v10387_v63 = vld [vmem:[%s16733_s9] sm:$0x3f] }
 0xe21   : > { %10234 = vmatpush1.bf16.msra.mxu1 %v14024_v1 }
 0xe22   : > { %10235 = vmatprep.subr.bf16.mxu1 %v14031_v23 }
 0xe25   : > { %10236 = vmatpush1.bf16.msra.mxu1 %v14029_v2 }
 0xe26   : > { %10237 = vmatprep.subr.bf16.mxu1 %v14036_v4 }
 0xe29   : > { %10238 = vmatpush1.bf16.msra.mxu1 %v14034_v9 }
 0xe2a   : > { %10248 = vmatprep.subr.bf16.mxu1 %v14041_v13 }
 0xeae   : > { %v12420_v14 = vpop.f32.mrb[152].mxu0 }
 0xeaf   : > { %v12421_v15 = vpop.f32.mrb[153].mxu0 }
 0xeb0   : > { %v12422_v16 = vadd.f32 %v12421_v15, %v12420_v14  ;;  %v12423_v18 = vpop.f32.mrb[154].mxu0 }
 0xeb1   : > { %v12424_v11 = vpop.f32.mrb[155].mxu0 }
 0xeb2   : > { %v12681_v17 = vadd.f32 %v16462_v8, %v12422_v16  ;;  %v14043_v8 = vld [vmem:[%s16732_s8 + $0x738] ss:$12 sps:$4 sm:$0xff]  }
 0xec6   : > { %v9753_v21 = vpop.f32.mrb[156].mxu0 }
 0xec7   : > { %v9755_v24 = vpop.f32.mrb[157].mxu0  ;;  %v9800_v35 = vpack.c.bf16 %v9753_v21, %v9753_v21 }
 0xec8   : > { %v9801_v7 = vpack.c.bf16 %v9755_v24, %v9755_v24  ;;  %v9757_v27 = vpop.f32.mrb[158].mxu0 }
 0xec9   : > { %v9758_v20 = vpop.f32.mrb[159].mxu0 }
 0xeca   : > { %10239 = vmatprep.mubr.bf16.mxu1 %v9801_v7  ;;  %10321 = vmatprep.mubr.bf16.mxu0 %v9801_v7 }
 0xecb   : > { %10240 = vmatmul.mubr.bf16.vlgmr.msra.gmra.mrb[104].mxu1 %v9800_v35  ;;  %10322 = vmatmul.mubr.bf16.vlgmr.msra.gmra.mrb[164].mxu0 %v9800_v35 }
 0xecc   : > { %10249 = vmatpush1.bf16.msra.mxu1 %v14039_v26  ;;  %12649 = vmatpush3.bf16.msra.mxu0 %v14042_v28 }
 0xecd   : > { %10250 = vmatprep.subr.bf16.mxu1 %v14045_v51  ;;  %12650 = vmatprep.subr.bf16.mxu0 %v14107_v29 }
 0xece   : > { %v9794_v52 = vpop.f32.mrb[160].mxu0  ;;  %10280 = vmatprep.mubr.bf16.mxu1 %v14106_v0  ;;  %12656 = vmatprep.mubr.msk.bf16.mxu0 %vm14108_vm1, %v14107_v29  ;;  %v14053_v0 = vld [vmem:[%s16732_s8 + $0x76c] ss:$12 sps:$4 sm:$0xff]  }
 0xecf   : > { %v12646_v25 = vpop.f32.mrb[161].mxu0  ;;  %v9802_v46 = vpack.c.bf16 %v9794_v52, %v9794_v52 }
 0xed0   : > { %10251 = vmatpush1.bf16.msra.mxu1 %v14043_v8  ;;  %12651 = vmatpush3.bf16.msra.mxu0 %v14046_v36  ;;  %v9797_v41 = vpop.f32.mrb[162].mxu0 }
 0xed1   : > { %10252 = vmatprep.subr.bf16.mxu1 %v14049_v32  ;;  %12652 = vmatprep.subr.bf16.mxu0 %v14107_v29  ;;  %v12647_v42 = vpop.f32.mrb[163].mxu0 }
 0xed4   : > { %10253 = vmatpush1.bf16.msra.mxu1 %v14047_v10  ;;  %12653 = vmatpush3.bf16.msra.mxu0 %v14050_v39 }
 0xed5   : > { %10254 = vmatprep.subr.bf16.mxu1 %v14053_v0  ;;  %12654 = vmatprep.subr.bf16.mxu0 %v14107_v29 }
 0xed8   : > { %10255 = vmatpush1.bf16.msra.mxu1 %v14051_v54  ;;  %12655 = vmatpush3.bf16.msra.mxu0 %v14054_v43 }
 0xedb   : > { %12084 = vmatmul.mubr.msk.bf16.vlgmr.msra.gmra.mrb[104].mxu1 %vm8405_vm10, %v9802_v46  ;;  %12657 = vmatmul.mubr.msk.bf16.vlgmr.msra.gmra.mrb[136].mxu0 %vm8405_vm10, %v9802_v46 }
 0xf9e   : > { %v12449_v47 = vpop.f32.mrb[164].mxu0 }
 0xf9f   : > { %v12450_v19 = vpop.f32.mrb[165].mxu0 }
 0xfa0   : > { %v12451_v48 = vadd.f32 %v12450_v19, %v12449_v47  ;;  %v12452_v49 = vpop.f32.mrb[166].mxu0 }
 0xfa1   : > { %v12453_v53 = vpop.f32.mrb[167].mxu0 }
 0xfa2   : > { %v12682_v55 = vadd.f32 %v12681_v17, %v12451_v48 }
 0xfae   : > { %v10282_v12 = vpop.f32.mrb[104].mxu1  ;;  %v10363_v50 = vpop.f32.mrb[136].mxu0 }
 0xfaf   : > { %vm10372_vm11 = vcmp.ge.f32.partialorder %v10282_v12, 0.0  ;;  %v10375_v38 = vmul.f32 0.2, %v10282_v12  ;;  %v12683_v5 = vadd.f32 %v12682_v55, %v10363_v50  ;;  %v10284_v56 = vpop.f32.mrb[105].mxu1  ;;  %v12658_v29 = vpop.f32.mrb[137].mxu0 }
 0xfb0   : > { %vm10373_vm12 = vcmp.ge.f32.partialorder %v10284_v56, 0.0  ;;  %v10376_v57 = vmul.f32 0.2, %v10284_v56  ;;  %v10286_v37 = vpop.f32.mrb[106].mxu1  ;;  %v10366_v33 = vpop.f32.mrb[138].mxu0 }
 0xfb1   : > { %v10378_v58 = vsel %vm10372_vm11, %v10282_v12, %v10375_v38  ;;  %vm10374_vm13 = vcmp.ge.f32.partialorder %v12683_v5, 0.0  ;;  %v10377_v40 = vmul.f32 0.2, %v12683_v5  ;;  %v10287_v34 = vpop.f32.mrb[107].mxu1  ;;  %v12659_v30 = vpop.f32.mrb[139].mxu0 }
 0xfb2   : > { %v10381_v59 = vpack.c.bf16 %v10378_v58, %v10378_v58  ;;  %v10379_v60 = vsel %vm10373_vm12, %v10284_v56, %v10376_v57 }
 0xfb3   : > { %v10380_v61 = vsel %vm10374_vm13, %v12683_v5, %v10377_v40  ;;  %v10382_v62 = vpack.c.bf16 %v10379_v60, %v10379_v60 }
 0xfb4   : > { %v10384_v44 = vunpack.c.l.bf16 %v10381_v59  ;;  %v10383_v1 = vpack.c.bf16 %v10380_v61, %v10380_v61 }
 0xfb5   : > { %v10385_v23 = vunpack.c.l.bf16 %v10382_v62 }
 0xfb6   : > { %v10386_v2 = vunpack.c.l.bf16 %v10383_v1  ;;  %v10390_v45 = vmul.f32 %v10387_v63, %v10384_v44 }
 0xfb7   : > { %v10391_v4 = vmul.f32 %v10388_v3, %v10385_v23 }
 0xfb8   : > { %v10392_v6 = vmul.f32 %v10389_v31, %v10386_v2  ;;  %v10394_v9 = vsel %vm10393_vm14, %v10390_v45, 0.0 }
 0xfb9   : > { %v10395_v22 = vsel %vm10393_vm14, %v10391_v4, 0.0 }
 0xfba   : > { %v10396_v13 = vadd.f32 %v10395_v22, %v10394_v9  ;;  %v10397_v14 = vsel %vm10393_vm14, %v10392_v6, 0.0 }
 0xfbc   : > { %v10398_v15 = vadd.f32 %v10397_v14, %v10396_v13 }
 0xfbe   : > { %10399 = vadd.xlane.f32.xlu0 %v10398_v15 }
0x104b   : > { %v10400_v16 = vpop.xlane.xlu0 %10399 }
0x104c   : > { %v10401_v18 = vsel %vm10393_vm14, %v10400_v16, 0.0 }
0x104d   : > { %v10402_v11 = vrot.slane %v10401_v18, 4 }
0x104f   : > { %v10403_v17 = vadd.f32 %v10402_v11, %v10401_v18 }
0x1051   : > { %v10404_v21 = vrot.slane %v10403_v17, 2 }
0x1053   : > { %v10405_v24 = vadd.f32 %v10404_v21, %v10403_v17 }
0x1055   : > { %v10406_v7 = vrot.slane %v10405_v24, 1 }
0x1057   : > { %v10407_v26 = vadd.f32 %v10406_v7, %v10405_v24 }
0x1059   : > { %10409 = vst.msk [vmem:[%s370_s28] sm:$0x1] %vm10408_vm15, %v10407_v26 }
0x105a PF: > { %s21_s13 = sadd.s32 1, %s14101_s13  }
0x105b   : > { %p18_p3 = scmp.ge.s32.totalorder %s21_s13, 4  }
0x105d   :  { %20 = sbr.rel (!%p18_p3) target bundleno = 1 (0x1), region = 119 }
0x1064   :  { %10427 = vsyncpa [#allocation3], 1 }
0x1065   :  { %10429 = vsyncpa [#allocation3 + $0x1], 1 }

</bundles_post_ra>
